<compile_context>
chip_gen: v6e
topology: v6e:2x2x1
jax: 0.10.0
libtpu: 0.0.40
codegen_flags: <defaults>
</compile_context>

<pallas_src>
import functools

import jax
import jax.numpy as jnp
from jax.experimental import pallas as pl
from jax.experimental.pallas import tpu as pltpu

EPS = 1e-5  # PyTorch LayerNorm default eps

_ROW_TILE_CAP = 2048   # projection kernels (HBM-bound): ~2 MB f32 blocks
_TM_CAP = 512          # triangle kernel Np-row tile cap


def _vmem_capacity_bytes():
    try:
        info = pltpu.get_tpu_info()
        cap = getattr(info, "vmem_capacity_bytes", None)
        if cap:
            return int(cap)
    except Exception:
        pass
    return 64 * 1024 * 1024  # v7x-safe fallback


_VMEM_CAP = _vmem_capacity_bytes()
if _VMEM_CAP >= 100 * 1024 * 1024:           # v5e / v6e: 128 MiB physical VMEM
    _PROJ_VMEM_LIMIT = 48 * 1024 * 1024
    _TRI_VMEM_BUDGET = 80 * 1024 * 1024
    _TRI_VMEM_LIMIT = 104 * 1024 * 1024
else:                                         # v7x: 64 MiB physical VMEM
    _PROJ_VMEM_LIMIT = 32 * 1024 * 1024
    _TRI_VMEM_BUDGET = 24 * 1024 * 1024
    _TRI_VMEM_LIMIT = 40 * 1024 * 1024


# ----------------------------- small helpers ---------------------------------
def _layernorm(x, gamma, beta):
    mean = jnp.mean(x, axis=-1, keepdims=True)
    var = jnp.mean(jnp.square(x - mean), axis=-1, keepdims=True)
    return (x - mean) * jax.lax.rsqrt(var + EPS) * gamma + beta


def _row_tile(rows, cap=_ROW_TILE_CAP):
    return rows if rows <= cap else cap


def _pad_axis(x, axis, mult):
    pad = (-x.shape[axis]) % mult
    if pad == 0:
        return x
    widths = [(0, 0)] * x.ndim
    widths[axis] = (0, pad)
    return jnp.pad(x, widths)


def _rup(x, m):
    return ((x + m - 1) // m) * m


def _tile_bytes(lead, sub, lane, itemsize):
    """Padding-aware VMEM footprint of one (lead, sub, lane) tile."""
    sub_mult = 32 // itemsize                 # f32 -> 8 sublanes, bf16 -> 16
    return lead * _rup(sub, sub_mult) * _rup(lane, 128) * itemsize


def _triangle_tiles(C, n_p, n_c, budget=_TRI_VMEM_BUDGET):
    """Pick (c_blk, tm): channel block and Np-row tile for the triangle kernel.

    Prefers keeping the channel block large and tiling the Np row axis; the
    estimate rounds every tile up to (sublane, lane) multiples and accounts
    for Pallas double-buffering of every input/output block.
    """
    c_cands = [d for d in range(C, 0, -1) if C % d == 0]
    if n_p <= _TM_CAP:
        tm_cands = [n_p]                      # full rows, no partial blocks
    else:
        tm_cands = [t for t in (512, 256, 128, 64, 32, 16) if t <= n_p]
    for c_blk in c_cands:
        for tm in tm_cands:
            resident = (_tile_bytes(c_blk, n_p, n_c, 2)     # ab1 (full, reused)
                        + _tile_bytes(c_blk, n_c, n_c, 2))  # cp  (full, reused)
            per_step = (_tile_bytes(c_blk, tm, n_p, 2)      # pp row tile
                        + _tile_bytes(c_blk, tm, n_c, 2)    # ab2 row tile
                        + _tile_bytes(c_blk, tm, n_c, 4))   # f32 out row tile
            if 2 * (resident + per_step) <= budget:         # double-buffered
                return c_blk, tm
    # TODO(synk): tile the contraction (k over Np) as well for inputs so large
    # that even a single-channel slice overflows the budget.
    return 1, tm_cands[-1]


# ------------- kernel 1: fused z projections (LN once, z read once) ----------
def z_fused_kernel(z_ref, mrow_ref, mcol_ref, ln_g_ref, ln_b_ref,
                   w_ab_ref, b_ab_ref, w_ge_ref, b_ge_ref,
                   ab1_ref, ab2_ref, g_ref, *, c):
    x = z_ref[0].astype(jnp.float32)                              # (tr, E)
    xn = _layernorm(x, ln_g_ref[...], ln_b_ref[...])
    xn_b = xn.astype(jnp.bfloat16)

    # One wide gate|value projection, emitted channel-major:
    #   h[o, r] = sum_e w_ab[o, e] * xn[r, e]
    # Both operands contract on their minor (lane) dim (A.B^T); any relayout
    # Mosaic inserts for this form stays hidden under the DMA-bound pipeline.
    h = jax.lax.dot_general(
        w_ab_ref[...], xn_b, (((1,), (1,)), ((), ())),
        preferred_element_type=jnp.float32) + b_ab_ref[...]       # (4c, tr)

    m_row = mrow_ref[0]                                           # (1, tr) bf16
    ab1 = jax.nn.sigmoid(h[0 * c:1 * c]) * h[1 * c:2 * c] * m_row
    ab2 = jax.nn.sigmoid(h[2 * c:3 * c]) * h[3 * c:4 * c] * m_row
    ab1_ref[0] = ab1.astype(ab1_ref.dtype)                        # (c, tr) bf16
    ab2_ref[0] = ab2.astype(ab2_ref.dtype)

    # Ending gate stays channels-last (its consumer is channels-last); z_mask is
    # folded in here so the output kernel needs no separate mask stream.
    ge = jnp.dot(xn_b, w_ge_ref[...],
                 preferred_element_type=jnp.float32) + b_ge_ref[...]
    g_ref[0] = (jax.nn.sigmoid(ge) * mcol_ref[0]).astype(g_ref.dtype)


def z_projection(z3, m_row, m_col, ln_g, ln_b, w_ab_t, b_ab, w_ge, b_ge, c):
    B, R, E = z3.shape
    tr = _row_tile(R)
    Rp = pl.cdiv(R, tr) * tr
    if Rp != R:
        z3 = _pad_axis(z3, 1, tr)
        m_row = _pad_axis(m_row, 2, tr)
        m_col = _pad_axis(m_col, 1, tr)
    kern = functools.partial(z_fused_kernel, c=c)
    ab1, ab2, g = pl.pallas_call(
        kern,
        out_shape=(
            jax.ShapeDtypeStruct((B, c, Rp), jnp.bfloat16),
            jax.ShapeDtypeStruct((B, c, Rp), jnp.bfloat16),
            jax.ShapeDtypeStruct((B, Rp, E), jnp.bfloat16),       # g in bf16
        ),
        grid_spec=pltpu.PrefetchScalarGridSpec(
            num_scalar_prefetch=0,
            grid=(B, Rp // tr),
            in_specs=[
                pl.BlockSpec((1, tr, E), lambda b, i: (b, i, 0)),   # z
                pl.BlockSpec((1, 1, tr), lambda b, i: (b, 0, i)),   # mask, row layout
                pl.BlockSpec((1, tr, 1), lambda b, i: (b, i, 0)),   # mask, col layout (bf16)
                pl.BlockSpec((1, E), lambda b, i: (0, 0)),
                pl.BlockSpec((1, E), lambda b, i: (0, 0)),
                pl.BlockSpec(w_ab_t.shape, lambda b, i: (0, 0)),
                pl.BlockSpec(b_ab.shape, lambda b, i: (0, 0)),
                pl.BlockSpec(w_ge.shape, lambda b, i: (0, 0)),
                pl.BlockSpec(b_ge.shape, lambda b, i: (0, 0)),
            ],
            out_specs=[
                pl.BlockSpec((1, c, tr), lambda b, i: (b, 0, i)),
                pl.BlockSpec((1, c, tr), lambda b, i: (b, 0, i)),
                pl.BlockSpec((1, tr, E), lambda b, i: (b, i, 0)),
            ],
        ),
        compiler_params=pltpu.CompilerParams(
            dimension_semantics=("parallel", "parallel"),
            vmem_limit_bytes=_PROJ_VMEM_LIMIT,
        ),
    )(z3, m_row, m_col, ln_g, ln_b, w_ab_t, b_ab, w_ge, b_ge)
    if Rp != R:
        ab1, ab2, g = ab1[:, :, :R], ab2[:, :, :R], g[:, :R]
    return ab1, ab2, g


# --------- kernel 2: fused pair projection (no mask, channel-major out) ------
def pair_fused_kernel(p_ref, ln_g_ref, ln_b_ref, w_ref, b_ref, out_ref, *, c):
    x = p_ref[0].astype(jnp.float32)                              # (tr, E)
    xn = _layernorm(x, ln_g_ref[...], ln_b_ref[...]).astype(jnp.bfloat16)
    h = jax.lax.dot_general(
        w_ref[...], xn, (((1,), (1,)), ((), ())),
        preferred_element_type=jnp.float32) + b_ref[...]          # (2c, tr)
    out_ref[0] = (jax.nn.sigmoid(h[:c]) * h[c:]).astype(out_ref.dtype)


def pair_projection(p3, ln_g, ln_b, w_t, b, c):
    B, R, E = p3.shape
    tr = _row_tile(R)
    Rp = pl.cdiv(R, tr) * tr
    if Rp != R:
        p3 = _pad_axis(p3, 1, tr)
    kern = functools.partial(pair_fused_kernel, c=c)
    out = pl.pallas_call(
        kern,
        out_shape=jax.ShapeDtypeStruct((B, c, Rp), jnp.bfloat16),
        grid_spec=pltpu.PrefetchScalarGridSpec(
            num_scalar_prefetch=0,
            grid=(B, Rp // tr),
            in_specs=[
                pl.BlockSpec((1, tr, E), lambda b, i: (b, i, 0)),
                pl.BlockSpec((1, E), lambda b, i: (0, 0)),
                pl.BlockSpec((1, E), lambda b, i: (0, 0)),
                pl.BlockSpec(w_t.shape, lambda b, i: (0, 0)),
                pl.BlockSpec(b.shape, lambda b, i: (0, 0)),
            ],
            out_specs=pl.BlockSpec((1, c, tr), lambda b, i: (b, 0, i)),
        ),
        compiler_params=pltpu.CompilerParams(
            dimension_semantics=("parallel", "parallel"),
            vmem_limit_bytes=_PROJ_VMEM_LIMIT,
        ),
    )(p3, ln_g, ln_b, w_t, b)
    if Rp != R:
        out = out[:, :, :R]
    return out


# ---- kernel 3: triangle einsums, tiled over (batch, channel blk, Np rows) ---
def triangle_kernel(pp_ref, ab1_ref, ab2_ref, cp_ref, out_ref):
    # block1[c,i,j] = sum_k pp[c,i,k] * ab1[c,k,j]
    b1 = jnp.einsum('cik,ckj->cij', pp_ref[0], ab1_ref[0],
                    preferred_element_type=jnp.float32)
    # block2[c,i,j] = sum_k ab2[c,i,k] * cp[c,j,k]
    b2 = jnp.einsum('cik,cjk->cij', ab2_ref[0], cp_ref[0],
                    preferred_element_type=jnp.float32)
    out_ref[0] = (b1 + b2).astype(out_ref.dtype)                  # single store


def triangle(pp_cm, ab1_cm, ab2_cm, cp_cm):
    B, C, n_p, _ = pp_cm.shape
    n_c = cp_cm.shape[2]
    c_blk, tm = _triangle_tiles(C, n_p, n_c)
    # i (Np row tile) innermost: ab1 / cp blocks are invariant along it, so they
    # are only re-fetched when the (b, c) block index changes.
    return pl.pallas_call(
        triangle_kernel,
        out_shape=jax.ShapeDtypeStruct((B, C, n_p, n_c), jnp.float32),
        grid_spec=pltpu.PrefetchScalarGridSpec(
            num_scalar_prefetch=0,
            grid=(B, C // c_blk, pl.cdiv(n_p, tm)),
            in_specs=[
                pl.BlockSpec((1, c_blk, tm, n_p), lambda b, c, i: (b, c, i, 0)),
                pl.BlockSpec((1, c_blk, n_p, n_c), lambda b, c, i: (b, c, 0, 0)),
                pl.BlockSpec((1, c_blk, tm, n_c), lambda b, c, i: (b, c, i, 0)),
                pl.BlockSpec((1, c_blk, n_c, n_c), lambda b, c, i: (b, c, 0, 0)),
            ],
            out_specs=pl.BlockSpec((1, c_blk, tm, n_c),
                                   lambda b, c, i: (b, c, i, 0)),
        ),
        compiler_params=pltpu.CompilerParams(
            dimension_semantics=("parallel", "parallel", "parallel"),
            vmem_limit_bytes=_TRI_VMEM_LIMIT,
        ),
    )(pp_cm, ab1_cm, ab2_cm, cp_cm)


# --------- kernel 4: LayerNorm_c + linear_after_sum + (pre-masked) gate ------
# Consumes the CHANNEL-MAJOR triangle output directly: LN is a reduction over
# the leading C axis, and the projection contracts C on both operands (A^T.B),
# so its result is already channels-last -> no XLA transpose of the large f32
# intermediate anywhere. gamma/beta of LayerNorm_c are folded into w/b outside.
def output_kernel(blk_ref, g_ref, w_ref, b_ref, out_ref):
    blk = blk_ref[0]                                              # (C, tr) f32
    mean = jnp.mean(blk, axis=0, keepdims=True)
    var = jnp.mean(jnp.square(blk - mean), axis=0, keepdims=True)
    bn = ((blk - mean) * jax.lax.rsqrt(var + EPS)).astype(jnp.bfloat16)
    # proj[r, e] = sum_c bn[c, r] * w[c, e]
    proj = jax.lax.dot_general(
        bn, w_ref[...], (((0,), (0,)), ((), ())),
        preferred_element_type=jnp.float32) + b_ref[...]          # (tr, E)
    out_ref[0] = (g_ref[0].astype(jnp.float32) * proj).astype(out_ref.dtype)


def output_projection(blk_cm_flat, g, w_eff, b_eff):
    B, C, R = blk_cm_flat.shape
    E = w_eff.shape[1]
    tr = _row_tile(R)
    return pl.pallas_call(
        output_kernel,
        out_shape=jax.ShapeDtypeStruct((B, R, E), jnp.float32),
        grid_spec=pltpu.PrefetchScalarGridSpec(
            num_scalar_prefetch=0,
            grid=(B, pl.cdiv(R, tr)),
            in_specs=[
                pl.BlockSpec((1, C, tr), lambda b, i: (b, 0, i)),  # channel-major
                pl.BlockSpec((1, tr, E), lambda b, i: (b, i, 0)),  # bf16 gate
                pl.BlockSpec(w_eff.shape, lambda b, i: (0, 0)),
                pl.BlockSpec(b_eff.shape, lambda b, i: (0, 0)),
            ],
            out_specs=pl.BlockSpec((1, tr, E), lambda b, i: (b, i, 0)),
        ),
        compiler_params=pltpu.CompilerParams(
            dimension_semantics=("parallel", "parallel"),
            vmem_limit_bytes=_PROJ_VMEM_LIMIT,
        ),
    )(blk_cm_flat, g, w_eff, b_eff)


# ----------------------------- full forward pass -----------------------------
def triangle_protein_to_compound_v2(params, z, protein_pair, compound_pair, z_mask):
    B, n_p, n_c, E = z.shape
    C = params['w1'].shape[1]
    f32, bf16 = jnp.float32, jnp.bfloat16

    # Fold the (tiny) parameter tensors into fused, pre-transposed MXU operands.
    w_ab_t = jnp.concatenate(
        [params['wg1'], params['w1'], params['wg2'], params['w2']], axis=1
    ).T.astype(bf16)                                              # (4C, E)
    b_ab = jnp.concatenate(
        [params['bg1'], params['b1'], params['bg2'], params['b2']], axis=0
    ).reshape(-1, 1).astype(f32)                                  # (4C, 1)
    w_pp_t = jnp.concatenate([params['wg2'], params['w2']], axis=1).T.astype(bf16)
    b_pp = jnp.concatenate([params['bg2'], params['b2']], 0).reshape(-1, 1).astype(f32)
    w_cp_t = jnp.concatenate([params['wg1'], params['w1']], axis=1).T.astype(bf16)
    b_cp = jnp.concatenate([params['bg1'], params['b1']], 0).reshape(-1, 1).astype(f32)
    w_ge = params['wg_end'].astype(bf16)
    b_ge = params['bg_end'].reshape(1, E).astype(f32)
    ln_g = params['ln_g'].reshape(1, E).astype(f32)
    ln_b = params['ln_b'].reshape(1, E).astype(f32)
    # Fold LayerNorm_c's affine into the output projection (exact rewrite):
    #   LN(x)@W + b = xhat@(gamma[:,None]*W) + (beta@W + b)
    w_as_eff = (params['ln_c_g'][:, None] * params['w_as']).astype(bf16)   # (C, E)
    b_as_eff = (params['ln_c_b'] @ params['w_as']
                + params['b_as']).reshape(1, E).astype(f32)                # (1, E)

    R = n_p * n_c
    z3 = z.reshape(B, R, E)
    # Mask streams in bf16 (0/1 exact); the (R,1) column stream pads to 128
    # lanes in VMEM, so bf16 halves that padding cost at large row tiles.
    m_col = z_mask.reshape(B, R, 1).astype(bf16)
    m_row = z_mask.reshape(B, 1, R).astype(bf16)

    # z read once; LayerNorm computed once; ab1/ab2 emitted channel-major,
    # ending gate (with z_mask folded in) emitted channels-last in bf16.
    ab1_cm, ab2_cm, g_masked = z_projection(
        z3, m_row, m_col, ln_g, ln_b, w_ab_t, b_ab, w_ge, b_ge, C)

    # Pair projections (no materialized ones-mask), channel-major output.
    pp_cm = pair_projection(protein_pair.reshape(B, n_p * n_p, E),
                            ln_g, ln_b, w_pp_t, b_pp, C).reshape(B, C, n_p, n_p)
    cp_cm = pair_projection(compound_pair.reshape(B, n_c * n_c, E),
                            ln_g, ln_b, w_cp_t, b_cp, C).reshape(B, C, n_c, n_c)

    ab1_cm = ab1_cm.reshape(B, C, n_p, n_c)
    ab2_cm = ab2_cm.reshape(B, C, n_p, n_c)

    # Triangle einsums, tiled over (batch, channel blocks, Np-row tiles).
    blk_cm = triangle(pp_cm, ab1_cm, ab2_cm, cp_cm)               # (B,C,Np,Nc) f32

    # Free (contiguous) view to (B, C, R); the output kernel consumes it
    # channel-major, so there is NO XLA transpose of this large intermediate.
    out = output_projection(blk_cm.reshape(B, C, R), g_masked, w_as_eff, b_as_eff)
    return out.reshape(B, n_p, n_c, E)


# ----------------------------- pure-JAX reference ----------------------------
def reference(params, z, protein_pair, compound_pair, z_mask):
    def ln(x, g, b):
        mean = jnp.mean(x, axis=-1, keepdims=True)
        var = jnp.mean(jnp.square(x - mean), axis=-1, keepdims=True)
        return (x - mean) / jnp.sqrt(var + EPS) * g + b

    sig = jax.nn.sigmoid
    zn = ln(z, params['ln_g'], params['ln_b'])
    ppn = ln(protein_pair, params['ln_g'], params['ln_b'])
    cpn = ln(compound_pair, params['ln_g'], params['ln_b'])
    ab1 = sig(zn @ params['wg1'] + params['bg1']) * (zn @ params['w1'] + params['b1']) * z_mask
    ab2 = sig(zn @ params['wg2'] + params['bg2']) * (zn @ params['w2'] + params['b2']) * z_mask
    pp = sig(ppn @ params['wg2'] + params['bg2']) * (ppn @ params['w2'] + params['b2'])
    cp = sig(cpn @ params['wg1'] + params['bg1']) * (cpn @ params['w1'] + params['b1'])
    g = sig(zn @ params['wg_end'] + params['bg_end'])
    block1 = jnp.einsum('bikc,bkjc->bijc', pp, ab1)
    block2 = jnp.einsum('bikc,bjkc->bijc', ab2, cp)
    s = ln(block1 + block2, params['ln_c_g'], params['ln_c_b'])
    return g * (s @ params['w_as'] + params['b_as']) * z_mask


# ------------------------------------ main ------------------------------------
if __name__ == "__main__":
    B, Np, Nc = 2, 16, 8
    E, C = 32, 16   # embedding_channels, c (scaled down from 256 / 128)

    key = jax.random.PRNGKey(0)
    ks = jax.random.split(key, 20)

    def nrm(k, shape, scale=0.1):
        return (scale * jax.random.normal(k, shape)).astype(jnp.float32)

    params = dict(
        ln_g=1.0 + nrm(ks[0], (E,)), ln_b=nrm(ks[1], (E,)),
        ln_c_g=1.0 + nrm(ks[2], (C,)), ln_c_b=nrm(ks[3], (C,)),
        wg1=nrm(ks[4], (E, C)), bg1=nrm(ks[5], (C,)),
        wg2=nrm(ks[6], (E, C)), bg2=nrm(ks[7], (C,)),
        w1=nrm(ks[8], (E, C)), b1=nrm(ks[9], (C,)),
        w2=nrm(ks[10], (E, C)), b2=nrm(ks[11], (C,)),
        wg_end=nrm(ks[12], (E, E)), bg_end=nrm(ks[13], (E,)),
        w_as=nrm(ks[14], (C, E)), b_as=nrm(ks[15], (E,)),
    )

    z = jax.random.normal(ks[16], (B, Np, Nc, E), dtype=jnp.float32)
    protein_pair = jax.random.normal(ks[17], (B, Np, Np, E), dtype=jnp.float32)
    compound_pair = jax.random.normal(ks[18], (B, Nc, Nc, E), dtype=jnp.float32)
    z_mask = (jax.random.uniform(ks[19], (B, Np, Nc, 1)) < 0.8).astype(jnp.float32)

    fwd = jax.jit(triangle_protein_to_compound_v2)
    out = jax.block_until_ready(fwd(params, z, protein_pair, compound_pair, z_mask))

    with jax.default_matmul_precision("highest"):
        ref = jax.block_until_ready(
            reference(params, z, protein_pair, compound_pair, z_mask))

    assert out.shape == ref.shape == (B, Np, Nc, E)
    max_err = float(jnp.max(jnp.abs(out - ref)))
    assert jnp.allclose(out, ref, atol=5e-2, rtol=5e-2), f"max abs err {max_err}"
    print("KERNEL_OK")
</pallas_src>

<mosaic_0001>
module attributes {stable_mosaic.version = 11 : i64} {
  func.func @z_fused_kernel(%arg0: i32, %arg1: i32, %arg2: memref<1x128x32xf32, #tpu.memory_space<vmem>>, %arg3: memref<1x1x128xbf16, #tpu.memory_space<vmem>>, %arg4: memref<1x128x1xbf16, #tpu.memory_space<vmem>>, %arg5: memref<1x32xf32, #tpu.memory_space<vmem>>, %arg6: memref<1x32xf32, #tpu.memory_space<vmem>>, %arg7: memref<64x32xbf16, #tpu.memory_space<vmem>>, %arg8: memref<64x1xf32, #tpu.memory_space<vmem>>, %arg9: memref<32x32xbf16, #tpu.memory_space<vmem>>, %arg10: memref<1x32xf32, #tpu.memory_space<vmem>>, %arg11: memref<1x16x128xbf16, #tpu.memory_space<vmem>>, %arg12: memref<1x16x128xbf16, #tpu.memory_space<vmem>>, %arg13: memref<1x128x32xbf16, #tpu.memory_space<vmem>>) attributes {dimension_semantics = [#tpu.dimension_semantics<parallel>, #tpu.dimension_semantics<parallel>], iteration_bounds = array<i64: 2, 1>, scalar_prefetch = 0 : i64, scratch_operands = 0 : i64, tpu.core_type = #tpu.core_type<tc>, window_params = [{transform_indices = @transform_0, window_bounds = array<i64: 1, 128, 32>}, {transform_indices = @transform_1, window_bounds = array<i64: 1, 1, 128>}, {transform_indices = @transform_2, window_bounds = array<i64: 1, 128, 1>}, {pipeline_mode = #tpu.pipeline_mode<synchronous>, transform_indices = @transform_3, window_bounds = array<i64: 1, 32>}, {pipeline_mode = #tpu.pipeline_mode<synchronous>, transform_indices = @transform_4, window_bounds = array<i64: 1, 32>}, {pipeline_mode = #tpu.pipeline_mode<synchronous>, transform_indices = @transform_5, window_bounds = array<i64: 64, 32>}, {pipeline_mode = #tpu.pipeline_mode<synchronous>, transform_indices = @transform_6, window_bounds = array<i64: 64, 1>}, {pipeline_mode = #tpu.pipeline_mode<synchronous>, transform_indices = @transform_7, window_bounds = array<i64: 32, 32>}, {pipeline_mode = #tpu.pipeline_mode<synchronous>, transform_indices = @transform_8, window_bounds = array<i64: 1, 32>}, {transform_indices = @transform_9, window_bounds = array<i64: 1, 16, 128>}, {transform_indices = @transform_10, window_bounds = array<i64: 1, 16, 128>}, {transform_indices = @transform_11, window_bounds = array<i64: 1, 128, 32>}]} {
    %c0 = arith.constant 0 : index
    %c0_0 = arith.constant 0 : index
    %c0_1 = arith.constant 0 : index
    %0 = vector.load %arg2[%c0, %c0_0, %c0_1] : memref<1x128x32xf32, #tpu.memory_space<vmem>>, vector<1x128x32xf32>
    %1 = vector.shape_cast %0 : vector<1x128x32xf32> to vector<128x32xf32>
    %c0_2 = arith.constant 0 : index
    %c0_3 = arith.constant 0 : index
    %2 = vector.load %arg5[%c0_2, %c0_3] : memref<1x32xf32, #tpu.memory_space<vmem>>, vector<1x32xf32>
    %c0_4 = arith.constant 0 : index
    %c0_5 = arith.constant 0 : index
    %3 = vector.load %arg6[%c0_4, %c0_5] : memref<1x32xf32, #tpu.memory_space<vmem>>, vector<1x32xf32>
    %cst = arith.constant dense<0.000000e+00> : vector<128xf32>
    %4 = vector.multi_reduction <add>, %1, %cst [1] : vector<128x32xf32> to vector<128xf32>
    %5 = vector.shape_cast %4 : vector<128xf32> to vector<128x1xf32>
    %cst_6 = arith.constant 3.200000e+01 : f32
    %6 = vector.broadcast %cst_6 : f32 to vector<128x1xf32>
    %7 = arith.divf %5, %6 : vector<128x1xf32>
    %8 = vector.broadcast %7 : vector<128x1xf32> to vector<128x32xf32>
    %9 = arith.subf %1, %8 : vector<128x32xf32>
    %10 = arith.mulf %9, %9 : vector<128x32xf32>
    %cst_7 = arith.constant dense<0.000000e+00> : vector<128xf32>
    %11 = vector.multi_reduction <add>, %10, %cst_7 [1] : vector<128x32xf32> to vector<128xf32>
    %12 = vector.shape_cast %11 : vector<128xf32> to vector<128x1xf32>
    %cst_8 = arith.constant 3.200000e+01 : f32
    %13 = vector.broadcast %cst_8 : f32 to vector<128x1xf32>
    %14 = arith.divf %12, %13 : vector<128x1xf32>
    %15 = vector.broadcast %7 : vector<128x1xf32> to vector<128x32xf32>
    %16 = arith.subf %1, %15 : vector<128x32xf32>
    %cst_9 = arith.constant 9.99999974E-6 : f32
    %17 = vector.broadcast %cst_9 : f32 to vector<128x1xf32>
    %18 = arith.addf %14, %17 : vector<128x1xf32>
    %19 = math.rsqrt %18 : vector<128x1xf32>
    %20 = vector.broadcast %19 : vector<128x1xf32> to vector<128x32xf32>
    %21 = arith.mulf %16, %20 : vector<128x32xf32>
    %22 = vector.broadcast %2 : vector<1x32xf32> to vector<128x32xf32>
    %23 = arith.mulf %21, %22 : vector<128x32xf32>
    %24 = vector.broadcast %3 : vector<1x32xf32> to vector<128x32xf32>
    %25 = arith.addf %23, %24 : vector<128x32xf32>
    %26 = arith.truncf %25 : vector<128x32xf32> to vector<128x32xbf16>
    %c0_10 = arith.constant 0 : index
    %c0_11 = arith.constant 0 : index
    %27 = vector.load %arg7[%c0_10, %c0_11] : memref<64x32xbf16, #tpu.memory_space<vmem>>, vector<64x32xbf16>
    %cst_12 = arith.constant dense<0.000000e+00> : vector<64x128xf32>
    %28 = tpu.matmul %27, %26, %cst_12 {dimension_numbers = #tpu.dot_dimension_numbers<[1], [1], [0], [0], [0, 0, 1, 0], [], []>} : vector<64x32xbf16>, vector<128x32xbf16>, vector<64x128xf32> -> vector<64x128xf32>
    %c0_13 = arith.constant 0 : index
    %c0_14 = arith.constant 0 : index
    %29 = vector.load %arg8[%c0_13, %c0_14] : memref<64x1xf32, #tpu.memory_space<vmem>>, vector<64x1xf32>
    %30 = vector.broadcast %29 : vector<64x1xf32> to vector<64x128xf32>
    %31 = arith.addf %28, %30 : vector<64x128xf32>
    %c0_15 = arith.constant 0 : index
    %c0_16 = arith.constant 0 : index
    %c0_17 = arith.constant 0 : index
    %32 = vector.load %arg3[%c0_15, %c0_16, %c0_17] : memref<1x1x128xbf16, #tpu.memory_space<vmem>>, vector<1x1x128xbf16>
    %33 = vector.shape_cast %32 : vector<1x1x128xbf16> to vector<1x128xbf16>
    %34 = vector.extract_strided_slice %31 {offsets = [0, 0], sizes = [16, 128], strides = [1, 1]} : vector<64x128xf32> to vector<16x128xf32>
    %35 = arith.negf %34 : vector<16x128xf32>
    %36 = math.exp %35 : vector<16x128xf32>
    %cst_18 = arith.constant 1.000000e+00 : f32
    %37 = vector.broadcast %cst_18 : f32 to vector<16x128xf32>
    %38 = arith.addf %37, %36 : vector<16x128xf32>
    %39 = arith.divf %37, %38 : vector<16x128xf32>
    %40 = vector.extract_strided_slice %31 {offsets = [16, 0], sizes = [16, 128], strides = [1, 1]} : vector<64x128xf32> to vector<16x128xf32>
    %41 = arith.mulf %39, %40 : vector<16x128xf32>
    %42 = arith.extf %33 : vector<1x128xbf16> to vector<1x128xf32>
    %43 = vector.broadcast %42 : vector<1x128xf32> to vector<16x128xf32>
    %44 = arith.mulf %41, %43 : vector<16x128xf32>
    %45 = vector.extract_strided_slice %31 {offsets = [32, 0], sizes = [16, 128], strides = [1, 1]} : vector<64x128xf32> to vector<16x128xf32>
    %46 = arith.negf %45 : vector<16x128xf32>
    %47 = math.exp %46 : vector<16x128xf32>
    %cst_19 = arith.constant 1.000000e+00 : f32
    %48 = vector.broadcast %cst_19 : f32 to vector<16x128xf32>
    %49 = arith.addf %48, %47 : vector<16x128xf32>
    %50 = arith.divf %48, %49 : vector<16x128xf32>
    %51 = vector.extract_strided_slice %31 {offsets = [48, 0], sizes = [16, 128], strides = [1, 1]} : vector<64x128xf32> to vector<16x128xf32>
    %52 = arith.mulf %50, %51 : vector<16x128xf32>
    %53 = arith.extf %33 : vector<1x128xbf16> to vector<1x128xf32>
    %54 = vector.broadcast %53 : vector<1x128xf32> to vector<16x128xf32>
    %55 = arith.mulf %52, %54 : vector<16x128xf32>
    %56 = arith.truncf %44 : vector<16x128xf32> to vector<16x128xbf16>
    %c0_20 = arith.constant 0 : index
    %c0_21 = arith.constant 0 : index
    %c0_22 = arith.constant 0 : index
    %57 = vector.load %arg11[%c0_20, %c0_21, %c0_22] : memref<1x16x128xbf16, #tpu.memory_space<vmem>>, vector<1x16x128xbf16>
    %58 = vector.shape_cast %57 : vector<1x16x128xbf16> to vector<16x128xbf16>
    %59 = vector.shape_cast %56 : vector<16x128xbf16> to vector<1x16x128xbf16>
    tpu.vector_store %arg11[%c0_20, %c0_21, %c0_22], %59 {strides = array<i32>} : memref<1x16x128xbf16, #tpu.memory_space<vmem>>, vector<1x16x128xbf16>,
    %60 = arith.truncf %55 : vector<16x128xf32> to vector<16x128xbf16>
    %c0_23 = arith.constant 0 : index
    %c0_24 = arith.constant 0 : index
    %c0_25 = arith.constant 0 : index
    %61 = vector.load %arg12[%c0_23, %c0_24, %c0_25] : memref<1x16x128xbf16, #tpu.memory_space<vmem>>, vector<1x16x128xbf16>
    %62 = vector.shape_cast %61 : vector<1x16x128xbf16> to vector<16x128xbf16>
    %63 = vector.shape_cast %60 : vector<16x128xbf16> to vector<1x16x128xbf16>
    tpu.vector_store %arg12[%c0_23, %c0_24, %c0_25], %63 {strides = array<i32>} : memref<1x16x128xbf16, #tpu.memory_space<vmem>>, vector<1x16x128xbf16>,
    %c0_26 = arith.constant 0 : index
    %c0_27 = arith.constant 0 : index
    %64 = vector.load %arg9[%c0_26, %c0_27] : memref<32x32xbf16, #tpu.memory_space<vmem>>, vector<32x32xbf16>
    %cst_28 = arith.constant dense<0.000000e+00> : vector<128x32xf32>
    %65 = tpu.matmul %26, %64, %cst_28 {dimension_numbers = #tpu.dot_dimension_numbers<[1], [0], [0], [1], [0, 0, 1, 1], [], []>} : vector<128x32xbf16>, vector<32x32xbf16>, vector<128x32xf32> -> vector<128x32xf32>
    %c0_29 = arith.constant 0 : index
    %c0_30 = arith.constant 0 : index
    %66 = vector.load %arg10[%c0_29, %c0_30] : memref<1x32xf32, #tpu.memory_space<vmem>>, vector<1x32xf32>
    %67 = vector.broadcast %66 : vector<1x32xf32> to vector<128x32xf32>
    %68 = arith.addf %65, %67 : vector<128x32xf32>
    %69 = arith.negf %68 : vector<128x32xf32>
    %70 = math.exp %69 : vector<128x32xf32>
    %cst_31 = arith.constant 1.000000e+00 : f32
    %71 = vector.broadcast %cst_31 : f32 to vector<128x32xf32>
    %72 = arith.addf %71, %70 : vector<128x32xf32>
    %73 = arith.divf %71, %72 : vector<128x32xf32>
    %c0_32 = arith.constant 0 : index
    %c0_33 = arith.constant 0 : index
    %c0_34 = arith.constant 0 : index
    %74 = vector.load %arg4[%c0_32, %c0_33, %c0_34] : memref<1x128x1xbf16, #tpu.memory_space<vmem>>, vector<1x128x1xbf16>
    %75 = vector.shape_cast %74 : vector<1x128x1xbf16> to vector<128x1xbf16>
    %76 = arith.extf %75 : vector<128x1xbf16> to vector<128x1xf32>
    %77 = vector.broadcast %76 : vector<128x1xf32> to vector<128x32xf32>
    %78 = arith.mulf %73, %77 : vector<128x32xf32>
    %79 = arith.truncf %78 : vector<128x32xf32> to vector<128x32xbf16>
    %c0_35 = arith.constant 0 : index
    %c0_36 = arith.constant 0 : index
    %c0_37 = arith.constant 0 : index
    %80 = vector.load %arg13[%c0_35, %c0_36, %c0_37] : memref<1x128x32xbf16, #tpu.memory_space<vmem>>, vector<1x128x32xbf16>
    %81 = vector.shape_cast %80 : vector<1x128x32xbf16> to vector<128x32xbf16>
    %82 = vector.shape_cast %79 : vector<128x32xbf16> to vector<1x128x32xbf16>
    tpu.vector_store %arg13[%c0_35, %c0_36, %c0_37], %82 {strides = array<i32>} : memref<1x128x32xbf16, #tpu.memory_space<vmem>>, vector<1x128x32xbf16>,
    return
  }
  func.func @transform_0(%arg0: i32, %arg1: i32) -> (i32, i32, i32) {
    %c0_i32 = arith.constant 0 : i32
    %c0_i32_0 = arith.constant 0 : i32
    return %arg0, %arg1, %c0_i32 : i32, i32, i32
  }
  func.func @transform_1(%arg0: i32, %arg1: i32) -> (i32, i32, i32) {
    %c0_i32 = arith.constant 0 : i32
    %c0_i32_0 = arith.constant 0 : i32
    return %arg0, %c0_i32, %arg1 : i32, i32, i32
  }
  func.func @transform_2(%arg0: i32, %arg1: i32) -> (i32, i32, i32) {
    %c0_i32 = arith.constant 0 : i32
    %c0_i32_0 = arith.constant 0 : i32
    return %arg0, %arg1, %c0_i32 : i32, i32, i32
  }
  func.func @transform_3(%arg0: i32, %arg1: i32) -> (i32, i32) {
    %c0_i32 = arith.constant 0 : i32
    %c0_i32_0 = arith.constant 0 : i32
    %c0_i32_1 = arith.constant 0 : i32
    return %c0_i32, %c0_i32_0 : i32, i32
  }
  func.func @transform_4(%arg0: i32, %arg1: i32) -> (i32, i32) {
    %c0_i32 = arith.constant 0 : i32
    %c0_i32_0 = arith.constant 0 : i32
    %c0_i32_1 = arith.constant 0 : i32
    return %c0_i32, %c0_i32_0 : i32, i32
  }
  func.func @transform_5(%arg0: i32, %arg1: i32) -> (i32, i32) {
    %c0_i32 = arith.constant 0 : i32
    %c0_i32_0 = arith.constant 0 : i32
    %c0_i32_1 = arith.constant 0 : i32
    return %c0_i32, %c0_i32_0 : i32, i32
  }
  func.func @transform_6(%arg0: i32, %arg1: i32) -> (i32, i32) {
    %c0_i32 = arith.constant 0 : i32
    %c0_i32_0 = arith.constant 0 : i32
    %c0_i32_1 = arith.constant 0 : i32
    return %c0_i32, %c0_i32_0 : i32, i32
  }
  func.func @transform_7(%arg0: i32, %arg1: i32) -> (i32, i32) {
    %c0_i32 = arith.constant 0 : i32
    %c0_i32_0 = arith.constant 0 : i32
    %c0_i32_1 = arith.constant 0 : i32
    return %c0_i32, %c0_i32_0 : i32, i32
  }
  func.func @transform_8(%arg0: i32, %arg1: i32) -> (i32, i32) {
    %c0_i32 = arith.constant 0 : i32
    %c0_i32_0 = arith.constant 0 : i32
    %c0_i32_1 = arith.constant 0 : i32
    return %c0_i32, %c0_i32_0 : i32, i32
  }
  func.func @transform_9(%arg0: i32, %arg1: i32) -> (i32, i32, i32) {
    %c0_i32 = arith.constant 0 : i32
    %c0_i32_0 = arith.constant 0 : i32
    return %arg0, %c0_i32, %arg1 : i32, i32, i32
  }
  func.func @transform_10(%arg0: i32, %arg1: i32) -> (i32, i32, i32) {
    %c0_i32 = arith.constant 0 : i32
    %c0_i32_0 = arith.constant 0 : i32
    return %arg0, %c0_i32, %arg1 : i32, i32, i32
  }
  func.func @transform_11(%arg0: i32, %arg1: i32) -> (i32, i32, i32) {
    %c0_i32 = arith.constant 0 : i32
    %c0_i32_0 = arith.constant 0 : i32
    return %arg0, %arg1, %c0_i32 : i32, i32, i32
  }
}

module attributes {stable_mosaic.version = 11 : i64} {
  func.func @pair_fused_kernel(%arg0: i32, %arg1: i32, %arg2: memref<1x256x32xf32, #tpu.memory_space<vmem>>, %arg3: memref<1x32xf32, #tpu.memory_space<vmem>>, %arg4: memref<1x32xf32, #tpu.memory_space<vmem>>, %arg5: memref<32x32xbf16, #tpu.memory_space<vmem>>, %arg6: memref<32x1xf32, #tpu.memory_space<vmem>>, %arg7: memref<1x16x256xbf16, #tpu.memory_space<vmem>>) attributes {dimension_semantics = [#tpu.dimension_semantics<parallel>, #tpu.dimension_semantics<parallel>], iteration_bounds = array<i64: 2, 1>, scalar_prefetch = 0 : i64, scratch_operands = 0 : i64, tpu.core_type = #tpu.core_type<tc>, window_params = [{transform_indices = @transform_0, window_bounds = array<i64: 1, 256, 32>}, {pipeline_mode = #tpu.pipeline_mode<synchronous>, transform_indices = @transform_1, window_bounds = array<i64: 1, 32>}, {pipeline_mode = #tpu.pipeline_mode<synchronous>, transform_indices = @transform_2, window_bounds = array<i64: 1, 32>}, {pipeline_mode = #tpu.pipeline_mode<synchronous>, transform_indices = @transform_3, window_bounds = array<i64: 32, 32>}, {pipeline_mode = #tpu.pipeline_mode<synchronous>, transform_indices = @transform_4, window_bounds = array<i64: 32, 1>}, {transform_indices = @transform_5, window_bounds = array<i64: 1, 16, 256>}]} {
    %c0 = arith.constant 0 : index
    %c0_0 = arith.constant 0 : index
    %c0_1 = arith.constant 0 : index
    %0 = vector.load %arg2[%c0, %c0_0, %c0_1] : memref<1x256x32xf32, #tpu.memory_space<vmem>>, vector<1x256x32xf32>
    %1 = vector.shape_cast %0 : vector<1x256x32xf32> to vector<256x32xf32>
    %c0_2 = arith.constant 0 : index
    %c0_3 = arith.constant 0 : index
    %2 = vector.load %arg3[%c0_2, %c0_3] : memref<1x32xf32, #tpu.memory_space<vmem>>, vector<1x32xf32>
    %c0_4 = arith.constant 0 : index
    %c0_5 = arith.constant 0 : index
    %3 = vector.load %arg4[%c0_4, %c0_5] : memref<1x32xf32, #tpu.memory_space<vmem>>, vector<1x32xf32>
    %cst = arith.constant dense<0.000000e+00> : vector<256xf32>
    %4 = vector.multi_reduction <add>, %1, %cst [1] : vector<256x32xf32> to vector<256xf32>
    %5 = vector.shape_cast %4 : vector<256xf32> to vector<256x1xf32>
    %cst_6 = arith.constant 3.200000e+01 : f32
    %6 = vector.broadcast %cst_6 : f32 to vector<256x1xf32>
    %7 = arith.divf %5, %6 : vector<256x1xf32>
    %8 = vector.broadcast %7 : vector<256x1xf32> to vector<256x32xf32>
    %9 = arith.subf %1, %8 : vector<256x32xf32>
    %10 = arith.mulf %9, %9 : vector<256x32xf32>
    %cst_7 = arith.constant dense<0.000000e+00> : vector<256xf32>
    %11 = vector.multi_reduction <add>, %10, %cst_7 [1] : vector<256x32xf32> to vector<256xf32>
    %12 = vector.shape_cast %11 : vector<256xf32> to vector<256x1xf32>
    %cst_8 = arith.constant 3.200000e+01 : f32
    %13 = vector.broadcast %cst_8 : f32 to vector<256x1xf32>
    %14 = arith.divf %12, %13 : vector<256x1xf32>
    %15 = vector.broadcast %7 : vector<256x1xf32> to vector<256x32xf32>
    %16 = arith.subf %1, %15 : vector<256x32xf32>
    %cst_9 = arith.constant 9.99999974E-6 : f32
    %17 = vector.broadcast %cst_9 : f32 to vector<256x1xf32>
    %18 = arith.addf %14, %17 : vector<256x1xf32>
    %19 = math.rsqrt %18 : vector<256x1xf32>
    %20 = vector.broadcast %19 : vector<256x1xf32> to vector<256x32xf32>
    %21 = arith.mulf %16, %20 : vector<256x32xf32>
    %22 = vector.broadcast %2 : vector<1x32xf32> to vector<256x32xf32>
    %23 = arith.mulf %21, %22 : vector<256x32xf32>
    %24 = vector.broadcast %3 : vector<1x32xf32> to vector<256x32xf32>
    %25 = arith.addf %23, %24 : vector<256x32xf32>
    %26 = arith.truncf %25 : vector<256x32xf32> to vector<256x32xbf16>
    %c0_10 = arith.constant 0 : index
    %c0_11 = arith.constant 0 : index
    %27 = vector.load %arg5[%c0_10, %c0_11] : memref<32x32xbf16, #tpu.memory_space<vmem>>, vector<32x32xbf16>
    %cst_12 = arith.constant dense<0.000000e+00> : vector<32x256xf32>
    %28 = tpu.matmul %27, %26, %cst_12 {dimension_numbers = #tpu.dot_dimension_numbers<[1], [1], [0], [0], [0, 0, 1, 0], [], []>} : vector<32x32xbf16>, vector<256x32xbf16>, vector<32x256xf32> -> vector<32x256xf32>
    %c0_13 = arith.constant 0 : index
    %c0_14 = arith.constant 0 : index
    %29 = vector.load %arg6[%c0_13, %c0_14] : memref<32x1xf32, #tpu.memory_space<vmem>>, vector<32x1xf32>
    %30 = vector.broadcast %29 : vector<32x1xf32> to vector<32x256xf32>
    %31 = arith.addf %28, %30 : vector<32x256xf32>
    %32 = vector.extract_strided_slice %31 {offsets = [0, 0], sizes = [16, 256], strides = [1, 1]} : vector<32x256xf32> to vector<16x256xf32>
    %33 = arith.negf %32 : vector<16x256xf32>
    %34 = math.exp %33 : vector<16x256xf32>
    %cst_15 = arith.constant 1.000000e+00 : f32
    %35 = vector.broadcast %cst_15 : f32 to vector<16x256xf32>
    %36 = arith.addf %35, %34 : vector<16x256xf32>
    %37 = arith.divf %35, %36 : vector<16x256xf32>
    %38 = vector.extract_strided_slice %31 {offsets = [16, 0], sizes = [16, 256], strides = [1, 1]} : vector<32x256xf32> to vector<16x256xf32>
    %39 = arith.mulf %37, %38 : vector<16x256xf32>
    %40 = arith.truncf %39 : vector<16x256xf32> to vector<16x256xbf16>
    %c0_16 = arith.constant 0 : index
    %c0_17 = arith.constant 0 : index
    %c0_18 = arith.constant 0 : index
    %41 = vector.load %arg7[%c0_16, %c0_17, %c0_18] : memref<1x16x256xbf16, #tpu.memory_space<vmem>>, vector<1x16x256xbf16>
    %42 = vector.shape_cast %41 : vector<1x16x256xbf16> to vector<16x256xbf16>
    %43 = vector.shape_cast %40 : vector<16x256xbf16> to vector<1x16x256xbf16>
    tpu.vector_store %arg7[%c0_16, %c0_17, %c0_18], %43 {strides = array<i32>} : memref<1x16x256xbf16, #tpu.memory_space<vmem>>, vector<1x16x256xbf16>,
    return
  }
  func.func @transform_0(%arg0: i32, %arg1: i32) -> (i32, i32, i32) {
    %c0_i32 = arith.constant 0 : i32
    %c0_i32_0 = arith.constant 0 : i32
    return %arg0, %arg1, %c0_i32 : i32, i32, i32
  }
  func.func @transform_1(%arg0: i32, %arg1: i32) -> (i32, i32) {
    %c0_i32 = arith.constant 0 : i32
    %c0_i32_0 = arith.constant 0 : i32
    %c0_i32_1 = arith.constant 0 : i32
    return %c0_i32, %c0_i32_0 : i32, i32
  }
  func.func @transform_2(%arg0: i32, %arg1: i32) -> (i32, i32) {
    %c0_i32 = arith.constant 0 : i32
    %c0_i32_0 = arith.constant 0 : i32
    %c0_i32_1 = arith.constant 0 : i32
    return %c0_i32, %c0_i32_0 : i32, i32
  }
  func.func @transform_3(%arg0: i32, %arg1: i32) -> (i32, i32) {
    %c0_i32 = arith.constant 0 : i32
    %c0_i32_0 = arith.constant 0 : i32
    %c0_i32_1 = arith.constant 0 : i32
    return %c0_i32, %c0_i32_0 : i32, i32
  }
  func.func @transform_4(%arg0: i32, %arg1: i32) -> (i32, i32) {
    %c0_i32 = arith.constant 0 : i32
    %c0_i32_0 = arith.constant 0 : i32
    %c0_i32_1 = arith.constant 0 : i32
    return %c0_i32, %c0_i32_0 : i32, i32
  }
  func.func @transform_5(%arg0: i32, %arg1: i32) -> (i32, i32, i32) {
    %c0_i32 = arith.constant 0 : i32
    %c0_i32_0 = arith.constant 0 : i32
    return %arg0, %c0_i32, %arg1 : i32, i32, i32
  }
}

module attributes {stable_mosaic.version = 11 : i64} {
  func.func @pair_fused_kernel(%arg0: i32, %arg1: i32, %arg2: memref<1x64x32xf32, #tpu.memory_space<vmem>>, %arg3: memref<1x32xf32, #tpu.memory_space<vmem>>, %arg4: memref<1x32xf32, #tpu.memory_space<vmem>>, %arg5: memref<32x32xbf16, #tpu.memory_space<vmem>>, %arg6: memref<32x1xf32, #tpu.memory_space<vmem>>, %arg7: memref<1x16x64xbf16, #tpu.memory_space<vmem>>) attributes {dimension_semantics = [#tpu.dimension_semantics<parallel>, #tpu.dimension_semantics<parallel>], iteration_bounds = array<i64: 2, 1>, scalar_prefetch = 0 : i64, scratch_operands = 0 : i64, tpu.core_type = #tpu.core_type<tc>, window_params = [{transform_indices = @transform_0, window_bounds = array<i64: 1, 64, 32>}, {pipeline_mode = #tpu.pipeline_mode<synchronous>, transform_indices = @transform_1, window_bounds = array<i64: 1, 32>}, {pipeline_mode = #tpu.pipeline_mode<synchronous>, transform_indices = @transform_2, window_bounds = array<i64: 1, 32>}, {pipeline_mode = #tpu.pipeline_mode<synchronous>, transform_indices = @transform_3, window_bounds = array<i64: 32, 32>}, {pipeline_mode = #tpu.pipeline_mode<synchronous>, transform_indices = @transform_4, window_bounds = array<i64: 32, 1>}, {transform_indices = @transform_5, window_bounds = array<i64: 1, 16, 64>}]} {
    %c0 = arith.constant 0 : index
    %c0_0 = arith.constant 0 : index
    %c0_1 = arith.constant 0 : index
    %0 = vector.load %arg2[%c0, %c0_0, %c0_1] : memref<1x64x32xf32, #tpu.memory_space<vmem>>, vector<1x64x32xf32>
    %1 = vector.shape_cast %0 : vector<1x64x32xf32> to vector<64x32xf32>
    %c0_2 = arith.constant 0 : index
    %c0_3 = arith.constant 0 : index
    %2 = vector.load %arg3[%c0_2, %c0_3] : memref<1x32xf32, #tpu.memory_space<vmem>>, vector<1x32xf32>
    %c0_4 = arith.constant 0 : index
    %c0_5 = arith.constant 0 : index
    %3 = vector.load %arg4[%c0_4, %c0_5] : memref<1x32xf32, #tpu.memory_space<vmem>>, vector<1x32xf32>
    %cst = arith.constant dense<0.000000e+00> : vector<64xf32>
    %4 = vector.multi_reduction <add>, %1, %cst [1] : vector<64x32xf32> to vector<64xf32>
    %5 = vector.shape_cast %4 : vector<64xf32> to vector<64x1xf32>
    %cst_6 = arith.constant 3.200000e+01 : f32
    %6 = vector.broadcast %cst_6 : f32 to vector<64x1xf32>
    %7 = arith.divf %5, %6 : vector<64x1xf32>
    %8 = vector.broadcast %7 : vector<64x1xf32> to vector<64x32xf32>
    %9 = arith.subf %1, %8 : vector<64x32xf32>
    %10 = arith.mulf %9, %9 : vector<64x32xf32>
    %cst_7 = arith.constant dense<0.000000e+00> : vector<64xf32>
    %11 = vector.multi_reduction <add>, %10, %cst_7 [1] : vector<64x32xf32> to vector<64xf32>
    %12 = vector.shape_cast %11 : vector<64xf32> to vector<64x1xf32>
    %cst_8 = arith.constant 3.200000e+01 : f32
    %13 = vector.broadcast %cst_8 : f32 to vector<64x1xf32>
    %14 = arith.divf %12, %13 : vector<64x1xf32>
    %15 = vector.broadcast %7 : vector<64x1xf32> to vector<64x32xf32>
    %16 = arith.subf %1, %15 : vector<64x32xf32>
    %cst_9 = arith.constant 9.99999974E-6 : f32
    %17 = vector.broadcast %cst_9 : f32 to vector<64x1xf32>
    %18 = arith.addf %14, %17 : vector<64x1xf32>
    %19 = math.rsqrt %18 : vector<64x1xf32>
    %20 = vector.broadcast %19 : vector<64x1xf32> to vector<64x32xf32>
    %21 = arith.mulf %16, %20 : vector<64x32xf32>
    %22 = vector.broadcast %2 : vector<1x32xf32> to vector<64x32xf32>
    %23 = arith.mulf %21, %22 : vector<64x32xf32>
    %24 = vector.broadcast %3 : vector<1x32xf32> to vector<64x32xf32>
    %25 = arith.addf %23, %24 : vector<64x32xf32>
    %26 = arith.truncf %25 : vector<64x32xf32> to vector<64x32xbf16>
    %c0_10 = arith.constant 0 : index
    %c0_11 = arith.constant 0 : index
    %27 = vector.load %arg5[%c0_10, %c0_11] : memref<32x32xbf16, #tpu.memory_space<vmem>>, vector<32x32xbf16>
    %cst_12 = arith.constant dense<0.000000e+00> : vector<32x64xf32>
    %28 = tpu.matmul %27, %26, %cst_12 {dimension_numbers = #tpu.dot_dimension_numbers<[1], [1], [0], [0], [0, 0, 1, 0], [], []>} : vector<32x32xbf16>, vector<64x32xbf16>, vector<32x64xf32> -> vector<32x64xf32>
    %c0_13 = arith.constant 0 : index
    %c0_14 = arith.constant 0 : index
    %29 = vector.load %arg6[%c0_13, %c0_14] : memref<32x1xf32, #tpu.memory_space<vmem>>, vector<32x1xf32>
    %30 = vector.broadcast %29 : vector<32x1xf32> to vector<32x64xf32>
    %31 = arith.addf %28, %30 : vector<32x64xf32>
    %32 = vector.extract_strided_slice %31 {offsets = [0, 0], sizes = [16, 64], strides = [1, 1]} : vector<32x64xf32> to vector<16x64xf32>
    %33 = arith.negf %32 : vector<16x64xf32>
    %34 = math.exp %33 : vector<16x64xf32>
    %cst_15 = arith.constant 1.000000e+00 : f32
    %35 = vector.broadcast %cst_15 : f32 to vector<16x64xf32>
    %36 = arith.addf %35, %34 : vector<16x64xf32>
    %37 = arith.divf %35, %36 : vector<16x64xf32>
    %38 = vector.extract_strided_slice %31 {offsets = [16, 0], sizes = [16, 64], strides = [1, 1]} : vector<32x64xf32> to vector<16x64xf32>
    %39 = arith.mulf %37, %38 : vector<16x64xf32>
    %40 = arith.truncf %39 : vector<16x64xf32> to vector<16x64xbf16>
    %c0_16 = arith.constant 0 : index
    %c0_17 = arith.constant 0 : index
    %c0_18 = arith.constant 0 : index
    %41 = vector.load %arg7[%c0_16, %c0_17, %c0_18] : memref<1x16x64xbf16, #tpu.memory_space<vmem>>, vector<1x16x64xbf16>
    %42 = vector.shape_cast %41 : vector<1x16x64xbf16> to vector<16x64xbf16>
    %43 = vector.shape_cast %40 : vector<16x64xbf16> to vector<1x16x64xbf16>
    tpu.vector_store %arg7[%c0_16, %c0_17, %c0_18], %43 {strides = array<i32>} : memref<1x16x64xbf16, #tpu.memory_space<vmem>>, vector<1x16x64xbf16>,
    return
  }
  func.func @transform_0(%arg0: i32, %arg1: i32) -> (i32, i32, i32) {
    %c0_i32 = arith.constant 0 : i32
    %c0_i32_0 = arith.constant 0 : i32
    return %arg0, %arg1, %c0_i32 : i32, i32, i32
  }
  func.func @transform_1(%arg0: i32, %arg1: i32) -> (i32, i32) {
    %c0_i32 = arith.constant 0 : i32
    %c0_i32_0 = arith.constant 0 : i32
    %c0_i32_1 = arith.constant 0 : i32
    return %c0_i32, %c0_i32_0 : i32, i32
  }
  func.func @transform_2(%arg0: i32, %arg1: i32) -> (i32, i32) {
    %c0_i32 = arith.constant 0 : i32
    %c0_i32_0 = arith.constant 0 : i32
    %c0_i32_1 = arith.constant 0 : i32
    return %c0_i32, %c0_i32_0 : i32, i32
  }
  func.func @transform_3(%arg0: i32, %arg1: i32) -> (i32, i32) {
    %c0_i32 = arith.constant 0 : i32
    %c0_i32_0 = arith.constant 0 : i32
    %c0_i32_1 = arith.constant 0 : i32
    return %c0_i32, %c0_i32_0 : i32, i32
  }
  func.func @transform_4(%arg0: i32, %arg1: i32) -> (i32, i32) {
    %c0_i32 = arith.constant 0 : i32
    %c0_i32_0 = arith.constant 0 : i32
    %c0_i32_1 = arith.constant 0 : i32
    return %c0_i32, %c0_i32_0 : i32, i32
  }
  func.func @transform_5(%arg0: i32, %arg1: i32) -> (i32, i32, i32) {
    %c0_i32 = arith.constant 0 : i32
    %c0_i32_0 = arith.constant 0 : i32
    return %arg0, %c0_i32, %arg1 : i32, i32, i32
  }
}

module attributes {stable_mosaic.version = 11 : i64} {
  func.func @triangle_kernel(%arg0: i32, %arg1: i32, %arg2: i32, %arg3: memref<1x16x16x16xbf16, #tpu.memory_space<vmem>>, %arg4: memref<1x16x16x8xbf16, #tpu.memory_space<vmem>>, %arg5: memref<1x16x16x8xbf16, #tpu.memory_space<vmem>>, %arg6: memref<1x16x8x8xbf16, #tpu.memory_space<vmem>>, %arg7: memref<1x16x16x8xf32, #tpu.memory_space<vmem>>) attributes {dimension_semantics = [#tpu.dimension_semantics<parallel>, #tpu.dimension_semantics<parallel>, #tpu.dimension_semantics<parallel>], iteration_bounds = array<i64: 2, 1, 1>, scalar_prefetch = 0 : i64, scratch_operands = 0 : i64, tpu.core_type = #tpu.core_type<tc>, window_params = [{transform_indices = @transform_0, window_bounds = array<i64: 1, 16, 16, 16>}, {transform_indices = @transform_1, window_bounds = array<i64: 1, 16, 16, 8>}, {transform_indices = @transform_2, window_bounds = array<i64: 1, 16, 16, 8>}, {transform_indices = @transform_3, window_bounds = array<i64: 1, 16, 8, 8>}, {transform_indices = @transform_4, window_bounds = array<i64: 1, 16, 16, 8>}]} {
    %c0 = arith.constant 0 : index
    %c0_0 = arith.constant 0 : index
    %c0_1 = arith.constant 0 : index
    %c0_2 = arith.constant 0 : index
    %0 = vector.load %arg3[%c0, %c0_0, %c0_1, %c0_2] : memref<1x16x16x16xbf16, #tpu.memory_space<vmem>>, vector<1x16x16x16xbf16>
    %1 = vector.shape_cast %0 : vector<1x16x16x16xbf16> to vector<16x16x16xbf16>
    %c0_3 = arith.constant 0 : index
    %c0_4 = arith.constant 0 : index
    %c0_5 = arith.constant 0 : index
    %c0_6 = arith.constant 0 : index
    %2 = vector.load %arg4[%c0_3, %c0_4, %c0_5, %c0_6] : memref<1x16x16x8xbf16, #tpu.memory_space<vmem>>, vector<1x16x16x8xbf16>
    %3 = vector.shape_cast %2 : vector<1x16x16x8xbf16> to vector<16x16x8xbf16>
    "tpu.trace_start"() <{level = 10 : i32, message = "cik,ckj->cij"}> : () -> ()
    %cst = arith.constant dense<0.000000e+00> : vector<16x16x8xf32>
    %4 = tpu.matmul %1, %3, %cst {dimension_numbers = #tpu.dot_dimension_numbers<[2], [1], [1], [2], [0, 0, 0, 1, 1, 2], [0], [0]>} : vector<16x16x16xbf16>, vector<16x16x8xbf16>, vector<16x16x8xf32> -> vector<16x16x8xf32>
    "tpu.trace_stop"() : () -> ()
    %c0_7 = arith.constant 0 : index
    %c0_8 = arith.constant 0 : index
    %c0_9 = arith.constant 0 : index
    %c0_10 = arith.constant 0 : index
    %5 = vector.load %arg5[%c0_7, %c0_8, %c0_9, %c0_10] : memref<1x16x16x8xbf16, #tpu.memory_space<vmem>>, vector<1x16x16x8xbf16>
    %6 = vector.shape_cast %5 : vector<1x16x16x8xbf16> to vector<16x16x8xbf16>
    %c0_11 = arith.constant 0 : index
    %c0_12 = arith.constant 0 : index
    %c0_13 = arith.constant 0 : index
    %c0_14 = arith.constant 0 : index
    %7 = vector.load %arg6[%c0_11, %c0_12, %c0_13, %c0_14] : memref<1x16x8x8xbf16, #tpu.memory_space<vmem>>, vector<1x16x8x8xbf16>
    %8 = vector.shape_cast %7 : vector<1x16x8x8xbf16> to vector<16x8x8xbf16>
    "tpu.trace_start"() <{level = 10 : i32, message = "cik,cjk->cij"}> : () -> ()
    %cst_15 = arith.constant dense<0.000000e+00> : vector<16x16x8xf32>
    %9 = tpu.matmul %6, %8, %cst_15 {dimension_numbers = #tpu.dot_dimension_numbers<[2], [2], [1], [1], [0, 0, 0, 1, 1, 1], [0], [0]>} : vector<16x16x8xbf16>, vector<16x8x8xbf16>, vector<16x16x8xf32> -> vector<16x16x8xf32>
    "tpu.trace_stop"() : () -> ()
    %10 = arith.addf %4, %9 : vector<16x16x8xf32>
    %c0_16 = arith.constant 0 : index
    %c0_17 = arith.constant 0 : index
    %c0_18 = arith.constant 0 : index
    %c0_19 = arith.constant 0 : index
    %11 = vector.load %arg7[%c0_16, %c0_17, %c0_18, %c0_19] : memref<1x16x16x8xf32, #tpu.memory_space<vmem>>, vector<1x16x16x8xf32>
    %12 = vector.shape_cast %11 : vector<1x16x16x8xf32> to vector<16x16x8xf32>
    %13 = vector.shape_cast %10 : vector<16x16x8xf32> to vector<1x16x16x8xf32>
    tpu.vector_store %arg7[%c0_16, %c0_17, %c0_18, %c0_19], %13 {strides = array<i32>} : memref<1x16x16x8xf32, #tpu.memory_space<vmem>>, vector<1x16x16x8xf32>,
    return
  }
  func.func @transform_0(%arg0: i32, %arg1: i32, %arg2: i32) -> (i32, i32, i32, i32) {
    %c0_i32 = arith.constant 0 : i32
    %c0_i32_0 = arith.constant 0 : i32
    return %arg0, %arg1, %arg2, %c0_i32 : i32, i32, i32, i32
  }
  func.func @transform_1(%arg0: i32, %arg1: i32, %arg2: i32) -> (i32, i32, i32, i32) {
    %c0_i32 = arith.constant 0 : i32
    %c0_i32_0 = arith.constant 0 : i32
    %c0_i32_1 = arith.constant 0 : i32
    return %arg0, %arg1, %c0_i32, %c0_i32_0 : i32, i32, i32, i32
  }
  func.func @transform_2(%arg0: i32, %arg1: i32, %arg2: i32) -> (i32, i32, i32, i32) {
    %c0_i32 = arith.constant 0 : i32
    %c0_i32_0 = arith.constant 0 : i32
    return %arg0, %arg1, %arg2, %c0_i32 : i32, i32, i32, i32
  }
  func.func @transform_3(%arg0: i32, %arg1: i32, %arg2: i32) -> (i32, i32, i32, i32) {
    %c0_i32 = arith.constant 0 : i32
    %c0_i32_0 = arith.constant 0 : i32
    %c0_i32_1 = arith.constant 0 : i32
    return %arg0, %arg1, %c0_i32, %c0_i32_0 : i32, i32, i32, i32
  }
  func.func @transform_4(%arg0: i32, %arg1: i32, %arg2: i32) -> (i32, i32, i32, i32) {
    %c0_i32 = arith.constant 0 : i32
    %c0_i32_0 = arith.constant 0 : i32
    return %arg0, %arg1, %arg2, %c0_i32 : i32, i32, i32, i32
  }
}

module attributes {stable_mosaic.version = 11 : i64} {
  func.func @output_kernel(%arg0: i32, %arg1: i32, %arg2: memref<1x16x128xf32, #tpu.memory_space<vmem>>, %arg3: memref<1x128x32xbf16, #tpu.memory_space<vmem>>, %arg4: memref<16x32xbf16, #tpu.memory_space<vmem>>, %arg5: memref<1x32xf32, #tpu.memory_space<vmem>>, %arg6: memref<1x128x32xf32, #tpu.memory_space<vmem>>) attributes {dimension_semantics = [#tpu.dimension_semantics<parallel>, #tpu.dimension_semantics<parallel>], iteration_bounds = array<i64: 2, 1>, scalar_prefetch = 0 : i64, scratch_operands = 0 : i64, tpu.core_type = #tpu.core_type<tc>, window_params = [{transform_indices = @transform_0, window_bounds = array<i64: 1, 16, 128>}, {transform_indices = @transform_1, window_bounds = array<i64: 1, 128, 32>}, {pipeline_mode = #tpu.pipeline_mode<synchronous>, transform_indices = @transform_2, window_bounds = array<i64: 16, 32>}, {pipeline_mode = #tpu.pipeline_mode<synchronous>, transform_indices = @transform_3, window_bounds = array<i64: 1, 32>}, {transform_indices = @transform_4, window_bounds = array<i64: 1, 128, 32>}]} {
    %c0 = arith.constant 0 : index
    %c0_0 = arith.constant 0 : index
    %c0_1 = arith.constant 0 : index
    %0 = vector.load %arg2[%c0, %c0_0, %c0_1] : memref<1x16x128xf32, #tpu.memory_space<vmem>>, vector<1x16x128xf32>
    %1 = vector.shape_cast %0 : vector<1x16x128xf32> to vector<16x128xf32>
    %cst = arith.constant dense<0.000000e+00> : vector<128xf32>
    %2 = vector.multi_reduction <add>, %1, %cst [0] : vector<16x128xf32> to vector<128xf32>
    %3 = vector.shape_cast %2 : vector<128xf32> to vector<1x128xf32>
    %cst_2 = arith.constant 1.600000e+01 : f32
    %4 = vector.broadcast %cst_2 : f32 to vector<1x128xf32>
    %5 = arith.divf %3, %4 : vector<1x128xf32>
    %6 = vector.broadcast %5 : vector<1x128xf32> to vector<16x128xf32>
    %7 = arith.subf %1, %6 : vector<16x128xf32>
    %8 = arith.mulf %7, %7 : vector<16x128xf32>
    %cst_3 = arith.constant dense<0.000000e+00> : vector<128xf32>
    %9 = vector.multi_reduction <add>, %8, %cst_3 [0] : vector<16x128xf32> to vector<128xf32>
    %10 = vector.shape_cast %9 : vector<128xf32> to vector<1x128xf32>
    %cst_4 = arith.constant 1.600000e+01 : f32
    %11 = vector.broadcast %cst_4 : f32 to vector<1x128xf32>
    %12 = arith.divf %10, %11 : vector<1x128xf32>
    %13 = vector.broadcast %5 : vector<1x128xf32> to vector<16x128xf32>
    %14 = arith.subf %1, %13 : vector<16x128xf32>
    %cst_5 = arith.constant 9.99999974E-6 : f32
    %15 = vector.broadcast %cst_5 : f32 to vector<1x128xf32>
    %16 = arith.addf %12, %15 : vector<1x128xf32>
    %17 = math.rsqrt %16 : vector<1x128xf32>
    %18 = vector.broadcast %17 : vector<1x128xf32> to vector<16x128xf32>
    %19 = arith.mulf %14, %18 : vector<16x128xf32>
    %20 = arith.truncf %19 : vector<16x128xf32> to vector<16x128xbf16>
    %c0_6 = arith.constant 0 : index
    %c0_7 = arith.constant 0 : index
    %21 = vector.load %arg4[%c0_6, %c0_7] : memref<16x32xbf16, #tpu.memory_space<vmem>>, vector<16x32xbf16>
    %cst_8 = arith.constant dense<0.000000e+00> : vector<128x32xf32>
    %22 = tpu.matmul %20, %21, %cst_8 {dimension_numbers = #tpu.dot_dimension_numbers<[0], [0], [1], [1], [0, 1, 1, 1], [], []>} : vector<16x128xbf16>, vector<16x32xbf16>, vector<128x32xf32> -> vector<128x32xf32>
    %c0_9 = arith.constant 0 : index
    %c0_10 = arith.constant 0 : index
    %23 = vector.load %arg5[%c0_9, %c0_10] : memref<1x32xf32, #tpu.memory_space<vmem>>, vector<1x32xf32>
    %24 = vector.broadcast %23 : vector<1x32xf32> to vector<128x32xf32>
    %25 = arith.addf %22, %24 : vector<128x32xf32>
    %c0_11 = arith.constant 0 : index
    %c0_12 = arith.constant 0 : index
    %c0_13 = arith.constant 0 : index
    %26 = vector.load %arg3[%c0_11, %c0_12, %c0_13] : memref<1x128x32xbf16, #tpu.memory_space<vmem>>, vector<1x128x32xbf16>
    %27 = vector.shape_cast %26 : vector<1x128x32xbf16> to vector<128x32xbf16>
    %28 = arith.extf %27 : vector<128x32xbf16> to vector<128x32xf32>
    %29 = arith.mulf %28, %25 : vector<128x32xf32>
    %c0_14 = arith.constant 0 : index
    %c0_15 = arith.constant 0 : index
    %c0_16 = arith.constant 0 : index
    %30 = vector.load %arg6[%c0_14, %c0_15, %c0_16] : memref<1x128x32xf32, #tpu.memory_space<vmem>>, vector<1x128x32xf32>
    %31 = vector.shape_cast %30 : vector<1x128x32xf32> to vector<128x32xf32>
    %32 = vector.shape_cast %29 : vector<128x32xf32> to vector<1x128x32xf32>
    tpu.vector_store %arg6[%c0_14, %c0_15, %c0_16], %32 {strides = array<i32>} : memref<1x128x32xf32, #tpu.memory_space<vmem>>, vector<1x128x32xf32>,
    return
  }
  func.func @transform_0(%arg0: i32, %arg1: i32) -> (i32, i32, i32) {
    %c0_i32 = arith.constant 0 : i32
    %c0_i32_0 = arith.constant 0 : i32
    return %arg0, %c0_i32, %arg1 : i32, i32, i32
  }
  func.func @transform_1(%arg0: i32, %arg1: i32) -> (i32, i32, i32) {
    %c0_i32 = arith.constant 0 : i32
    %c0_i32_0 = arith.constant 0 : i32
    return %arg0, %arg1, %c0_i32 : i32, i32, i32
  }
  func.func @transform_2(%arg0: i32, %arg1: i32) -> (i32, i32) {
    %c0_i32 = arith.constant 0 : i32
    %c0_i32_0 = arith.constant 0 : i32
    %c0_i32_1 = arith.constant 0 : i32
    return %c0_i32, %c0_i32_0 : i32, i32
  }
  func.func @transform_3(%arg0: i32, %arg1: i32) -> (i32, i32) {
    %c0_i32 = arith.constant 0 : i32
    %c0_i32_0 = arith.constant 0 : i32
    %c0_i32_1 = arith.constant 0 : i32
    return %c0_i32, %c0_i32_0 : i32, i32
  }
  func.func @transform_4(%arg0: i32, %arg1: i32) -> (i32, i32, i32) {
    %c0_i32 = arith.constant 0 : i32
    %c0_i32_0 = arith.constant 0 : i32
    return %arg0, %arg1, %c0_i32 : i32, i32, i32
  }
}

</mosaic_0001>

<bundles_post_ra>
// kernel: triangle_protein_to_compound_v2.6
= control target key start
LH: loop header
LB: loop body
LE: loop exit
PB: predicated region body
PF: predicated region fallthrough
CT: control target
= control target key end

     0   :  { %s1326_s18 = smov 0   ;;  %s1328_s19 = smov 0   ;;  %s1877_s0 = inlined_call_operand.vmem [shape: f32[2,256,32], index: 0, kind: input, shape index: {}]   ;;  %s1878_s1 = inlined_call_operand.vmem [shape: f32[1,32], index: 1, kind: input, shape index: {}]   ;;  %s1879_s2 = inlined_call_operand.vmem [shape: f32[1,32], index: 2, kind: input, shape index: {}]   ;;  %s1880_s3 = inlined_call_operand.vmem [shape: bf16[32,32], index: 3, kind: input, shape index: {}]   ;;  %s1881_s4 = inlined_call_operand.vmem [shape: f32[32,1], index: 4, kind: input, shape index: {}]   ;;  %s1882_s5 = inlined_call_operand.vmem [shape: bf16[2,16,256], index: 5, kind: output, shape index: {}]  }
   0x1   :  { %s1330_s20 = smov 0  }
   0x2 LB: > { %s27_s21 = sadd.s32 1, %s1289_s19  ;;  %p1087_p0 = scmp.ge.s32.totalorder %s1293_s20, 1  ;;  %s1293_s20 = sphi %s1330_s20, %s15_s20   ;;  %s1289_s19 = sphi %s1328_s19, %s1884_s19   ;;  %s1285_s18 = sphi %s1326_s18, %s1883_s18  }
   0x3   : > { %p29_p1 = scmp.ge.s32.totalorder %s27_s21, 2  ;;  %p208_p2 = scmp.lt.s32.totalorder %s1293_s20, 3 }
   0x5   : > { %s1886_s21 = smov (%p29_p1, %s27_s21), 0  ;;  %p209_p3 = pnand %p1087_p0, %p208_p2 }
   0x6   : > { %p245_p4 = scmp.lt.s32.totalorder (!%p209_p3), %s1285_s18, 1 }
   0x7   : > { %212 = sbr.rel (%p209_p3) target bundleno = 636 (0x27c), region = 40 }
   0xc   : > { %s1888_s18 = smov (!%p245_p4, %s1285_s18), 1  ;;  %vm299_vm0 = vcmask 261120  }
   0xd   : > { %s1106_s22 = sshll.u32 %s1888_s18, 8  ;;  %s1107_s17 = sshll.u32 %s1888_s18, 4 }
   0xe   : > { %s1350_s25 = scalar_lea.vmem %s1877_s0, %s1106_s22  ;;  %s262_s24 = scalar_lea.vmem %s1882_s5, %s1107_s17 }
   0xf   : > { %v1353_v0 = vld [vmem:[%s1350_s25 + $0x70] sm:$0xff]  ;;  %v1359_v2 = vld [vmem:[%s1350_s25 + $0x78] sm:$0xff]  ;;  %v1373_v8 = vld [vmem:[%s1350_s25 + $0x60] sm:$0xff] }
  0x10   : > { %v1356_v1 = vld [vmem:[%s1350_s25 + $0xf0] sm:$0xff]  ;;  %v342_v3 = vsel %vm299_vm0, %v1353_v0, 0.0  ;;  %v1366_v5 = vld [vmem:[%s1350_s25 + $0xf8] sm:$0xff]  ;;  %v345_v6 = vsel %vm299_vm0, %v1359_v2, 0.0  ;;  %v1376_v9 = vld [vmem:[%s1350_s25 + $0x68] sm:$0xff]  ;;  %v336_v10 = vsel %vm299_vm0, %v1373_v8, 0.0 }
  0x11   : > { %v390_v4 = vsel %vm299_vm0, %v1356_v1, 0.0  ;;  %343 = vadd.xlane.f32.xlu0 %v342_v3  ;;  %v393_v7 = vsel %vm299_vm0, %v1366_v5, 0.0  ;;  %v339_v11 = vsel %vm299_vm0, %v1376_v9, 0.0  ;;  %v1383_v12 = vld [vmem:[%s1350_s25 + $0xe0] sm:$0xff]  ;;  %v1386_v13 = vld [vmem:[%s1350_s25 + $0xe8] sm:$0xff]  ;;  %v1393_v16 = vld [vmem:[%s1350_s25 + $0x50] sm:$0xff] }
  0x12   : > { %391 = vadd.xlane.f32.xlu1 %v390_v4  ;;  %v384_v14 = vsel %vm299_vm0, %v1383_v12, 0.0  ;;  %v387_v15 = vsel %vm299_vm0, %v1386_v13, 0.0  ;;  %v1396_v17 = vld [vmem:[%s1350_s25 + $0x58] sm:$0xff]  ;;  %v330_v18 = vsel %vm299_vm0, %v1393_v16, 0.0  ;;  %v1403_v20 = vld [vmem:[%s1350_s25 + $0xd0] sm:$0xff]  ;;  %v1413_v24 = vld [vmem:[%s1350_s25 + $0x40] sm:$0xff] }
  0x13   : > { %v333_v19 = vsel %vm299_vm0, %v1396_v17, 0.0  ;;  %v1406_v21 = vld [vmem:[%s1350_s25 + $0xd8] sm:$0xff]  ;;  %v378_v22 = vsel %vm299_vm0, %v1403_v20, 0.0  ;;  %v1416_v25 = vld [vmem:[%s1350_s25 + $0x48] sm:$0xff]  ;;  %v324_v26 = vsel %vm299_vm0, %v1413_v24, 0.0  ;;  %v1423_v28 = vld [vmem:[%s1350_s25 + $0xc0] sm:$0xff] }
  0x14   : > { %v381_v23 = vsel %vm299_vm0, %v1406_v21, 0.0  ;;  %v327_v27 = vsel %vm299_vm0, %v1416_v25, 0.0  ;;  %v1426_v29 = vld [vmem:[%s1350_s25 + $0xc8] sm:$0xff]  ;;  %v372_v30 = vsel %vm299_vm0, %v1423_v28, 0.0  ;;  %v1433_v32 = vld [vmem:[%s1350_s25 + $0x30] sm:$0xff]  ;;  %v1436_v33 = vld [vmem:[%s1350_s25 + $0x38] sm:$0xff] }
  0x15   : > { %346 = vadd.xlane.f32.xlu0 %v345_v6  ;;  %v375_v31 = vsel %vm299_vm0, %v1426_v29, 0.0  ;;  %v318_v34 = vsel %vm299_vm0, %v1433_v32, 0.0  ;;  %v321_v35 = vsel %vm299_vm0, %v1436_v33, 0.0  ;;  %v1443_v36 = vld [vmem:[%s1350_s25 + $0xb0] sm:$0xff]  ;;  %v1446_v37 = vld [vmem:[%s1350_s25 + $0xb8] sm:$0xff]  ;;  %v1453_v40 = vld [vmem:[%s1350_s25 + $0x20] sm:$0xff] }
  0x16   : > { %394 = vadd.xlane.f32.xlu1 %v393_v7  ;;  %v366_v38 = vsel %vm299_vm0, %v1443_v36, 0.0  ;;  %v369_v39 = vsel %vm299_vm0, %v1446_v37, 0.0  ;;  %v1456_v41 = vld [vmem:[%s1350_s25 + $0x28] sm:$0xff]  ;;  %v312_v42 = vsel %vm299_vm0, %v1453_v40, 0.0  ;;  %v1463_v44 = vld [vmem:[%s1350_s25 + $0xa0] sm:$0xff]  ;;  %v1473_v48 = vld [vmem:[%s1350_s25 + $0x10] sm:$0xff] }
  0x17   : > { %v315_v43 = vsel %vm299_vm0, %v1456_v41, 0.0  ;;  %v1466_v45 = vld [vmem:[%s1350_s25 + $0xa8] sm:$0xff]  ;;  %v360_v46 = vsel %vm299_vm0, %v1463_v44, 0.0  ;;  %v1476_v49 = vld [vmem:[%s1350_s25 + $0x18] sm:$0xff]  ;;  %v306_v50 = vsel %vm299_vm0, %v1473_v48, 0.0  ;;  %v1483_v52 = vld [vmem:[%s1350_s25 + $0x90] sm:$0xff] }
  0x18   : > { %v363_v47 = vsel %vm299_vm0, %v1466_v45, 0.0  ;;  %v309_v51 = vsel %vm299_vm0, %v1476_v49, 0.0  ;;  %v1486_v53 = vld [vmem:[%s1350_s25 + $0x98] sm:$0xff]  ;;  %v354_v54 = vsel %vm299_vm0, %v1483_v52, 0.0  ;;  %v1493_v56 = vld [vmem:[%s1350_s25] sm:$0xff]  ;;  %v1496_v57 = vld [vmem:[%s1350_s25 + $0x8] sm:$0xff] }
  0x19   : > { %337 = vadd.xlane.f32.xlu0 %v336_v10  ;;  %v357_v55 = vsel %vm299_vm0, %v1486_v53, 0.0  ;;  %v300_v58 = vsel %vm299_vm0, %v1493_v56, 0.0  ;;  %v303_v59 = vsel %vm299_vm0, %v1496_v57, 0.0  ;;  %v1503_v60 = vld [vmem:[%s1350_s25 + $0x80] sm:$0xff]  ;;  %v1506_v61 = vld [vmem:[%s1350_s25 + $0x88] sm:$0xff] }
  0x1a   : > { %340 = vadd.xlane.f32.xlu1 %v339_v11  ;;  %v348_v62 = vsel %vm299_vm0, %v1503_v60, 0.0  ;;  %v351_v63 = vsel %vm299_vm0, %v1506_v61, 0.0 }
  0x1d   : > { %385 = vadd.xlane.f32.xlu0 %v384_v14 }
  0x1e   : > { %388 = vadd.xlane.f32.xlu1 %v387_v15 }
  0x21   : > { %331 = vadd.xlane.f32.xlu0 %v330_v18 }
  0x22   : > { %334 = vadd.xlane.f32.xlu1 %v333_v19 }
  0x25   : > { %379 = vadd.xlane.f32.xlu0 %v378_v22 }
  0x26   : > { %382 = vadd.xlane.f32.xlu1 %v381_v23 }
  0x29   : > { %325 = vadd.xlane.f32.xlu0 %v324_v26 }
  0x2a   : > { %328 = vadd.xlane.f32.xlu1 %v327_v27 }
  0x2d   : > { %373 = vadd.xlane.f32.xlu0 %v372_v30 }
  0x2e   : > { %376 = vadd.xlane.f32.xlu1 %v375_v31 }
  0x31   : > { %319 = vadd.xlane.f32.xlu0 %v318_v34 }
  0x32   : > { %322 = vadd.xlane.f32.xlu1 %v321_v35 }
  0x35   : > { %367 = vadd.xlane.f32.xlu0 %v366_v38 }
  0x36   : > { %370 = vadd.xlane.f32.xlu1 %v369_v39 }
  0x39   : > { %313 = vadd.xlane.f32.xlu0 %v312_v42 }
  0x3a   : > { %316 = vadd.xlane.f32.xlu1 %v315_v43 }
  0x3d   : > { %361 = vadd.xlane.f32.xlu0 %v360_v46 }
  0x3e   : > { %364 = vadd.xlane.f32.xlu1 %v363_v47 }
  0x41   : > { %307 = vadd.xlane.f32.xlu0 %v306_v50 }
  0x42   : > { %310 = vadd.xlane.f32.xlu1 %v309_v51 }
  0x45   : > { %355 = vadd.xlane.f32.xlu0 %v354_v54 }
  0x46   : > { %358 = vadd.xlane.f32.xlu1 %v357_v55 }
  0x49   : > { %301 = vadd.xlane.f32.xlu0 %v300_v58 }
  0x4a   : > { %304 = vadd.xlane.f32.xlu1 %v303_v59 }
  0x4d   : > { %349 = vadd.xlane.f32.xlu0 %v348_v62 }
  0x4e   : > { %352 = vadd.xlane.f32.xlu1 %v351_v63 }
  0x9a   : > { %v344_v3 = vpop.xlane.xlu0 %343 }
  0x9b   : > { %v392_v4 = vpop.xlane.xlu1 %391  ;;  %v411_v6 = vmul.f32 0.03125, %v344_v3 }
  0x9c   : > { %v427_v7 = vmul.f32 0.03125, %v392_v4 }
  0x9d   : > { %v1513_v10 = vsub.f32 %v1353_v0, %v411_v6 }
  0x9e   : > { %v1516_v11 = vsub.f32 %v1356_v1, %v427_v7  ;;  %v347_v14 = vpop.xlane.xlu0 %346 }
  0x9f   : > { %v395_v15 = vpop.xlane.xlu1 %394  ;;  %v412_v18 = vmul.f32 0.03125, %v347_v14  ;;  %v475_v22 = vmul.f32 %v1513_v10, %v1513_v10 }
  0xa0   : > { %v428_v19 = vmul.f32 0.03125, %v395_v15  ;;  %v491_v23 = vmul.f32 %v1516_v11, %v1516_v11 }
  0xa1   : > { %v1523_v26 = vsub.f32 %v1359_v2, %v412_v18  ;;  %v535_v0 = vsel %vm299_vm0, %v475_v22, 0.0 }
  0xa2   : > { %v1526_v27 = vsub.f32 %v1366_v5, %v428_v19  ;;  %v338_v1 = vpop.xlane.xlu0 %337  ;;  %536 = vadd.xlane.f32.xlu0 %v535_v0  ;;  %v583_v31 = vsel %vm299_vm0, %v491_v23, 0.0 }
  0xa3   : > { %v341_v30 = vpop.xlane.xlu1 %340  ;;  %v409_v34 = vmul.f32 0.03125, %v338_v1  ;;  %v476_v38 = vmul.f32 %v1523_v26, %v1523_v26 }
  0xa4   : > { %v410_v35 = vmul.f32 0.03125, %v341_v30  ;;  %v492_v39 = vmul.f32 %v1526_v27, %v1526_v27 }
  0xa5   : > { %v1535_v2 = vsub.f32 %v1373_v8, %v409_v34  ;;  %v538_v42 = vsel %vm299_vm0, %v476_v38, 0.0 }
  0xa6   : > { %v1538_v5 = vsub.f32 %v1376_v9, %v410_v35  ;;  %v386_v43 = vpop.xlane.xlu0 %385  ;;  %539 = vadd.xlane.f32.xlu1 %v538_v42  ;;  %584 = vadd.xlane.f32.xlu0 %v583_v31  ;;  %v586_v47 = vsel %vm299_vm0, %v492_v39, 0.0 }
  0xa7   : > { %v389_v46 = vpop.xlane.xlu1 %388  ;;  %v425_v50 = vmul.f32 0.03125, %v386_v43  ;;  %v473_v54 = vmul.f32 %v1535_v2, %v1535_v2 }
  0xa8   : > { %v426_v51 = vmul.f32 0.03125, %v389_v46  ;;  %v474_v8 = vmul.f32 %v1538_v5, %v1538_v5 }
  0xa9   : > { %v1547_v55 = vsub.f32 %v1383_v12, %v425_v50  ;;  %v529_v58 = vsel %vm299_vm0, %v473_v54, 0.0 }
  0xaa   : > { %v1550_v9 = vsub.f32 %v1386_v13, %v426_v51  ;;  %v332_v59 = vpop.xlane.xlu0 %331  ;;  %587 = vadd.xlane.f32.xlu1 %v586_v47  ;;  %530 = vadd.xlane.f32.xlu0 %v529_v58  ;;  %v532_v63 = vsel %vm299_vm0, %v474_v8, 0.0 }
  0xab   : > { %v335_v62 = vpop.xlane.xlu1 %334  ;;  %v407_v3 = vmul.f32 0.03125, %v332_v59  ;;  %v489_v6 = vmul.f32 %v1547_v55, %v1547_v55 }
  0xac   : > { %v408_v4 = vmul.f32 0.03125, %v335_v62  ;;  %v490_v12 = vmul.f32 %v1550_v9, %v1550_v9 }
  0xad   : > { %v1559_v7 = vsub.f32 %v1393_v16, %v407_v3  ;;  %v577_v14 = vsel %vm299_vm0, %v489_v6, 0.0 }
  0xae   : > { %v1562_v13 = vsub.f32 %v1396_v17, %v408_v4  ;;  %v380_v15 = vpop.xlane.xlu0 %379  ;;  %533 = vadd.xlane.f32.xlu1 %v532_v63  ;;  %578 = vadd.xlane.f32.xlu0 %v577_v14  ;;  %v580_v19 = vsel %vm299_vm0, %v490_v12, 0.0 }
  0xaf   : > { %v383_v18 = vpop.xlane.xlu1 %382  ;;  %v423_v22 = vmul.f32 0.03125, %v380_v15  ;;  %v471_v0 = vmul.f32 %v1559_v7, %v1559_v7 }
  0xb0   : > { %v424_v23 = vmul.f32 0.03125, %v383_v18  ;;  %v472_v16 = vmul.f32 %v1562_v13, %v1562_v13 }
  0xb1   : > { %v1571_v1 = vsub.f32 %v1403_v20, %v423_v22  ;;  %v523_v30 = vsel %vm299_vm0, %v471_v0, 0.0 }
  0xb2   : > { %v1574_v17 = vsub.f32 %v1406_v21, %v424_v23  ;;  %v326_v31 = vpop.xlane.xlu0 %325  ;;  %581 = vadd.xlane.f32.xlu1 %v580_v19  ;;  %524 = vadd.xlane.f32.xlu0 %v523_v30  ;;  %v526_v35 = vsel %vm299_vm0, %v472_v16, 0.0 }
  0xb3   : > { %v329_v34 = vpop.xlane.xlu1 %328  ;;  %v405_v38 = vmul.f32 0.03125, %v326_v31  ;;  %v487_v42 = vmul.f32 %v1571_v1, %v1571_v1 }
  0xb4   : > { %v406_v39 = vmul.f32 0.03125, %v329_v34  ;;  %v488_v20 = vmul.f32 %v1574_v17, %v1574_v17 }
  0xb5   : > { %v1583_v43 = vsub.f32 %v1413_v24, %v405_v38  ;;  %v571_v46 = vsel %vm299_vm0, %v487_v42, 0.0 }
  0xb6   : > { %v1586_v21 = vsub.f32 %v1416_v25, %v406_v39  ;;  %v374_v47 = vpop.xlane.xlu0 %373  ;;  %527 = vadd.xlane.f32.xlu1 %v526_v35  ;;  %572 = vadd.xlane.f32.xlu0 %v571_v46  ;;  %v574_v51 = vsel %vm299_vm0, %v488_v20, 0.0 }
  0xb7   : > { %v377_v50 = vpop.xlane.xlu1 %376  ;;  %v421_v54 = vmul.f32 0.03125, %v374_v47  ;;  %v469_v58 = vmul.f32 %v1583_v43, %v1583_v43 }
  0xb8   : > { %v422_v8 = vmul.f32 0.03125, %v377_v50  ;;  %v470_v24 = vmul.f32 %v1586_v21, %v1586_v21 }
  0xb9   : > { %v1595_v59 = vsub.f32 %v1423_v28, %v421_v54  ;;  %v517_v62 = vsel %vm299_vm0, %v469_v58, 0.0 }
  0xba   : > { %v1598_v25 = vsub.f32 %v1426_v29, %v422_v8  ;;  %v320_v63 = vpop.xlane.xlu0 %319  ;;  %575 = vadd.xlane.f32.xlu1 %v574_v51  ;;  %518 = vadd.xlane.f32.xlu0 %v517_v62  ;;  %v520_v4 = vsel %vm299_vm0, %v470_v24, 0.0 }
  0xbb   : > { %v323_v3 = vpop.xlane.xlu1 %322  ;;  %v403_v6 = vmul.f32 0.03125, %v320_v63  ;;  %v485_v14 = vmul.f32 %v1595_v59, %v1595_v59 }
  0xbc   : > { %v404_v12 = vmul.f32 0.03125, %v323_v3  ;;  %v486_v28 = vmul.f32 %v1598_v25, %v1598_v25 }
  0xbd   : > { %v1607_v15 = vsub.f32 %v1433_v32, %v403_v6  ;;  %v565_v18 = vsel %vm299_vm0, %v485_v14, 0.0 }
  0xbe   : > { %v1610_v29 = vsub.f32 %v1436_v33, %v404_v12  ;;  %v368_v19 = vpop.xlane.xlu0 %367  ;;  %521 = vadd.xlane.f32.xlu1 %v520_v4  ;;  %566 = vadd.xlane.f32.xlu0 %v565_v18  ;;  %v568_v23 = vsel %vm299_vm0, %v486_v28, 0.0 }
  0xbf   : > { %v371_v22 = vpop.xlane.xlu1 %370  ;;  %v419_v0 = vmul.f32 0.03125, %v368_v19  ;;  %v467_v30 = vmul.f32 %v1607_v15, %v1607_v15 }
  0xc0   : > { %v420_v16 = vmul.f32 0.03125, %v371_v22  ;;  %v468_v32 = vmul.f32 %v1610_v29, %v1610_v29 }
  0xc1   : > { %v1619_v31 = vsub.f32 %v1443_v36, %v419_v0  ;;  %v511_v34 = vsel %vm299_vm0, %v467_v30, 0.0 }
  0xc2   : > { %v1622_v33 = vsub.f32 %v1446_v37, %v420_v16  ;;  %v314_v35 = vpop.xlane.xlu0 %313  ;;  %569 = vadd.xlane.f32.xlu1 %v568_v23  ;;  %512 = vadd.xlane.f32.xlu0 %v511_v34  ;;  %v514_v39 = vsel %vm299_vm0, %v468_v32, 0.0 }
  0xc3   : > { %v317_v38 = vpop.xlane.xlu1 %316  ;;  %v401_v42 = vmul.f32 0.03125, %v314_v35  ;;  %v483_v46 = vmul.f32 %v1619_v31, %v1619_v31 }
  0xc4   : > { %v402_v20 = vmul.f32 0.03125, %v317_v38  ;;  %v484_v36 = vmul.f32 %v1622_v33, %v1622_v33 }
  0xc5   : > { %v1631_v47 = vsub.f32 %v1453_v40, %v401_v42  ;;  %v559_v50 = vsel %vm299_vm0, %v483_v46, 0.0 }
  0xc6   : > { %v1634_v37 = vsub.f32 %v1456_v41, %v402_v20  ;;  %v362_v51 = vpop.xlane.xlu0 %361  ;;  %515 = vadd.xlane.f32.xlu1 %v514_v39  ;;  %560 = vadd.xlane.f32.xlu0 %v559_v50  ;;  %v562_v8 = vsel %vm299_vm0, %v484_v36, 0.0 }
  0xc7   : > { %v365_v54 = vpop.xlane.xlu1 %364  ;;  %v417_v58 = vmul.f32 0.03125, %v362_v51  ;;  %v465_v62 = vmul.f32 %v1631_v47, %v1631_v47 }
  0xc8   : > { %v418_v24 = vmul.f32 0.03125, %v365_v54  ;;  %v466_v40 = vmul.f32 %v1634_v37, %v1634_v37 }
  0xc9   : > { %v1643_v63 = vsub.f32 %v1463_v44, %v417_v58  ;;  %v505_v3 = vsel %vm299_vm0, %v465_v62, 0.0 }
  0xca   : > { %v1646_v41 = vsub.f32 %v1466_v45, %v418_v24  ;;  %v308_v4 = vpop.xlane.xlu0 %307  ;;  %563 = vadd.xlane.f32.xlu1 %v562_v8  ;;  %506 = vadd.xlane.f32.xlu0 %v505_v3  ;;  %v508_v12 = vsel %vm299_vm0, %v466_v40, 0.0 }
  0xcb   : > { %v311_v6 = vpop.xlane.xlu1 %310  ;;  %v399_v14 = vmul.f32 0.03125, %v308_v4  ;;  %v481_v18 = vmul.f32 %v1643_v63, %v1643_v63 }
  0xcc   : > { %v400_v28 = vmul.f32 0.03125, %v311_v6  ;;  %v482_v44 = vmul.f32 %v1646_v41, %v1646_v41 }
  0xcd   : > { %v1655_v19 = vsub.f32 %v1473_v48, %v399_v14  ;;  %v553_v22 = vsel %vm299_vm0, %v481_v18, 0.0 }
  0xce   : > { %v1658_v45 = vsub.f32 %v1476_v49, %v400_v28  ;;  %v356_v23 = vpop.xlane.xlu0 %355  ;;  %509 = vadd.xlane.f32.xlu1 %v508_v12  ;;  %554 = vadd.xlane.f32.xlu0 %v553_v22  ;;  %v556_v16 = vsel %vm299_vm0, %v482_v44, 0.0  ;;  %v1712_v44 = vld [vmem:[%s1880_s3 + $0x8] sm:$0xff]  }
  0xcf   : > { %v359_v0 = vpop.xlane.xlu1 %358  ;;  %v415_v30 = vmul.f32 0.03125, %v356_v23  ;;  %v463_v34 = vmul.f32 %v1655_v19, %v1655_v19  ;;  %1128 = vmatprep.mubr.msk.bf16.mxu1 %vm299_vm0, %v1712_v44  ;;  %v814_v22 = vld [vmem:[%s1881_s4 + $0x8] sm:$0xff]  ;;  %v813_v23 = vld [vmem:[%s1881_s4] sm:$0xff] }
  0xd0   : > { %v416_v32 = vmul.f32 0.03125, %v359_v0  ;;  %v464_v48 = vmul.f32 %v1658_v45, %v1658_v45  ;;  %v1295_v0 = vmov 0  }
  0xd1   : > { %v1667_v35 = vsub.f32 %v1483_v52, %v415_v30  ;;  %v499_v38 = vsel %vm299_vm0, %v463_v34, 0.0  ;;  %1188 = vset.pattern.permute.xlu1 %v1295_v0  ;;  %1187 = vset.pattern.permute.xlu0 %v1295_v0  ;;  %v816_v30 = vld [vmem:[%s1881_s4 + $0x18] sm:$0xff] }
  0xd2   : > { %v1670_v49 = vsub.f32 %v1486_v53, %v416_v32  ;;  %557 = vadd.xlane.f32.xlu1 %v556_v16  ;;  %500 = vadd.xlane.f32.xlu0 %v499_v38  ;;  %v302_v39 = vpop.xlane.xlu0 %301  ;;  %v502_v42 = vsel %vm299_vm0, %v464_v48, 0.0  ;;  %v815_v16 = vld [vmem:[%s1881_s4 + $0x10] sm:$0xff] }
  0xd3   : > { %v305_v20 = vpop.xlane.xlu1 %304  ;;  %v397_v46 = vmul.f32 0.03125, %v302_v39  ;;  %v479_v50 = vmul.f32 %v1667_v35, %v1667_v35 }
  0xd4   : > { %v398_v36 = vmul.f32 0.03125, %v305_v20  ;;  %v480_v52 = vmul.f32 %v1670_v49, %v1670_v49 }
  0xd5   : > { %v1679_v51 = vsub.f32 %v1493_v56, %v397_v46  ;;  %v547_v54 = vsel %vm299_vm0, %v479_v50, 0.0 }
  0xd6   : > { %v1682_v53 = vsub.f32 %v1496_v57, %v398_v36  ;;  %503 = vadd.xlane.f32.xlu1 %v502_v42  ;;  %548 = vadd.xlane.f32.xlu0 %v547_v54  ;;  %v350_v8 = vpop.xlane.xlu0 %349  ;;  %v550_v58 = vsel %vm299_vm0, %v480_v52, 0.0 }
  0xd7   : > { %v353_v24 = vpop.xlane.xlu1 %352  ;;  %v413_v62 = vmul.f32 0.03125, %v350_v8  ;;  %v461_v3 = vmul.f32 %v1679_v51, %v1679_v51 }
  0xd8   : > { %v414_v40 = vmul.f32 0.03125, %v353_v24  ;;  %v462_v56 = vmul.f32 %v1682_v53, %v1682_v53 }
  0xd9   : > { %v1691_v4 = vsub.f32 %v1503_v60, %v413_v62  ;;  %v493_v6 = vsel %vm299_vm0, %v461_v3, 0.0 }
  0xda   : > { %v1694_v57 = vsub.f32 %v1506_v61, %v414_v40  ;;  %551 = vadd.xlane.f32.xlu1 %v550_v58  ;;  %494 = vadd.xlane.f32.xlu0 %v493_v6  ;;  %v496_v12 = vsel %vm299_vm0, %v462_v56, 0.0  ;;  %v1707_v61 = vld [vmem:[%s1880_s3] sm:$0xff]  }
  0xdb   : > { %v477_v14 = vmul.f32 %v1691_v4, %v1691_v4  ;;  %1126 = vmatprep.mubr.msk.bf16.mxu0 %vm299_vm0, %v1707_v61 }
  0xdc   : > { %v478_v28 = vmul.f32 %v1694_v57, %v1694_v57 }
  0xdd   : > { %v541_v18 = vsel %vm299_vm0, %v477_v14, 0.0 }
  0xde   : > { %497 = vadd.xlane.f32.xlu1 %v496_v12  ;;  %542 = vadd.xlane.f32.xlu0 %v541_v18  ;;  %v544_v60 = vsel %vm299_vm0, %v478_v28, 0.0 }
  0xe2   : > { %545 = vadd.xlane.f32.xlu1 %v544_v60 }
  0xf3   : > { %824 = vperm.xlu1 %1188, %v814_v22  }
  0xf4   : > { %819 = vperm.xlu0 %1187, %v813_v23  }
  0xf7   : > { %829 = vperm.xlu1 %1188, %v815_v16  }
  0xfb   : > { %834 = vperm.xlu1 %1188, %v816_v30  }
 0x12b   : > { %v537_v32 = vpop.xlane.xlu0 %536 }
 0x12c   : > { %v603_v34 = vmul.f32 0.03125, %v537_v32 }
 0x12e   : > { %v635_v48 = vadd.f32 1e-05, %v603_v34 }
 0x12f   : > { %v540_v38 = vpop.xlane.xlu1 %539  ;;  %v585_v39 = vpop.xlane.xlu0 %584 }
 0x130   : > { %1191 = vrsqrt.f32 %v635_v48  ;;  %v604_v42 = vmul.f32 0.03125, %v540_v38  ;;  %v619_v20 = vmul.f32 0.03125, %v585_v39  ;;  %v1734_v38 = vld [vmem:[%s1878_s1] ss:$0 sm:$0xff] }
 0x132   : > { %v636_v46 = vadd.f32 1e-05, %v604_v42  ;;  %v651_v36 = vadd.f32 1e-05, %v619_v20 }
 0x133   : > { %v588_v50 = vpop.xlane.xlu1 %587  ;;  %v531_v52 = vpop.xlane.xlu0 %530 }
 0x134   : > { %1193 = vrsqrt.f32 %v636_v46  ;;  %v620_v54 = vmul.f32 0.03125, %v588_v50  ;;  %v601_v8 = vmul.f32 0.03125, %v531_v52 }
 0x135   : > { %1195 = vrsqrt.f32 %v651_v36 }
 0x136   : > { %v652_v58 = vadd.f32 1e-05, %v620_v54  ;;  %v633_v24 = vadd.f32 1e-05, %v601_v8 }
 0x137   : > { %v534_v62 = vpop.xlane.xlu1 %533  ;;  %v579_v40 = vpop.xlane.xlu0 %578 }
 0x138   : > { %1197 = vrsqrt.f32 %v652_v58  ;;  %v602_v3 = vmul.f32 0.03125, %v534_v62  ;;  %v617_v56 = vmul.f32 0.03125, %v579_v40 }
 0x139   : > { %1199 = vrsqrt.f32 %v633_v24  ;;  %v1742_v24 = vld [vmem:[%s1879_s2] ss:$0 sm:$0xff] }
 0x13a   : > { %v634_v6 = vadd.f32 1e-05, %v602_v3  ;;  %v649_v12 = vadd.f32 1e-05, %v617_v56 }
 0x13b   : > { %v582_v14 = vpop.xlane.xlu1 %581  ;;  %v525_v28 = vpop.xlane.xlu0 %524 }
 0x13c   : > { %1201 = vrsqrt.f32 %v634_v6  ;;  %v618_v18 = vmul.f32 0.03125, %v582_v14  ;;  %v599_v60 = vmul.f32 0.03125, %v525_v28 }
 0x13d   : > { %v1192_v22 = vpop.eup %1191  ;;  %1203 = vrsqrt.f32 %v649_v12 }
 0x13e   : > { %v650_v23 = vadd.f32 1e-05, %v618_v18  ;;  %v631_v0 = vadd.f32 1e-05, %v599_v60  ;;  %v699_v32 = vmul.f32 %v1192_v22, %v1513_v10 }
 0x13f   : > { %v528_v16 = vpop.xlane.xlu1 %527  ;;  %v573_v30 = vpop.xlane.xlu0 %572 }
 0x140   : > { %1205 = vrsqrt.f32 %v650_v23  ;;  %v600_v34 = vmul.f32 0.03125, %v528_v16  ;;  %v615_v48 = vmul.f32 0.03125, %v573_v30  ;;  %v737_v10 = vmul.f32 %v1734_v38, %v699_v32 }
 0x141   : > { %v1194_v39 = vpop.eup %1193  ;;  %1207 = vrsqrt.f32 %v631_v0 }
 0x142   : > { %v1196_v42 = vpop.eup %1195  ;;  %v632_v20 = vadd.f32 1e-05, %v600_v34  ;;  %v647_v46 = vadd.f32 1e-05, %v615_v48  ;;  %v700_v36 = vmul.f32 %v1194_v39, %v1523_v26  ;;  %v775_v18 = vadd.f32 %v1742_v24, %v737_v10 }
 0x143   : > { %v576_v50 = vpop.xlane.xlu1 %575  ;;  %v519_v52 = vpop.xlane.xlu0 %518  ;;  %v715_v54 = vmul.f32 %v1196_v42, %v1516_v11 }
 0x144   : > { %1209 = vrsqrt.f32 %v632_v20  ;;  %v616_v8 = vmul.f32 0.03125, %v576_v50  ;;  %v597_v58 = vmul.f32 0.03125, %v519_v52  ;;  %v738_v62 = vmul.f32 %v1734_v38, %v700_v36 }
 0x145   : > { %v1198_v40 = vpop.eup %1197  ;;  %1211 = vrsqrt.f32 %v647_v46  ;;  %v753_v26 = vmul.f32 %v1734_v38, %v715_v54 }
 0x146   : > { %v1200_v3 = vpop.eup %1199  ;;  %v648_v56 = vadd.f32 1e-05, %v616_v8  ;;  %v629_v6 = vadd.f32 1e-05, %v597_v58  ;;  %v716_v11 = vmul.f32 %v1198_v40, %v1526_v27  ;;  %v776_v12 = vadd.f32 %v1742_v24, %v738_v62 }
 0x147   : > { %v522_v14 = vpop.xlane.xlu1 %521  ;;  %v567_v28 = vpop.xlane.xlu0 %566  ;;  %v697_v60 = vmul.f32 %v1200_v3, %v1535_v2  ;;  %v791_v30 = vadd.f32 %v1742_v24, %v753_v26 }
 0x148   : > { %1213 = vrsqrt.f32 %v648_v56  ;;  %v598_v22 = vmul.f32 0.03125, %v522_v14  ;;  %v613_v23 = vmul.f32 0.03125, %v567_v28  ;;  %v754_v0 = vmul.f32 %v1734_v38, %v716_v11 }
 0x149   : > { %v1202_v16 = vpop.eup %1201  ;;  %1215 = vrsqrt.f32 %v629_v6  ;;  %v800_v32 = vpack.c.bf16 %v776_v12, %v775_v18  ;;  %v735_v36 = vmul.f32 %v1734_v38, %v697_v60 }
 0x14a   : > { %v1204_v34 = vpop.eup %1203  ;;  %v630_v27 = vadd.f32 1e-05, %v598_v22  ;;  %v645_v48 = vadd.f32 1e-05, %v613_v23  ;;  %v792_v39 = vadd.f32 %v1742_v24, %v754_v0  ;;  %v698_v42 = vmul.f32 %v1202_v16, %v1538_v5 }
 0x14b   : > { %v570_v20 = vpop.xlane.xlu1 %569  ;;  %v513_v46 = vpop.xlane.xlu0 %512  ;;  %v713_v2 = vmul.f32 %v1204_v34, %v1547_v55  ;;  %v875_v5 = vsel %vm299_vm0, %v800_v32, 0  ;;  %v773_v6 = vadd.f32 %v1742_v24, %v735_v36 }
 0x14c   : > { %1217 = vrsqrt.f32 %v630_v27  ;;  %v614_v50 = vmul.f32 0.03125, %v570_v20  ;;  %v595_v52 = vmul.f32 0.03125, %v513_v46  ;;  %v808_v54 = vpack.c.bf16 %v792_v39, %v791_v30 }
 0x14d   : > { %v1206_v10 = vpop.eup %1205  ;;  %1219 = vrsqrt.f32 %v645_v48  ;;  %v751_v8 = vmul.f32 %v1734_v38, %v713_v2  ;;  %v736_v58 = vmul.f32 %v1734_v38, %v698_v42 }
 0x14e   : > { %v1208_v62 = vpop.eup %1207  ;;  %v646_v40 = vadd.f32 1e-05, %v614_v50  ;;  %v627_v26 = vadd.f32 1e-05, %v595_v52  ;;  %1146 = vmatprep.subr.msk.bf16.mxu0 %vm299_vm0, %v808_v54  ;;  %1147 = vmatprep.subr.msk.bf16.mxu1 %vm299_vm0, %v808_v54  ;;  %v714_v55 = vmul.f32 %v1206_v10, %v1550_v9 }
 0x14f   : > { %v516_v3 = vpop.xlane.xlu1 %515  ;;  %1111 = vmatpush3.bf16.xpose.msra.mxu0 %v875_v5  ;;  %1138 = vmatpush3.bf16.xpose.msra.mxu1 %v875_v5  ;;  %v561_v56 = vpop.xlane.xlu0 %560  ;;  %v774_v11 = vadd.f32 %v1742_v24, %v736_v58  ;;  %v695_v12 = vmul.f32 %v1208_v62, %v1559_v7  ;;  %v789_v22 = vadd.f32 %v1742_v24, %v751_v8 }
 0x150   : > { %1221 = vrsqrt.f32 %v646_v40  ;;  %v596_v14 = vmul.f32 0.03125, %v516_v3  ;;  %v611_v28 = vmul.f32 0.03125, %v561_v56  ;;  %v752_v18 = vmul.f32 %v1734_v38, %v714_v55 }
 0x151   : > { %v1210_v60 = vpop.eup %1209  ;;  %1223 = vrsqrt.f32 %v627_v26  ;;  %v799_v9 = vpack.c.bf16 %v774_v11, %v773_v6  ;;  %v733_v48 = vmul.f32 %v1734_v38, %v695_v12 }
 0x152   : > { %v1212_v23 = vpop.eup %1211  ;;  %v628_v0 = vadd.f32 1e-05, %v596_v14  ;;  %v643_v16 = vadd.f32 1e-05, %v611_v28  ;;  %v790_v30 = vadd.f32 %v1742_v24, %v752_v18  ;;  %v696_v32 = vmul.f32 %v1210_v60, %v1562_v13 }
 0x153   : > { %v564_v34 = vpop.xlane.xlu1 %563  ;;  %v507_v27 = vpop.xlane.xlu0 %506  ;;  %v711_v7 = vmul.f32 %v1212_v23, %v1571_v1  ;;  %v872_v13 = vsel %vm299_vm0, %v799_v9, 0  ;;  %v771_v58 = vadd.f32 %v1742_v24, %v733_v48 }
 0x154   : > { %1225 = vrsqrt.f32 %v628_v0  ;;  %v612_v39 = vmul.f32 0.03125, %v564_v34  ;;  %v593_v42 = vmul.f32 0.03125, %v507_v27  ;;  %v807_v20 = vpack.c.bf16 %v790_v30, %v789_v22 }
 0x155   : > { %v1214_v46 = vpop.eup %1213  ;;  %1227 = vrsqrt.f32 %v643_v16  ;;  %v749_v2 = vmul.f32 %v1734_v38, %v711_v7  ;;  %v734_v36 = vmul.f32 %v1734_v38, %v696_v32 }
 0x156   : > { %v1216_v50 = vpop.eup %1215  ;;  %v644_v52 = vadd.f32 1e-05, %v612_v39  ;;  %v625_v54 = vadd.f32 1e-05, %v593_v42  ;;  %1148 = vmatprep.subr.msk.bf16.mxu0 %vm299_vm0, %v807_v20  ;;  %1149 = vmatprep.subr.msk.bf16.mxu1 %vm299_vm0, %v807_v20  ;;  %v712_v1 = vmul.f32 %v1214_v46, %v1574_v17 }
 0x157   : > { %v510_v10 = vpop.xlane.xlu1 %509  ;;  %1113 = vmatpush3.bf16.xpose.msra.mxu0 %v872_v13  ;;  %1139 = vmatpush3.bf16.xpose.msra.mxu1 %v872_v13  ;;  %v555_v8 = vpop.xlane.xlu0 %554  ;;  %v772_v62 = vadd.f32 %v1742_v24, %v734_v36  ;;  %v693_v40 = vmul.f32 %v1216_v50, %v1583_v43  ;;  %v787_v56 = vadd.f32 %v1742_v24, %v749_v2 }
 0x158   : > { %1229 = vrsqrt.f32 %v644_v52  ;;  %v594_v26 = vmul.f32 0.03125, %v510_v10  ;;  %v609_v5 = vmul.f32 0.03125, %v555_v8  ;;  %v750_v55 = vmul.f32 %v1734_v38, %v712_v1 }
 0x159   : > { %v1218_v3 = vpop.eup %1217  ;;  %1231 = vrsqrt.f32 %v625_v54  ;;  %v798_v17 = vpack.c.bf16 %v772_v62, %v771_v58  ;;  %v731_v22 = vmul.f32 %v1734_v38, %v693_v40 }
 0x15a   : > { %v1220_v6 = vpop.eup %1219  ;;  %v626_v11 = vadd.f32 1e-05, %v594_v26  ;;  %v641_v12 = vadd.f32 1e-05, %v609_v5  ;;  %v788_v14 = vadd.f32 %v1742_v24, %v750_v55  ;;  %v694_v28 = vmul.f32 %v1218_v3, %v1586_v21 }
 0x15b   : > { %v558_v18 = vpop.xlane.xlu1 %557  ;;  %v501_v60 = vpop.xlane.xlu0 %500  ;;  %v709_v43 = vmul.f32 %v1220_v6, %v1595_v59  ;;  %v869_v21 = vsel %vm299_vm0, %v798_v17, 0  ;;  %v769_v42 = vadd.f32 %v1742_v24, %v731_v22 }
 0x15c   : > { %1233 = vrsqrt.f32 %v626_v11  ;;  %v610_v9 = vmul.f32 0.03125, %v558_v18  ;;  %v591_v23 = vmul.f32 0.03125, %v501_v60  ;;  %v806_v0 = vpack.c.bf16 %v788_v14, %v787_v56 }
 0x15d   : > { %v1222_v16 = vpop.eup %1221  ;;  %1235 = vrsqrt.f32 %v641_v12  ;;  %v747_v30 = vmul.f32 %v1734_v38, %v709_v43  ;;  %v732_v32 = vmul.f32 %v1734_v38, %v694_v28 }
 0x15e   : > { %v1224_v34 = vpop.eup %1223  ;;  %v642_v27 = vadd.f32 1e-05, %v610_v9  ;;  %v623_v7 = vadd.f32 1e-05, %v591_v23  ;;  %1150 = vmatprep.subr.msk.bf16.mxu0 %vm299_vm0, %v806_v0  ;;  %1151 = vmatprep.subr.msk.bf16.mxu1 %vm299_vm0, %v806_v0  ;;  %v710_v59 = vmul.f32 %v1222_v16, %v1598_v25 }
 0x15f   : > { %v504_v48 = vpop.xlane.xlu1 %503  ;;  %1115 = vmatpush3.bf16.xpose.msra.mxu0 %v869_v21  ;;  %1140 = vmatpush3.bf16.xpose.msra.mxu1 %v869_v21  ;;  %v549_v39 = vpop.xlane.xlu0 %548  ;;  %v770_v20 = vadd.f32 %v1742_v24, %v732_v32  ;;  %v691_v46 = vmul.f32 %v1224_v34, %v1607_v15  ;;  %v785_v54 = vadd.f32 %v1742_v24, %v747_v30 }
 0x160   : > { %1237 = vrsqrt.f32 %v642_v27  ;;  %v592_v2 = vmul.f32 0.03125, %v504_v48  ;;  %v607_v36 = vmul.f32 0.03125, %v549_v39  ;;  %v748_v50 = vmul.f32 %v1734_v38, %v710_v59 }
 0x161   : > { %v1226_v52 = vpop.eup %1225  ;;  %1239 = vrsqrt.f32 %v623_v7  ;;  %v797_v25 = vpack.c.bf16 %v770_v20, %v769_v42  ;;  %v729_v26 = vmul.f32 %v1734_v38, %v691_v46 }
 0x162   : > { %v1228_v13 = vpop.eup %1227  ;;  %v624_v1 = vadd.f32 1e-05, %v592_v2  ;;  %v639_v10 = vadd.f32 1e-05, %v607_v36  ;;  %v786_v8 = vadd.f32 %v1742_v24, %v748_v50  ;;  %v692_v58 = vmul.f32 %v1226_v52, %v1610_v29 }
 0x163   : > { %v552_v62 = vpop.xlane.xlu1 %551  ;;  %v495_v40 = vpop.xlane.xlu0 %494  ;;  %v707_v15 = vmul.f32 %v1228_v13, %v1619_v31  ;;  %v866_v29 = vsel %vm299_vm0, %v797_v25, 0  ;;  %v767_v60 = vadd.f32 %v1742_v24, %v729_v26 }
 0x164   : > { %1241 = vrsqrt.f32 %v624_v1  ;;  %v608_v5 = vmul.f32 0.03125, %v552_v62  ;;  %v589_v55 = vmul.f32 0.03125, %v495_v40  ;;  %v805_v3 = vpack.c.bf16 %v786_v8, %v785_v54 }
 0x165   : > { %v1230_v56 = vpop.eup %1229  ;;  %1243 = vrsqrt.f32 %v639_v10  ;;  %v745_v17 = vmul.f32 %v1734_v38, %v707_v15  ;;  %v730_v6 = vmul.f32 %v1734_v38, %v692_v58 }
 0x166   : > { %v1232_v11 = vpop.eup %1231  ;;  %v640_v12 = vadd.f32 1e-05, %v608_v5  ;;  %v621_v14 = vadd.f32 1e-05, %v589_v55  ;;  %1152 = vmatprep.subr.msk.bf16.mxu0 %vm299_vm0, %v805_v3  ;;  %1153 = vmatprep.subr.msk.bf16.mxu1 %vm299_vm0, %v805_v3  ;;  %v708_v31 = vmul.f32 %v1230_v56, %v1622_v33 }
 0x167   : > { %v498_v28 = vpop.xlane.xlu1 %497  ;;  %1117 = vmatpush3.bf16.xpose.msra.mxu0 %v866_v29  ;;  %1141 = vmatpush3.bf16.xpose.msra.mxu1 %v866_v29  ;;  %v543_v18 = vpop.xlane.xlu0 %542  ;;  %v768_v43 = vadd.f32 %v1742_v24, %v730_v6  ;;  %v689_v22 = vmul.f32 %v1232_v11, %v1631_v47  ;;  %v783_v30 = vadd.f32 %v1742_v24, %v745_v17 }
 0x168   : > { %1245 = vrsqrt.f32 %v640_v12  ;;  %v590_v9 = vmul.f32 0.03125, %v498_v28  ;;  %v605_v23 = vmul.f32 0.03125, %v543_v18  ;;  %v746_v0 = vmul.f32 %v1734_v38, %v708_v31 }
 0x169   : > { %v1234_v16 = vpop.eup %1233  ;;  %1247 = vrsqrt.f32 %v621_v14  ;;  %v796_v33 = vpack.c.bf16 %v768_v43, %v767_v60  ;;  %v727_v48 = vmul.f32 %v1734_v38, %v689_v22 }
 0x16a   : > { %v1236_v32 = vpop.eup %1235  ;;  %v622_v34 = vadd.f32 1e-05, %v590_v9  ;;  %v637_v27 = vadd.f32 1e-05, %v605_v23  ;;  %v784_v7 = vadd.f32 %v1742_v24, %v746_v0  ;;  %v690_v21 = vmul.f32 %v1234_v16, %v1634_v37 }
 0x16b   : > { %v546_v59 = vpop.xlane.xlu1 %545  ;;  %v705_v47 = vmul.f32 %v1236_v32, %v1643_v63  ;;  %v863_v2 = vsel %vm299_vm0, %v796_v33, 0  ;;  %v765_v25 = vadd.f32 %v1742_v24, %v727_v48 }
 0x16c   : > { %1249 = vrsqrt.f32 %v622_v34  ;;  %v606_v39 = vmul.f32 0.03125, %v546_v59  ;;  %v804_v42 = vpack.c.bf16 %v784_v7, %v783_v30  ;;  %v728_v20 = vmul.f32 %v1734_v38, %v690_v21 }
 0x16d   : > { %v1238_v46 = vpop.eup %1237  ;;  %1251 = vrsqrt.f32 %v637_v27  ;;  %v743_v63 = vmul.f32 %v1734_v38, %v705_v47 }
 0x16e   : > { %v1240_v36 = vpop.eup %1239  ;;  %v638_v50 = vadd.f32 1e-05, %v606_v39  ;;  %1154 = vmatprep.subr.msk.bf16.mxu0 %vm299_vm0, %v804_v42  ;;  %1155 = vmatprep.subr.msk.bf16.mxu1 %vm299_vm0, %v804_v42  ;;  %v706_v37 = vmul.f32 %v1238_v46, %v1646_v41  ;;  %v766_v52 = vadd.f32 %v1742_v24, %v728_v20 }
 0x16f   : > { %1119 = vmatpush3.bf16.xpose.msra.mxu0 %v863_v2  ;;  %1142 = vmatpush3.bf16.xpose.msra.mxu1 %v863_v2  ;;  %v687_v13 = vmul.f32 %v1240_v36, %v1655_v19  ;;  %v781_v8 = vadd.f32 %v1742_v24, %v743_v63  ;;  %v825_v47 = vpop.permute.xlu1 %824 }
 0x170   : > { %1253 = vrsqrt.f32 %v638_v50  ;;  %v744_v54 = vmul.f32 %v1734_v38, %v706_v37  ;;  %v795_v41 = vpack.c.bf16 %v766_v52, %v765_v25 }
 0x171   : > { %v1242_v1 = vpop.eup %1241  ;;  %v725_v26 = vmul.f32 %v1734_v38, %v687_v13 }
 0x172   : > { %v1244_v10 = vpop.eup %1243  ;;  %v782_v58 = vadd.f32 %v1742_v24, %v744_v54  ;;  %v688_v62 = vmul.f32 %v1242_v1, %v1658_v45  ;;  %v860_v19 = vsel %vm299_vm0, %v795_v41, 0 }
 0x173   : > { %v703_v40 = vmul.f32 %v1244_v10, %v1667_v35  ;;  %v763_v6 = vadd.f32 %v1742_v24, %v725_v26  ;;  %v830_v10 = vpop.permute.xlu1 %829 }
 0x174   : > { %v803_v15 = vpack.c.bf16 %v782_v58, %v781_v8  ;;  %v726_v5 = vmul.f32 %v1734_v38, %v688_v62 }
 0x175   : > { %v1246_v55 = vpop.eup %1245  ;;  %v741_v17 = vmul.f32 %v1734_v38, %v703_v40 }
 0x176   : > { %v1248_v3 = vpop.eup %1247  ;;  %1156 = vmatprep.subr.msk.bf16.mxu0 %vm299_vm0, %v803_v15  ;;  %1157 = vmatprep.subr.msk.bf16.mxu1 %vm299_vm0, %v803_v15  ;;  %v704_v56 = vmul.f32 %v1246_v55, %v1670_v49  ;;  %v764_v45 = vadd.f32 %v1742_v24, %v726_v5 }
 0x177   : > { %1121 = vmatpush3.bf16.xpose.msra.mxu0 %v860_v19  ;;  %1143 = vmatpush3.bf16.xpose.msra.mxu1 %v860_v19  ;;  %v685_v11 = vmul.f32 %v1248_v3, %v1679_v51  ;;  %v779_v29 = vadd.f32 %v1742_v24, %v741_v17  ;;  %v835_v15 = vpop.permute.xlu1 %834 }
 0x178   : > { %v742_v35 = vmul.f32 %v1734_v38, %v704_v56  ;;  %v794_v28 = vpack.c.bf16 %v764_v45, %v763_v6 }
 0x179   : > { %v1250_v12 = vpop.eup %1249  ;;  %v723_v43 = vmul.f32 %v1734_v38, %v685_v11 }
 0x17a   : > { %v1252_v14 = vpop.eup %1251  ;;  %v780_v31 = vadd.f32 %v1742_v24, %v742_v35  ;;  %v686_v49 = vmul.f32 %v1250_v12, %v1682_v53  ;;  %v857_v51 = vsel %vm299_vm0, %v794_v28, 0 }
 0x17b   : > { %v701_v18 = vmul.f32 %v1252_v14, %v1691_v4  ;;  %v761_v16 = vadd.f32 %v1742_v24, %v723_v43 }
 0x17c   : > { %v802_v60 = vpack.c.bf16 %v780_v31, %v779_v29  ;;  %v724_v22 = vmul.f32 %v1734_v38, %v686_v49 }
 0x17d   : > { %v1254_v9 = vpop.eup %1253  ;;  %v739_v0 = vmul.f32 %v1734_v38, %v701_v18 }
 0x17e   : > { %1158 = vmatprep.subr.msk.bf16.mxu0 %vm299_vm0, %v802_v60  ;;  %1159 = vmatprep.subr.msk.bf16.mxu1 %vm299_vm0, %v802_v60  ;;  %v702_v23 = vmul.f32 %v1254_v9, %v1694_v57  ;;  %v762_v53 = vadd.f32 %v1742_v24, %v724_v22 }
 0x17f   : > { %1123 = vmatpush3.bf16.xpose.msra.mxu0 %v857_v51  ;;  %1144 = vmatpush3.bf16.xpose.msra.mxu1 %v857_v51  ;;  %v777_v30 = vadd.f32 %v1742_v24, %v739_v0 }
 0x180   : > { %v740_v4 = vmul.f32 %v1734_v38, %v702_v23  ;;  %v793_v32 = vpack.c.bf16 %v762_v53, %v761_v16  ;;  %v820_v38 = vpop.permute.xlu0 %819 }
 0x182   : > { %v778_v33 = vadd.f32 %v1742_v24, %v740_v4  ;;  %v854_v57 = vsel %vm299_vm0, %v793_v32, 0 }
 0x184   : > { %v801_v34 = vpack.c.bf16 %v778_v33, %v777_v30 }
 0x186   : > { %1160 = vmatprep.subr.msk.bf16.mxu0 %vm299_vm0, %v801_v34  ;;  %1161 = vmatprep.subr.msk.bf16.mxu1 %vm299_vm0, %v801_v34 }
 0x187   : > { %1125 = vmatpush3.bf16.xpose.msra.mxu0 %v854_v57  ;;  %1145 = vmatpush3.bf16.xpose.msra.mxu1 %v854_v57 }
 0x18e   : > { %1127 = vmatmul.mubr.msk.bf16.vlgmr.msra.gmra.mxu0 %vm299_vm0, %v1707_v61  ;;  %1129 = vmatmul.mubr.msk.bf16.vlgmr.msra.gmra.mxu1 %vm299_vm0, %v1712_v44 }
 0x24e   : > { %v935_v27 = vpop.f32.mrf.mxu0  ;;  %v945_v25 = vpop.f32.mrf.mxu1 }
 0x24f   : > { %v936_v7 = vadd.f32 %v935_v27, %v820_v38  ;;  %v946_v41 = vadd.f32 %v945_v25, %v830_v10 }
 0x250   : > { %v937_v24 = vpop.f32.mrf.mxu0  ;;  %v947_v1 = vpop.f32.mrf.mxu1 }
 0x251   : > { %v1098_v21 = vmul.f32 -1.442695, %v936_v7  ;;  %v938_v59 = vadd.f32 %v937_v24, %v820_v38  ;;  %v948_v62 = vadd.f32 %v947_v1, %v830_v10 }
 0x252   : > { %v939_v48 = vpop.f32.mrf.mxu0  ;;  %v949_v8 = vpop.f32.mrf.mxu1 }
 0x253   : > { %1255 = vpow2.f32 %v1098_v21  ;;  %v1099_v39 = vmul.f32 -1.442695, %v938_v59  ;;  %v940_v42 = vadd.f32 %v939_v48, %v825_v47  ;;  %v950_v56 = vadd.f32 %v949_v8, %v835_v15 }
 0x254   : > { %v941_v20 = vpop.f32.mrf.mxu0  ;;  %v951_v26 = vpop.f32.mrf.mxu1 }
 0x255   : > { %1257 = vpow2.f32 %v1099_v39  ;;  %v1100_v46 = vmul.f32 -1.442695, %v940_v42  ;;  %v942_v2 = vadd.f32 %v941_v20, %v825_v47  ;;  %v952_v17 = vadd.f32 %v951_v26, %v835_v15 }
 0x257   : > { %1259 = vpow2.f32 %v1100_v46  ;;  %v1101_v61 = vmul.f32 -1.442695, %v942_v2 }
 0x259   : > { %1261 = vpow2.f32 %v1101_v61 }
 0x260   : > { %v1256_v36 = vpop.eup %1255 }
 0x261   : > { %v966_v44 = vadd.f32 1.0, %v1256_v36 }
 0x262   : > { %v1258_v50 = vpop.eup %1257 }
 0x263   : > { %1263 = vrcp.f32 %v966_v44  ;;  %v967_v37 = vadd.f32 1.0, %v1258_v50 }
 0x264   : > { %v1260_v63 = vpop.eup %1259 }
 0x265   : > { %1265 = vrcp.f32 %v967_v37  ;;  %v968_v52 = vadd.f32 1.0, %v1260_v63 }
 0x266   : > { %v1262_v54 = vpop.eup %1261 }
 0x267   : > { %1267 = vrcp.f32 %v968_v52  ;;  %v969_v13 = vadd.f32 1.0, %v1262_v54 }
 0x269   : > { %1269 = vrcp.f32 %v969_v13 }
 0x270   : > { %v1264_v58 = vpop.eup %1263 }
 0x271   : > { %v978_v5 = vmul.f32 %v1264_v58, %v946_v41 }
 0x272   : > { %v1266_v40 = vpop.eup %1265 }
 0x273   : > { %v979_v55 = vmul.f32 %v1266_v40, %v948_v62 }
 0x274   : > { %v1268_v3 = vpop.eup %1267 }
 0x275   : > { %v1108_v19 = vpack.c.bf16 %v979_v55, %v978_v5  ;;  %v980_v35 = vmul.f32 %v1268_v3, %v950_v56 }
 0x276   : > { %v1270_v45 = vpop.eup %1269 }
 0x277   : > { %994 = vst [vmem:[%s262_s24] sm:$0xff] %v1108_v19  ;;  %v981_v6 = vmul.f32 %v1270_v45, %v952_v17 }
 0x279   : > { %v1109_v11 = vpack.c.bf16 %v981_v6, %v980_v35 }
 0x27b   : > { %995 = vst [vmem:[%s262_s24 + $0x8] sm:$0xff] %v1109_v11 }
 0x27c PF: > { %s15_s20 = sadd.s32 1, %s1293_s20   ;;  %s1883_s18 = smov %s1289_s19 }
 0x27d   : > { %p12_p5 = scmp.ge.s32.totalorder %s15_s20, 4   ;;  %s1884_s19 = smov %s1886_s21 }
 0x27f   :  { %14 = sbr.rel (!%p12_p5) target bundleno = 2 (0x2), region = 70 }

// kernel: triangle_protein_to_compound_v2.7
= control target key start
LH: loop header
LB: loop body
LE: loop exit
PB: predicated region body
PF: predicated region fallthrough
CT: control target
= control target key end

     0   :  { %s778_s18 = smov 0   ;;  %s780_s19 = smov 0   ;;  %s905_s0 = inlined_call_operand.vmem [shape: f32[2,64,32], index: 0, kind: input, shape index: {}]   ;;  %s906_s1 = inlined_call_operand.vmem [shape: f32[1,32], index: 1, kind: input, shape index: {}]   ;;  %s907_s2 = inlined_call_operand.vmem [shape: f32[1,32], index: 2, kind: input, shape index: {}]   ;;  %s908_s3 = inlined_call_operand.vmem [shape: bf16[32,32], index: 3, kind: input, shape index: {}]   ;;  %s909_s4 = inlined_call_operand.vmem [shape: f32[32,1], index: 4, kind: input, shape index: {}]   ;;  %s910_s5 = inlined_call_operand.vmem [shape: bf16[2,16,64], index: 5, kind: output, shape index: {}]  }
   0x1   :  { %s782_s20 = smov 0  }
   0x2 LB: > { %s27_s21 = sadd.s32 1, %s741_s19  ;;  %p627_p0 = scmp.ge.s32.totalorder %s745_s20, 1  ;;  %s745_s20 = sphi %s782_s20, %s15_s20   ;;  %s741_s19 = sphi %s780_s19, %s912_s19   ;;  %s737_s18 = sphi %s778_s18, %s911_s18  }
   0x3   : > { %p29_p1 = scmp.ge.s32.totalorder %s27_s21, 2  ;;  %p208_p2 = scmp.lt.s32.totalorder %s745_s20, 3 }
   0x5   : > { %s914_s21 = smov (%p29_p1, %s27_s21), 0  ;;  %p209_p3 = pnand %p627_p0, %p208_p2 }
   0x6   : > { %p244_p4 = scmp.lt.s32.totalorder (!%p209_p3), %s737_s18, 1 }
   0x7   : > { %212 = sbr.rel (%p209_p3) target bundleno = 600 (0x258), region = 40 }
   0xc   : > { %s916_s18 = smov (!%p244_p4, %s737_s18), 1  ;;  %vm272_vm0 = vcmask 261120   ;;  %v697_v56 = vld [vmem:[%s908_s3] sm:$0xff]   ;;  %v415_v57 = vld [vmem:[%s909_s4 + $0x8] sm:$0xff]  ;;  %v747_v59 = vmov 0   ;;  %v416_v60 = vld [vmem:[%s909_s4 + $0x10] sm:$0xff] }
   0xd   : > { %s644_s22 = sshll.u32 %s916_s18, 6  ;;  %662 = vmatprep.mubr.msk.bf16.mxu0 %vm272_vm0, %v697_v56  ;;  %v414_v58 = vld [vmem:[%s909_s4] sm:$0xff]  ;;  %696 = vset.pattern.permute.xlu1 %v747_v59  ;;  %v417_v61 = vld [vmem:[%s909_s4 + $0x18] sm:$0xff]  ;;  %s645_s17 = sshll.u32 %s916_s18, 3  ;;  %vm537_vm1 = vcmask 519168  }
   0xe   : > { %s251_s25 = scalar_lea.vmem %s905_s0, %s644_s22  ;;  %695 = vset.pattern.permute.xlu0 %v747_v59  ;;  %s260_s24 = scalar_lea.vmem %s910_s5, %s645_s17 }
   0xf   : > { %v268_v0 = vld [vmem:[%s251_s25 + $0x30] sm:$0xff]  ;;  %v269_v1 = vld [vmem:[%s251_s25 + $0x38] sm:$0xff]  ;;  %v266_v2 = vld [vmem:[%s251_s25 + $0x20] sm:$0xff] }
  0x10   : > { %v291_v3 = vsel %vm272_vm0, %v268_v0, 0.0  ;;  %v285_v4 = vsel %vm272_vm0, %v266_v2, 0.0  ;;  %v267_v5 = vld [vmem:[%s251_s25 + $0x28] sm:$0xff]  ;;  %v294_v6 = vsel %vm272_vm0, %v269_v1, 0.0  ;;  %v264_v8 = vld [vmem:[%s251_s25 + $0x10] sm:$0xff]  ;;  %v265_v9 = vld [vmem:[%s251_s25 + $0x18] sm:$0xff] }
  0x11   : > { %292 = vadd.xlane.f32.xlu0 %v291_v3  ;;  %286 = vadd.xlane.f32.xlu1 %v285_v4  ;;  %v288_v7 = vsel %vm272_vm0, %v267_v5, 0.0  ;;  %v279_v10 = vsel %vm272_vm0, %v264_v8, 0.0  ;;  %v282_v11 = vsel %vm272_vm0, %v265_v9, 0.0  ;;  %v262_v12 = vld [vmem:[%s251_s25] sm:$0xff]  ;;  %v263_v13 = vld [vmem:[%s251_s25 + $0x8] sm:$0xff] }
  0x12   : > { %v273_v14 = vsel %vm272_vm0, %v262_v12, 0.0  ;;  %v276_v15 = vsel %vm272_vm0, %v263_v13, 0.0 }
  0x15   : > { %295 = vadd.xlane.f32.xlu0 %v294_v6  ;;  %289 = vadd.xlane.f32.xlu1 %v288_v7 }
  0x19   : > { %280 = vadd.xlane.f32.xlu0 %v279_v10  ;;  %283 = vadd.xlane.f32.xlu1 %v282_v11 }
  0x1d   : > { %274 = vadd.xlane.f32.xlu0 %v273_v14  ;;  %277 = vadd.xlane.f32.xlu1 %v276_v15 }
  0x9a   : > { %v293_v16 = vpop.xlane.xlu0 %292  ;;  %v287_v17 = vpop.xlane.xlu1 %286 }
  0x9b   : > { %v304_v18 = vmul.f32 0.03125, %v293_v16  ;;  %v302_v19 = vmul.f32 0.03125, %v287_v17 }
  0x9d   : > { %v810_v20 = vsub.f32 %v268_v0, %v304_v18  ;;  %v812_v21 = vsub.f32 %v266_v2, %v302_v19 }
  0x9e   : > { %v296_v22 = vpop.xlane.xlu0 %295  ;;  %v290_v23 = vpop.xlane.xlu1 %289 }
  0x9f   : > { %v305_v24 = vmul.f32 0.03125, %v296_v22  ;;  %v303_v25 = vmul.f32 0.03125, %v290_v23  ;;  %v320_v26 = vmul.f32 %v810_v20, %v810_v20  ;;  %v318_v27 = vmul.f32 %v812_v21, %v812_v21 }
  0xa1   : > { %v818_v28 = vsub.f32 %v269_v1, %v305_v24  ;;  %v820_v29 = vsub.f32 %v267_v5, %v303_v25  ;;  %v340_v30 = vsel %vm272_vm0, %v320_v26, 0.0  ;;  %v334_v33 = vsel %vm272_vm0, %v318_v27, 0.0  ;;  %v632_v26 = vld [vmem:[%s906_s1] ss:$0 sm:$0xff] }
  0xa2   : > { %v281_v31 = vpop.xlane.xlu0 %280  ;;  %341 = vadd.xlane.f32.xlu0 %v340_v30  ;;  %v284_v32 = vpop.xlane.xlu1 %283 }
  0xa3   : > { %v300_v34 = vmul.f32 0.03125, %v281_v31  ;;  %v301_v35 = vmul.f32 0.03125, %v284_v32  ;;  %v321_v36 = vmul.f32 %v818_v28, %v818_v28  ;;  %v319_v37 = vmul.f32 %v820_v29, %v820_v29 }
  0xa5   : > { %v828_v38 = vsub.f32 %v264_v8, %v300_v34  ;;  %v830_v39 = vsub.f32 %v265_v9, %v301_v35  ;;  %v343_v40 = vsel %vm272_vm0, %v321_v36, 0.0  ;;  %v337_v42 = vsel %vm272_vm0, %v319_v37, 0.0 }
  0xa6   : > { %344 = vadd.xlane.f32.xlu1 %v343_v40  ;;  %335 = vadd.xlane.f32.xlu0 %v334_v33  ;;  %v275_v41 = vpop.xlane.xlu0 %274  ;;  %v278_v43 = vpop.xlane.xlu1 %277  ;;  %v633_v33 = vld [vmem:[%s907_s2] ss:$0 sm:$0xff] }
  0xa7   : > { %v298_v44 = vmul.f32 0.03125, %v275_v41  ;;  %v299_v45 = vmul.f32 0.03125, %v278_v43  ;;  %v316_v46 = vmul.f32 %v828_v38, %v828_v38  ;;  %v317_v47 = vmul.f32 %v830_v39, %v830_v39 }
  0xa9   : > { %v838_v48 = vsub.f32 %v262_v12, %v298_v44  ;;  %v840_v49 = vsub.f32 %v263_v13, %v299_v45  ;;  %v328_v50 = vsel %vm272_vm0, %v316_v46, 0.0  ;;  %v331_v51 = vsel %vm272_vm0, %v317_v47, 0.0 }
  0xaa   : > { %338 = vadd.xlane.f32.xlu1 %v337_v42  ;;  %329 = vadd.xlane.f32.xlu0 %v328_v50 }
  0xab   : > { %v314_v52 = vmul.f32 %v838_v48, %v838_v48  ;;  %v315_v53 = vmul.f32 %v840_v49, %v840_v49 }
  0xad   : > { %v322_v54 = vsel %vm272_vm0, %v314_v52, 0.0  ;;  %v325_v55 = vsel %vm272_vm0, %v315_v53, 0.0 }
  0xae   : > { %332 = vadd.xlane.f32.xlu1 %v331_v51  ;;  %323 = vadd.xlane.f32.xlu0 %v322_v54 }
  0xb2   : > { %326 = vadd.xlane.f32.xlu1 %v325_v55 }
  0xc3   : > { %425 = vperm.xlu1 %696, %v415_v57  }
  0xc4   : > { %420 = vperm.xlu0 %695, %v414_v58  }
  0xc7   : > { %430 = vperm.xlu1 %696, %v416_v60  }
  0xcb   : > { %435 = vperm.xlu1 %696, %v417_v61  }
 0x12b   : > { %v342_v62 = vpop.xlane.xlu0 %341 }
 0x12c   : > { %v352_v63 = vmul.f32 0.03125, %v342_v62 }
 0x12e   : > { %v360_v0 = vadd.f32 1e-05, %v352_v63 }
 0x12f   : > { %v345_v1 = vpop.xlane.xlu1 %344  ;;  %v336_v2 = vpop.xlane.xlu0 %335 }
 0x130   : > { %699 = vrsqrt.f32 %v360_v0  ;;  %v353_v3 = vmul.f32 0.03125, %v345_v1  ;;  %v350_v4 = vmul.f32 0.03125, %v336_v2 }
 0x132   : > { %v361_v5 = vadd.f32 1e-05, %v353_v3  ;;  %v358_v6 = vadd.f32 1e-05, %v350_v4 }
 0x133   : > { %v339_v7 = vpop.xlane.xlu1 %338  ;;  %v330_v8 = vpop.xlane.xlu0 %329 }
 0x134   : > { %701 = vrsqrt.f32 %v361_v5  ;;  %v351_v9 = vmul.f32 0.03125, %v339_v7  ;;  %v348_v10 = vmul.f32 0.03125, %v330_v8 }
 0x135   : > { %703 = vrsqrt.f32 %v358_v6 }
 0x136   : > { %v359_v11 = vadd.f32 1e-05, %v351_v9  ;;  %v356_v12 = vadd.f32 1e-05, %v348_v10 }
 0x137   : > { %v333_v13 = vpop.xlane.xlu1 %332  ;;  %v324_v14 = vpop.xlane.xlu0 %323 }
 0x138   : > { %705 = vrsqrt.f32 %v359_v11  ;;  %v349_v15 = vmul.f32 0.03125, %v333_v13  ;;  %v346_v16 = vmul.f32 0.03125, %v324_v14 }
 0x139   : > { %707 = vrsqrt.f32 %v356_v12 }
 0x13a   : > { %v357_v17 = vadd.f32 1e-05, %v349_v15  ;;  %v354_v18 = vadd.f32 1e-05, %v346_v16 }
 0x13b   : > { %v327_v19 = vpop.xlane.xlu1 %326 }
 0x13c   : > { %709 = vrsqrt.f32 %v357_v17  ;;  %v347_v22 = vmul.f32 0.03125, %v327_v19 }
 0x13d   : > { %v700_v23 = vpop.eup %699  ;;  %711 = vrsqrt.f32 %v354_v18 }
 0x13e   : > { %v355_v24 = vadd.f32 1e-05, %v347_v22  ;;  %v376_v25 = vmul.f32 %v700_v23, %v810_v20 }
 0x13f   : > { %v421_v2 = vpop.permute.xlu0 %420  ;;  %v426_v7 = vpop.permute.xlu1 %425 }
 0x140   : > { %713 = vrsqrt.f32 %v355_v24  ;;  %v390_v32 = vmul.f32 %v632_v26, %v376_v25 }
 0x141   : > { %v702_v27 = vpop.eup %701 }
 0x142   : > { %v704_v30 = vpop.eup %703  ;;  %v377_v31 = vmul.f32 %v702_v27, %v818_v28  ;;  %v404_v37 = vadd.f32 %v633_v33, %v390_v32 }
 0x143   : > { %v374_v34 = vmul.f32 %v704_v30, %v812_v21  ;;  %v431_v15 = vpop.permute.xlu1 %430 }
 0x144   : > { %v391_v35 = vmul.f32 %v632_v26, %v377_v31 }
 0x145   : > { %v706_v36 = vpop.eup %705  ;;  %v388_v42 = vmul.f32 %v632_v26, %v374_v34 }
 0x146   : > { %v708_v20 = vpop.eup %707  ;;  %v405_v40 = vadd.f32 %v633_v33, %v391_v35  ;;  %v375_v41 = vmul.f32 %v706_v36, %v820_v29 }
 0x147   : > { %v372_v45 = vmul.f32 %v708_v20, %v828_v38  ;;  %v402_v47 = vadd.f32 %v633_v33, %v388_v42  ;;  %v436_v18 = vpop.permute.xlu1 %435 }
 0x148   : > { %v409_v43 = vpack.c.bf16 %v405_v40, %v404_v37  ;;  %v389_v44 = vmul.f32 %v632_v26, %v375_v41 }
 0x149   : > { %v710_v28 = vpop.eup %709  ;;  %v386_v53 = vmul.f32 %v632_v26, %v372_v45 }
 0x14a   : > { %666 = vmatprep.subr.msk.bf16.mxu0 %vm272_vm0, %v409_v43  ;;  %v464_v46 = vsel %vm272_vm0, %v409_v43, 0  ;;  %v403_v50 = vadd.f32 %v633_v33, %v389_v44  ;;  %v373_v21 = vmul.f32 %v710_v28, %v830_v39  ;;  %v712_v51 = vpop.eup %711 }
 0x14b   : > { %655 = vmatpush3.bf16.xpose.msra.mxu0 %v464_v46  ;;  %v400_v56 = vadd.f32 %v633_v33, %v386_v53  ;;  %v370_v57 = vmul.f32 %v712_v51, %v838_v48  ;;  %v698_v48 = vld [vmem:[%s908_s3 + $0x8] sm:$0xff]  }
 0x14c   : > { %v408_v52 = vpack.c.bf16 %v403_v50, %v402_v47  ;;  %v387_v54 = vmul.f32 %v632_v26, %v373_v21 }
 0x14d   : > { %v714_v29 = vpop.eup %713  ;;  %v384_v39 = vmul.f32 %v632_v26, %v370_v57 }
 0x14e   : > { %667 = vmatprep.subr.msk.bf16.mxu0 %vm272_vm0, %v408_v52  ;;  %v401_v55 = vadd.f32 %v633_v33, %v387_v54  ;;  %v371_v38 = vmul.f32 %v714_v29, %v840_v49  ;;  %v461_v58 = vsel %vm272_vm0, %v408_v52, 0 }
 0x14f   : > { %v398_v62 = vadd.f32 %v633_v33, %v384_v39 }
 0x150   : > { %v407_v59 = vpack.c.bf16 %v401_v55, %v400_v56  ;;  %v385_v60 = vmul.f32 %v632_v26, %v371_v38 }
 0x152   : > { %v399_v61 = vadd.f32 %v633_v33, %v385_v60  ;;  %v458_v63 = vsel %vm272_vm0, %v407_v59, 0 }
 0x153   : > { %657 = vmatpush3.bf16.xpose.msra.mxu0 %v461_v58 }
 0x154   : > { %668 = vmatprep.subr.msk.bf16.mxu0 %vm272_vm0, %v407_v59  ;;  %v406_v0 = vpack.c.bf16 %v399_v61, %v398_v62 }
 0x156   : > { %v455_v49 = vsel %vm272_vm0, %v406_v0, 0 }
 0x15b   : > { %659 = vmatpush3.bf16.xpose.msra.mxu0 %v458_v63 }
 0x15c   : > { %669 = vmatprep.subr.msk.bf16.mxu0 %vm272_vm0, %v406_v0 }
 0x163   : > { %661 = vmatpush3.bf16.xpose.msra.mxu0 %v455_v49 }
 0x16a   : > { %663 = vmatmul.mubr.msk.bf16.vlgmr.msra.gmra.mxu0 %vm272_vm0, %v698_v48 }
 0x22a   : > { %v664_v1 = vpop.f32.mrf.mxu0 }
 0x22b   : > { %v509_v16 = vadd.f32 %v664_v1, %v431_v15 }
 0x22c   : > { %v500_v3 = vpop.f32.mrf.mxu0 }
 0x22d   : > { %v501_v4 = vadd.f32 %v500_v3, %v421_v2 }
 0x22e   : > { %v665_v5 = vpop.f32.mrf.mxu0 }
 0x22f   : > { %v638_v6 = vmul.f32 -1.442695, %v501_v4  ;;  %v512_v23 = vadd.f32 %v665_v5, %v436_v18 }
 0x230   : > { %v503_v8 = vpop.f32.mrf.mxu0 }
 0x231   : > { %715 = vpow2.f32 %v638_v6  ;;  %v504_v9 = vadd.f32 %v503_v8, %v426_v7 }
 0x233   : > { %v639_v10 = vmul.f32 -1.442695, %v504_v9 }
 0x235   : > { %717 = vpow2.f32 %v639_v10 }
 0x23e   : > { %v716_v11 = vpop.eup %715 }
 0x23f   : > { %v521_v12 = vadd.f32 1.0, %v716_v11 }
 0x241   : > { %719 = vrcp.f32 %v521_v12 }
 0x242   : > { %v718_v13 = vpop.eup %717 }
 0x243   : > { %v522_v14 = vadd.f32 1.0, %v718_v13 }
 0x245   : > { %721 = vrcp.f32 %v522_v14 }
 0x24e   : > { %v720_v17 = vpop.eup %719 }
 0x24f   : > { %v527_v19 = vmul.f32 %v720_v17, %v509_v16 }
 0x251   : > { %v646_v22 = vpack.c.bf16 %v527_v19, %v527_v19 }
 0x252   : > { %v722_v24 = vpop.eup %721 }
 0x253   : > { %538 = vst.msk [vmem:[%s260_s24] sm:$0xf] %vm537_vm1, %v646_v22  ;;  %v528_v25 = vmul.f32 %v722_v24, %v512_v23 }
 0x255   : > { %v647_v26 = vpack.c.bf16 %v528_v25, %v528_v25 }
 0x257   : > { %539 = vst.msk [vmem:[%s260_s24 + $0x4] sm:$0xf] %vm537_vm1, %v647_v26 }
 0x258 PF: > { %s15_s20 = sadd.s32 1, %s745_s20   ;;  %s911_s18 = smov %s741_s19 }
 0x259   : > { %p12_p5 = scmp.ge.s32.totalorder %s15_s20, 4   ;;  %s912_s19 = smov %s914_s21 }
 0x25b   :  { %14 = sbr.rel (!%p12_p5) target bundleno = 2 (0x2), region = 70 }

// kernel: triangle_protein_to_compound_v2.5
= control target key start
LH: loop header
LB: loop body
LE: loop exit
PB: predicated region body
PF: predicated region fallthrough
CT: control target
= control target key end

     0   :  { %s2176_s17 = smov 0   ;;  %s2178_s18 = smov 0   ;;  %s2624_s0 = inlined_call_operand.vmem [shape: f32[2,128,32], index: 0, kind: input, shape index: {}]   ;;  %s2625_s1 = inlined_call_operand.vmem [shape: bf16[2,1,128], index: 1, kind: input, shape index: {}]   ;;  %s2626_s2 = inlined_call_operand.vmem [shape: bf16[2,128,1], index: 2, kind: input, shape index: {}]   ;;  %s2627_s3 = inlined_call_operand.vmem [shape: f32[1,32], index: 3, kind: input, shape index: {}]   ;;  %s2628_s4 = inlined_call_operand.vmem [shape: f32[1,32], index: 4, kind: input, shape index: {}]   ;;  %s2629_s5 = inlined_call_operand.vmem [shape: bf16[64,32], index: 5, kind: input, shape index: {}]   ;;  %s2630_s6 = inlined_call_operand.vmem [shape: f32[64,1], index: 6, kind: input, shape index: {}]   ;;  %s2631_s7 = inlined_call_operand.vmem [shape: bf16[32,32], index: 7, kind: input, shape index: {}]   ;;  %s2632_s8 = inlined_call_operand.vmem [shape: f32[1,32], index: 8, kind: input, shape index: {}]   ;;  %s2633_s9 = inlined_call_operand.vmem [shape: bf16[2,16,128], index: 9, kind: output, shape index: {0}]   ;;  %s2634_s10 = inlined_call_operand.vmem [shape: bf16[2,16,128], index: 10, kind: output, shape index: {1}]   ;;  %s2635_s11 = inlined_call_operand.vmem [shape: bf16[2,128,32], index: 11, kind: output, shape index: {2}]  }
   0x1   :  { %s2180_s19 = smov 0  }
   0x2 LB: > { %s34_s20 = sadd.s32 1, %s2109_s18  ;;  %p1684_p0 = scmp.ge.s32.totalorder %s2113_s19, 1  ;;  %s2113_s19 = sphi %s2180_s19, %s22_s19   ;;  %s2109_s18 = sphi %s2178_s18, %s2637_s18   ;;  %s2105_s17 = sphi %s2176_s17, %s2636_s17  }
   0x3   : > { %p36_p1 = scmp.ge.s32.totalorder %s34_s20, 2  ;;  %p397_p2 = scmp.lt.s32.totalorder %s2113_s19, 3 }
   0x5   : > { %s2639_s20 = smov (%p36_p1, %s34_s20), 0  ;;  %p398_p3 = pnand %p1684_p0, %p397_p2 }
   0x6   : > { %p477_p4 = scmp.lt.s32.totalorder (!%p398_p3), %s2105_s17, 1 }
   0x7   : > { %401 = sbr.rel (%p398_p3) target bundleno = 642 (0x282), region = 56 }
   0xc   : > { %s2641_s17 = smov (!%p477_p4, %s2105_s17), 1  ;;  %vm547_vm0 = vcmask 261120   ;;  %vm1452_vm1 = vcmask 257024  }
   0xd   : > { %s1758_s21 = sshll.u32 %s2641_s17, 7  ;;  %s1759_s14 = sshll.u32 %s2641_s17, 6 }
   0xe   : > { %s2200_s24 = scalar_lea.vmem %s2624_s0, %s1758_s21  ;;  %s2376_s23 = scalar_lea.vmem %s2626_s2, %s1759_s14 }
   0xf   : > { %v543_v0 = vld [vmem:[%s2200_s24 + $0x70] sm:$0xff]  ;;  %v544_v1 = vld [vmem:[%s2200_s24 + $0x78] sm:$0xff]  ;;  %v541_v2 = vld [vmem:[%s2200_s24 + $0x60] sm:$0xff]  ;;  %s2552_s22 = scalar_lea.vmem %s2635_s11, %s1759_s14  ;;  %s1760_s25 = sshll.u32 %s2641_s17, 3 }
  0x10   : > { %v590_v3 = vsel %vm547_vm0, %v543_v0, 0.0  ;;  %v584_v4 = vsel %vm547_vm0, %v541_v2, 0.0  ;;  %v542_v5 = vld [vmem:[%s2200_s24 + $0x68] sm:$0xff]  ;;  %v593_v6 = vsel %vm547_vm0, %v544_v1, 0.0  ;;  %v539_v8 = vld [vmem:[%s2200_s24 + $0x50] sm:$0xff]  ;;  %v540_v9 = vld [vmem:[%s2200_s24 + $0x58] sm:$0xff]  ;;  %s509_s28 = scalar_lea.vmem %s2633_s9, %s1760_s25  ;;  %s517_s30 = scalar_lea.vmem %s2634_s10, %s1760_s25 }
  0x11   : > { %591 = vadd.xlane.f32.xlu0 %v590_v3  ;;  %585 = vadd.xlane.f32.xlu1 %v584_v4  ;;  %v587_v7 = vsel %vm547_vm0, %v542_v5, 0.0  ;;  %v578_v10 = vsel %vm547_vm0, %v539_v8, 0.0  ;;  %v581_v11 = vsel %vm547_vm0, %v540_v9, 0.0  ;;  %v2215_v12 = vld [vmem:[%s2200_s24 + $0x40] sm:$0xff]  ;;  %v2218_v13 = vld [vmem:[%s2200_s24 + $0x48] sm:$0xff]  ;;  %v2225_v16 = vld [vmem:[%s2200_s24 + $0x30] sm:$0xff] }
  0x12   : > { %v572_v14 = vsel %vm547_vm0, %v2215_v12, 0.0  ;;  %v575_v15 = vsel %vm547_vm0, %v2218_v13, 0.0  ;;  %v2228_v17 = vld [vmem:[%s2200_s24 + $0x38] sm:$0xff]  ;;  %v566_v18 = vsel %vm547_vm0, %v2225_v16, 0.0  ;;  %v2235_v20 = vld [vmem:[%s2200_s24 + $0x20] sm:$0xff]  ;;  %v2238_v21 = vld [vmem:[%s2200_s24 + $0x28] sm:$0xff] }
  0x13   : > { %v569_v19 = vsel %vm547_vm0, %v2228_v17, 0.0  ;;  %v560_v22 = vsel %vm547_vm0, %v2235_v20, 0.0  ;;  %v563_v23 = vsel %vm547_vm0, %v2238_v21, 0.0  ;;  %v2245_v24 = vld [vmem:[%s2200_s24 + $0x10] sm:$0xff]  ;;  %v2248_v25 = vld [vmem:[%s2200_s24 + $0x18] sm:$0xff]  ;;  %v2255_v28 = vld [vmem:[%s2200_s24] sm:$0xff] }
  0x14   : > { %v554_v26 = vsel %vm547_vm0, %v2245_v24, 0.0  ;;  %v557_v27 = vsel %vm547_vm0, %v2248_v25, 0.0  ;;  %v2258_v29 = vld [vmem:[%s2200_s24 + $0x8] sm:$0xff]  ;;  %v548_v30 = vsel %vm547_vm0, %v2255_v28, 0.0  ;;  %s491_s24 = scalar_lea.vmem %s2625_s1, %s2641_s17 }
  0x15   : > { %594 = vadd.xlane.f32.xlu0 %v593_v6  ;;  %588 = vadd.xlane.f32.xlu1 %v587_v7  ;;  %v551_v31 = vsel %vm547_vm0, %v2258_v29, 0.0 }
  0x19   : > { %579 = vadd.xlane.f32.xlu0 %v578_v10  ;;  %582 = vadd.xlane.f32.xlu1 %v581_v11 }
  0x1d   : > { %573 = vadd.xlane.f32.xlu0 %v572_v14  ;;  %576 = vadd.xlane.f32.xlu1 %v575_v15 }
  0x21   : > { %567 = vadd.xlane.f32.xlu0 %v566_v18  ;;  %570 = vadd.xlane.f32.xlu1 %v569_v19 }
  0x25   : > { %561 = vadd.xlane.f32.xlu0 %v560_v22  ;;  %564 = vadd.xlane.f32.xlu1 %v563_v23 }
  0x29   : > { %555 = vadd.xlane.f32.xlu0 %v554_v26  ;;  %558 = vadd.xlane.f32.xlu1 %v557_v27 }
  0x2d   : > { %549 = vadd.xlane.f32.xlu0 %v548_v30  ;;  %552 = vadd.xlane.f32.xlu1 %v551_v31 }
  0x9a   : > { %v592_v32 = vpop.xlane.xlu0 %591  ;;  %v586_v33 = vpop.xlane.xlu1 %585 }
  0x9b   : > { %v611_v34 = vmul.f32 0.03125, %v592_v32  ;;  %v609_v35 = vmul.f32 0.03125, %v586_v33 }
  0x9d   : > { %v2264_v36 = vsub.f32 %v543_v0, %v611_v34  ;;  %v2266_v37 = vsub.f32 %v541_v2, %v609_v35 }
  0x9e   : > { %v595_v38 = vpop.xlane.xlu0 %594  ;;  %v589_v39 = vpop.xlane.xlu1 %588 }
  0x9f   : > { %v612_v40 = vmul.f32 0.03125, %v595_v38  ;;  %v610_v41 = vmul.f32 0.03125, %v589_v39  ;;  %v643_v42 = vmul.f32 %v2264_v36, %v2264_v36  ;;  %v641_v43 = vmul.f32 %v2266_v37, %v2266_v37 }
  0xa1   : > { %v2272_v44 = vsub.f32 %v544_v1, %v612_v40  ;;  %v2274_v45 = vsub.f32 %v542_v5, %v610_v41  ;;  %v687_v46 = vsel %vm547_vm0, %v643_v42, 0.0  ;;  %v681_v49 = vsel %vm547_vm0, %v641_v43, 0.0 }
  0xa2   : > { %v580_v47 = vpop.xlane.xlu0 %579  ;;  %688 = vadd.xlane.f32.xlu0 %v687_v46  ;;  %v583_v48 = vpop.xlane.xlu1 %582 }
  0xa3   : > { %v607_v50 = vmul.f32 0.03125, %v580_v47  ;;  %v608_v51 = vmul.f32 0.03125, %v583_v48  ;;  %v644_v52 = vmul.f32 %v2272_v44, %v2272_v44  ;;  %v642_v53 = vmul.f32 %v2274_v45, %v2274_v45 }
  0xa5   : > { %v2282_v54 = vsub.f32 %v539_v8, %v607_v50  ;;  %v2284_v55 = vsub.f32 %v540_v9, %v608_v51  ;;  %v690_v56 = vsel %vm547_vm0, %v644_v52, 0.0  ;;  %v684_v59 = vsel %vm547_vm0, %v642_v53, 0.0  ;;  %v1974_v53 = vld [vmem:[%s2631_s7] sm:$0xff]  }
  0xa6   : > { %v574_v57 = vpop.xlane.xlu0 %573  ;;  %691 = vadd.xlane.f32.xlu1 %v690_v56  ;;  %682 = vadd.xlane.f32.xlu0 %v681_v49  ;;  %v577_v58 = vpop.xlane.xlu1 %576  ;;  %v1975_v56 = vld [vmem:[%s2629_s5] sm:$0xff]  }
  0xa7   : > { %v605_v60 = vmul.f32 0.03125, %v574_v57  ;;  %v606_v61 = vmul.f32 0.03125, %v577_v58  ;;  %v639_v62 = vmul.f32 %v2282_v54, %v2282_v54  ;;  %v640_v63 = vmul.f32 %v2284_v55, %v2284_v55  ;;  %1870 = vmatprep.mubr.msk.bf16.mxu0 %vm547_vm0, %v1975_v56  ;;  %v818_v57 = vld [vmem:[%s2630_s6 + $0x8] sm:$0xff] }
  0xa8   : > { %v2115_v58 = vmov 0  }
  0xa9   : > { %v2293_v0 = vsub.f32 %v2215_v12, %v605_v60  ;;  %v2296_v1 = vsub.f32 %v2218_v13, %v606_v61  ;;  %v675_v2 = vsel %vm547_vm0, %v639_v62, 0.0  ;;  %v678_v5 = vsel %vm547_vm0, %v640_v63, 0.0  ;;  %1932 = vset.pattern.permute.xlu1 %v2115_v58  ;;  %1931 = vset.pattern.permute.xlu0 %v2115_v58  ;;  %v821_v60 = vld [vmem:[%s2630_s6 + $0x20] sm:$0xff]  ;;  %v1825_v61 = vld [vmem:[%s2376_s23 + $0x8] sm:$0xff]  }
  0xaa   : > { %v568_v3 = vpop.xlane.xlu0 %567  ;;  %685 = vadd.xlane.f32.xlu1 %v684_v59  ;;  %676 = vadd.xlane.f32.xlu0 %v675_v2  ;;  %v571_v4 = vpop.xlane.xlu1 %570  ;;  %v817_v59 = vld [vmem:[%s2630_s6] sm:$0xff]  ;;  %v1799_v62 = vunpack.c.l.bf16 %v1825_v61  ;;  %v1800_v63 = vunpack.c.h.bf16 %v1825_v61  ;;  %v1827_v2 = vld [vmem:[%s2376_s23 + $0x18] sm:$0xff]  }
  0xab   : > { %v603_v6 = vmul.f32 0.03125, %v568_v3  ;;  %v604_v7 = vmul.f32 0.03125, %v571_v4  ;;  %v637_v8 = vmul.f32 %v2293_v0, %v2293_v0  ;;  %v638_v9 = vmul.f32 %v2296_v1, %v2296_v1  ;;  %v1829_v4 = vld [vmem:[%s2376_s23 + $0x28] sm:$0xff]  }
  0xac   : > { %v1807_v3 = vunpack.c.l.bf16 %v1827_v2 }
  0xad   : > { %v2305_v10 = vsub.f32 %v2225_v16, %v603_v6  ;;  %v2308_v11 = vsub.f32 %v2228_v17, %v604_v7  ;;  %v669_v12 = vsel %vm547_vm0, %v637_v8, 0.0  ;;  %v672_v15 = vsel %vm547_vm0, %v638_v9, 0.0  ;;  %v822_v7 = vld [vmem:[%s2630_s6 + $0x28] sm:$0xff] }
  0xae   : > { %v562_v13 = vpop.xlane.xlu0 %561  ;;  %679 = vadd.xlane.f32.xlu1 %v678_v5  ;;  %670 = vadd.xlane.f32.xlu0 %v669_v12  ;;  %v565_v14 = vpop.xlane.xlu1 %564  ;;  %v1938_v5 = vpack.i.bf16 %v1800_v63, %v1799_v62  ;;  %v1808_v6 = vunpack.c.h.bf16 %v1827_v2  ;;  %v1815_v9 = vunpack.c.l.bf16 %v1829_v4  ;;  %v1816_v12 = vunpack.c.h.bf16 %v1829_v4 }
  0xaf   : > { %v601_v18 = vmul.f32 0.03125, %v562_v13  ;;  %v602_v19 = vmul.f32 0.03125, %v565_v14  ;;  %v635_v22 = vmul.f32 %v2305_v10, %v2305_v10  ;;  %v636_v16 = vmul.f32 %v2308_v11, %v2308_v11  ;;  %v1831_v13 = vld [vmem:[%s2376_s23 + $0x38] sm:$0xff]   ;;  %v819_v14 = vld [vmem:[%s2630_s6 + $0x10] sm:$0xff] }
  0xb0   : > { %v1948_v8 = vpack.i.bf16 %v1808_v6, %v1807_v3 }
  0xb1   : > { %v2317_v23 = vsub.f32 %v2235_v20, %v601_v18  ;;  %v2320_v17 = vsub.f32 %v2238_v21, %v602_v19  ;;  %v663_v26 = vsel %vm547_vm0, %v635_v22, 0.0  ;;  %v666_v31 = vsel %vm547_vm0, %v636_v16, 0.0  ;;  %v820_v22 = vld [vmem:[%s2630_s6 + $0x18] sm:$0xff] }
  0xb2   : > { %v556_v27 = vpop.xlane.xlu0 %555  ;;  %673 = vadd.xlane.f32.xlu1 %v672_v15  ;;  %664 = vadd.xlane.f32.xlu0 %v663_v26  ;;  %v559_v30 = vpop.xlane.xlu1 %558  ;;  %v1958_v15 = vpack.i.bf16 %v1816_v12, %v1815_v9  ;;  %v1823_v18 = vunpack.c.l.bf16 %v1831_v13  ;;  %v1824_v19 = vunpack.c.h.bf16 %v1831_v13  ;;  %v823_v26 = vld [vmem:[%s2630_s6 + $0x30] sm:$0xff] }
  0xb3   : > { %v599_v32 = vmul.f32 0.03125, %v556_v27  ;;  %v600_v33 = vmul.f32 0.03125, %v559_v30  ;;  %v633_v34 = vmul.f32 %v2317_v23, %v2317_v23  ;;  %v634_v20 = vmul.f32 %v2320_v17, %v2320_v17  ;;  %v1794_v27 = vld [vmem:[%s2376_s23] sm:$0xff]  }
  0xb4   : > { %v1968_v16 = vpack.i.bf16 %v1824_v19, %v1823_v18  ;;  %v1795_v30 = vunpack.c.l.bf16 %v1794_v27  ;;  %v2407_v19 = vld [vmem:[%s2627_s3] ss:$0 sm:$0xff] }
  0xb5   : > { %v2329_v35 = vsub.f32 %v2245_v24, %v599_v32  ;;  %v2332_v21 = vsub.f32 %v2248_v25, %v600_v33  ;;  %v657_v38 = vsel %vm547_vm0, %v633_v34, 0.0  ;;  %v660_v40 = vsel %vm547_vm0, %v634_v20, 0.0  ;;  %v824_v32 = vld [vmem:[%s2630_s6 + $0x38] sm:$0xff]  ;;  %v1826_v33 = vld [vmem:[%s2376_s23 + $0x10] sm:$0xff]  }
  0xb6   : > { %667 = vadd.xlane.f32.xlu1 %v666_v31  ;;  %658 = vadd.xlane.f32.xlu0 %v657_v38  ;;  %v550_v39 = vpop.xlane.xlu0 %549  ;;  %v553_v41 = vpop.xlane.xlu1 %552  ;;  %v1796_v31 = vunpack.c.h.bf16 %v1794_v27 }
  0xb7   : > { %v597_v42 = vmul.f32 0.03125, %v550_v39  ;;  %v598_v43 = vmul.f32 0.03125, %v553_v41  ;;  %v631_v46 = vmul.f32 %v2329_v35, %v2329_v35  ;;  %v632_v24 = vmul.f32 %v2332_v21, %v2332_v21  ;;  %v1828_v41 = vld [vmem:[%s2376_s23 + $0x20] sm:$0xff]  }
  0xb8   : > { %v1933_v38 = vpack.i.bf16 %v1796_v31, %v1795_v30  ;;  %v1803_v39 = vunpack.c.l.bf16 %v1826_v33 }
  0xb9   : > { %v2341_v47 = vsub.f32 %v2255_v28, %v597_v42  ;;  %v2344_v25 = vsub.f32 %v2258_v29, %v598_v43  ;;  %v651_v48 = vsel %vm547_vm0, %v631_v46, 0.0  ;;  %v654_v49 = vsel %vm547_vm0, %v632_v24, 0.0  ;;  %v1973_v29 = vld [vmem:[%s2631_s7 + $0x8] sm:$0xff]  }
  0xba   : > { %661 = vadd.xlane.f32.xlu1 %v660_v40  ;;  %652 = vadd.xlane.f32.xlu0 %v651_v48  ;;  %v1804_v40 = vunpack.c.h.bf16 %v1826_v33  ;;  %v1811_v24 = vunpack.c.l.bf16 %v1828_v41  ;;  %v1812_v48 = vunpack.c.h.bf16 %v1828_v41 }
  0xbb   : > { %v629_v50 = vmul.f32 %v2341_v47, %v2341_v47  ;;  %v630_v51 = vmul.f32 %v2344_v25, %v2344_v25  ;;  %1878 = vmatprep.subr.bf16.mxu1 %v1973_v29 }
  0xbc   : > { %1879 = vmatpush3.bf16.msra.mxu1 %v1973_v29 }
  0xbd   : > { %v645_v52 = vsel %vm547_vm0, %v629_v50, 0.0  ;;  %v648_v28 = vsel %vm547_vm0, %v630_v51, 0.0  ;;  %1880 = vmatprep.subr.bf16.mxu1 %v1974_v53  ;;  %v1943_v51 = vpack.i.bf16 %v1804_v40, %v1803_v39 }
  0xbe   : > { %655 = vadd.xlane.f32.xlu1 %v654_v49  ;;  %646 = vadd.xlane.f32.xlu0 %v645_v52  ;;  %v1830_v52 = vld [vmem:[%s2376_s23 + $0x30] sm:$0xff]  }
  0xbf   : > { %v1819_v58 = vunpack.c.l.bf16 %v1830_v52  ;;  %v1820_v61 = vunpack.c.h.bf16 %v1830_v52 }
  0xc0   : > { %1881 = vmatpush3.bf16.msra.mxu1 %v1974_v53 }
  0xc1   : > { %v1963_v6 = vpack.i.bf16 %v1820_v61, %v1819_v58 }
  0xc2   : > { %649 = vadd.xlane.f32.xlu1 %v648_v28 }
  0xd3   : > { %832 = vperm.xlu1 %1932, %v818_v57   ;;  %v1953_v57 = vpack.i.bf16 %v1812_v48, %v1811_v24 }
  0xd4   : > { %827 = vperm.xlu0 %1931, %v817_v59  }
  0xd7   : > { %847 = vperm.xlu1 %1932, %v821_v60  }
  0xd8   : > { %1939 = vperm.xlu0 %1931, %v1938_v5  }
  0xdb   : > { %852 = vperm.xlu1 %1932, %v822_v7  }
  0xdc   : > { %1949 = vperm.xlu0 %1931, %v1948_v8  }
  0xdf   : > { %837 = vperm.xlu1 %1932, %v819_v14  }
  0xe0   : > { %1959 = vperm.xlu0 %1931, %v1958_v15  }
  0xe3   : > { %842 = vperm.xlu1 %1932, %v820_v22  }
  0xe4   : > { %1969 = vperm.xlu0 %1931, %v1968_v16  }
  0xe7   : > { %857 = vperm.xlu1 %1932, %v823_v26  }
  0xeb   : > { %862 = vperm.xlu1 %1932, %v824_v32  }
  0xef   : > { %1934 = vperm.xlu1 %1932, %v1933_v38   ;;  %v2414_v38 = vld [vmem:[%s2628_s4] ss:$0 sm:$0xff] }
  0xf3   : > { %1944 = vperm.xlu1 %1932, %v1943_v51  }
  0xf7   : > { %1954 = vperm.xlu1 %1932, %v1953_v57  }
  0xfb   : > { %1964 = vperm.xlu1 %1932, %v1963_v6  }
 0x12b   : > { %v689_v34 = vpop.xlane.xlu0 %688 }
 0x12c   : > { %v707_v20 = vmul.f32 0.03125, %v689_v34 }
 0x12e   : > { %v723_v42 = vadd.f32 1e-05, %v707_v20 }
 0x12f   : > { %v692_v43 = vpop.xlane.xlu1 %691  ;;  %v683_v46 = vpop.xlane.xlu0 %682 }
 0x130   : > { %1979 = vrsqrt.f32 %v723_v42  ;;  %v708_v49 = vmul.f32 0.03125, %v692_v43  ;;  %v705_v50 = vmul.f32 0.03125, %v683_v46 }
 0x132   : > { %v724_v28 = vadd.f32 1e-05, %v708_v49  ;;  %v721_v29 = vadd.f32 1e-05, %v705_v50 }
 0x133   : > { %v686_v53 = vpop.xlane.xlu1 %685  ;;  %v677_v56 = vpop.xlane.xlu0 %676 }
 0x134   : > { %1981 = vrsqrt.f32 %v724_v28  ;;  %v706_v59 = vmul.f32 0.03125, %v686_v53  ;;  %v703_v60 = vmul.f32 0.03125, %v677_v56 }
 0x135   : > { %1983 = vrsqrt.f32 %v721_v29 }
 0x136   : > { %v722_v62 = vadd.f32 1e-05, %v706_v59  ;;  %v719_v63 = vadd.f32 1e-05, %v703_v60 }
 0x137   : > { %v680_v2 = vpop.xlane.xlu1 %679  ;;  %v671_v3 = vpop.xlane.xlu0 %670 }
 0x138   : > { %1985 = vrsqrt.f32 %v722_v62  ;;  %v704_v4 = vmul.f32 0.03125, %v680_v2  ;;  %v701_v5 = vmul.f32 0.03125, %v671_v3 }
 0x139   : > { %1987 = vrsqrt.f32 %v719_v63 }
 0x13a   : > { %v720_v7 = vadd.f32 1e-05, %v704_v4  ;;  %v717_v8 = vadd.f32 1e-05, %v701_v5 }
 0x13b   : > { %v674_v9 = vpop.xlane.xlu1 %673  ;;  %v665_v12 = vpop.xlane.xlu0 %664 }
 0x13c   : > { %1989 = vrsqrt.f32 %v720_v7  ;;  %v702_v13 = vmul.f32 0.03125, %v674_v9  ;;  %v699_v15 = vmul.f32 0.03125, %v665_v12 }
 0x13d   : > { %v1980_v14 = vpop.eup %1979  ;;  %1991 = vrsqrt.f32 %v717_v8 }
 0x13e   : > { %v718_v18 = vadd.f32 1e-05, %v702_v13  ;;  %v755_v22 = vmul.f32 %v1980_v14, %v2264_v36  ;;  %v715_v32 = vadd.f32 1e-05, %v699_v15 }
 0x13f   : > { %v668_v16 = vpop.xlane.xlu1 %667  ;;  %v659_v26 = vpop.xlane.xlu0 %658 }
 0x140   : > { %1993 = vrsqrt.f32 %v718_v18  ;;  %v700_v27 = vmul.f32 0.03125, %v668_v16  ;;  %v697_v30 = vmul.f32 0.03125, %v659_v26  ;;  %v777_v33 = vmul.f32 %v2407_v19, %v755_v22 }
 0x141   : > { %v1982_v31 = vpop.eup %1981  ;;  %1995 = vrsqrt.f32 %v715_v32 }
 0x142   : > { %v1984_v34 = vpop.eup %1983  ;;  %v716_v20 = vadd.f32 1e-05, %v700_v27  ;;  %v756_v39 = vmul.f32 %v1982_v31, %v2272_v44  ;;  %v713_v36 = vadd.f32 1e-05, %v697_v30  ;;  %v799_v49 = vadd.f32 %v2414_v38, %v777_v33 }
 0x143   : > { %v662_v40 = vpop.xlane.xlu1 %661  ;;  %v653_v41 = vpop.xlane.xlu0 %652  ;;  %v753_v42 = vmul.f32 %v1984_v34, %v2266_v37 }
 0x144   : > { %v698_v43 = vmul.f32 0.03125, %v662_v40  ;;  %v695_v46 = vmul.f32 0.03125, %v653_v41  ;;  %v778_v24 = vmul.f32 %v2407_v19, %v756_v39  ;;  %1997 = vrsqrt.f32 %v716_v20 }
 0x145   : > { %v1986_v48 = vpop.eup %1985  ;;  %1999 = vrsqrt.f32 %v713_v36  ;;  %v775_v37 = vmul.f32 %v2407_v19, %v753_v42 }
 0x146   : > { %v1988_v50 = vpop.eup %1987  ;;  %v714_v51 = vadd.f32 1e-05, %v698_v43  ;;  %v800_v52 = vadd.f32 %v2414_v38, %v778_v24  ;;  %v754_v44 = vmul.f32 %v1986_v48, %v2274_v45  ;;  %v711_v28 = vadd.f32 1e-05, %v695_v46 }
 0x147   : > { %v656_v29 = vpop.xlane.xlu1 %655  ;;  %v647_v53 = vpop.xlane.xlu0 %646  ;;  %v751_v59 = vmul.f32 %v1988_v50, %v2282_v54  ;;  %v797_v4 = vadd.f32 %v2414_v38, %v775_v37 }
 0x148   : > { %v696_v56 = vmul.f32 0.03125, %v656_v29  ;;  %v693_v57 = vmul.f32 0.03125, %v647_v53  ;;  %v2423_v58 = vpack.c.bf16 %v800_v52, %v799_v49  ;;  %2001 = vrsqrt.f32 %v714_v51 }
 0x149   : > { %v1990_v60 = vpop.eup %1989  ;;  %v776_v61 = vmul.f32 %v2407_v19, %v754_v44  ;;  %2003 = vrsqrt.f32 %v711_v28  ;;  %v773_v7 = vmul.f32 %v2407_v19, %v751_v59 }
 0x14a   : > { %v712_v62 = vadd.f32 1e-05, %v696_v56  ;;  %v709_v63 = vadd.f32 1e-05, %v693_v57  ;;  %1898 = vmatprep.subr.msk.bf16.mxu0 %vm547_vm0, %v2423_v58  ;;  %v919_v45 = vsel %vm547_vm0, %v2423_v58, 0  ;;  %v752_v2 = vmul.f32 %v1990_v60, %v2284_v55  ;;  %v1992_v5 = vpop.eup %1991 }
 0x14b   : > { %v650_v3 = vpop.xlane.xlu1 %649  ;;  %1855 = vmatpush3.bf16.xpose.msra.mxu0 %v919_v45  ;;  %v798_v54 = vadd.f32 %v2414_v38, %v776_v61  ;;  %v795_v15 = vadd.f32 %v2414_v38, %v773_v7  ;;  %v749_v18 = vmul.f32 %v1992_v5, %v2293_v0 }
 0x14c   : > { %2005 = vrsqrt.f32 %v712_v62  ;;  %v694_v6 = vmul.f32 0.03125, %v650_v3  ;;  %v774_v8 = vmul.f32 %v2407_v19, %v752_v2  ;;  %v1976_v3 = vld [vmem:[%s2629_s5 + $0x8] sm:$0xff]  }
 0x14d   : > { %v1994_v9 = vpop.eup %1993  ;;  %2007 = vrsqrt.f32 %v709_v63  ;;  %v2436_v12 = vpack.c.bf16 %v798_v54, %v797_v4  ;;  %v1977_v4 = vld [vmem:[%s2629_s5 + $0x10] sm:$0xff]   ;;  %v1978_v54 = vld [vmem:[%s2629_s5 + $0x18] sm:$0xff]  }
 0x14e   : > { %v710_v13 = vadd.f32 1e-05, %v694_v6  ;;  %v796_v55 = vadd.f32 %v2414_v38, %v774_v8  ;;  %v750_v14 = vmul.f32 %v1994_v9, %v2296_v1  ;;  %v1996_v22 = vpop.eup %1995  ;;  %v771_v1 = vmul.f32 %v2407_v19, %v749_v18  ;;  %v2515_v6 = vld [vmem:[%s2632_s8] ss:$0 sm:$0xff] }
 0x14f   : > { %1899 = vmatprep.subr.msk.bf16.mxu0 %vm547_vm0, %v2436_v12  ;;  %v916_v16 = vsel %vm547_vm0, %v2436_v12, 0  ;;  %v747_v39 = vmul.f32 %v1996_v22, %v2305_v10 }
 0x150   : > { %2009 = vrsqrt.f32 %v710_v13  ;;  %v806_v26 = vpack.c.bf16 %v796_v55, %v795_v15  ;;  %v772_v27 = vmul.f32 %v2407_v19, %v750_v14  ;;  %v793_v20 = vadd.f32 %v2414_v38, %v771_v1 }
 0x151   : > { %v1998_v30 = vpop.eup %1997  ;;  %v769_v10 = vmul.f32 %v2407_v19, %v747_v39 }
 0x152   : > { %v2000_v31 = vpop.eup %1999  ;;  %v794_v33 = vadd.f32 %v2414_v38, %v772_v27  ;;  %v748_v34 = vmul.f32 %v1998_v30, %v2308_v11  ;;  %v913_v40 = vsel %vm547_vm0, %v806_v26, 0 }
 0x153   : > { %1857 = vmatpush3.bf16.xpose.msra.mxu0 %v916_v16  ;;  %v745_v49 = vmul.f32 %v2000_v31, %v2317_v23 }
 0x154   : > { %1900 = vmatprep.subr.msk.bf16.mxu0 %vm547_vm0, %v806_v26  ;;  %v805_v42 = vpack.c.bf16 %v794_v33, %v793_v20  ;;  %v770_v43 = vmul.f32 %v2407_v19, %v748_v34 }
 0x155   : > { %v2002_v32 = vpop.eup %2001  ;;  %v767_v29 = vmul.f32 %v2407_v19, %v745_v49 }
 0x156   : > { %v2004_v0 = vpop.eup %2003  ;;  %v746_v24 = vmul.f32 %v2002_v32, %v2320_v17  ;;  %v792_v52 = vadd.f32 %v2414_v38, %v770_v43  ;;  %v910_v23 = vsel %vm547_vm0, %v805_v42, 0 }
 0x157   : > { %v743_v11 = vmul.f32 %v2004_v0, %v2329_v35  ;;  %v791_v35 = vadd.f32 %v2414_v38, %v769_v10  ;;  %v789_v61 = vadd.f32 %v2414_v38, %v767_v29 }
 0x158   : > { %v768_v44 = vmul.f32 %v2407_v19, %v746_v24 }
 0x159   : > { %v2006_v36 = vpop.eup %2005  ;;  %v804_v37 = vpack.c.bf16 %v792_v52, %v791_v35  ;;  %v2536_v35 = vpop.permute.xlu0 %827 }
 0x15a   : > { %v2008_v41 = vpop.eup %2007  ;;  %v744_v46 = vmul.f32 %v2006_v36, %v2332_v21  ;;  %v790_v57 = vadd.f32 %v2414_v38, %v768_v44 }
 0x15b   : > { %1859 = vmatpush3.bf16.xpose.msra.mxu0 %v913_v40  ;;  %v741_v48 = vmul.f32 %v2008_v41, %v2341_v47  ;;  %v765_v47 = vmul.f32 %v2407_v19, %v743_v11  ;;  %v907_v63 = vsel %vm547_vm0, %v804_v37, 0 }
 0x15c   : > { %1901 = vmatprep.subr.msk.bf16.mxu0 %vm547_vm0, %v805_v42  ;;  %v766_v51 = vmul.f32 %v2407_v19, %v744_v46  ;;  %v803_v62 = vpack.c.bf16 %v790_v57, %v789_v61 }
 0x15d   : > { %v2010_v50 = vpop.eup %2009  ;;  %v763_v17 = vmul.f32 %v2407_v19, %v741_v48  ;;  %v787_v59 = vadd.f32 %v2414_v38, %v765_v47 }
 0x15e   : > { %v742_v21 = vmul.f32 %v2010_v50, %v2344_v25  ;;  %v788_v53 = vadd.f32 %v2414_v38, %v766_v51  ;;  %v904_v45 = vsel %vm547_vm0, %v803_v62, 0 }
 0x15f   : > { %v785_v56 = vadd.f32 %v2414_v38, %v763_v17 }
 0x160   : > { %v764_v28 = vmul.f32 %v2407_v19, %v742_v21  ;;  %v802_v19 = vpack.c.bf16 %v788_v53, %v787_v59 }
 0x162   : > { %v786_v25 = vadd.f32 %v2414_v38, %v764_v28  ;;  %v901_v38 = vsel %vm547_vm0, %v802_v19, 0 }
 0x163   : > { %1861 = vmatpush3.bf16.xpose.msra.mxu0 %v910_v23 }
 0x164   : > { %1902 = vmatprep.subr.msk.bf16.mxu0 %vm547_vm0, %v804_v37  ;;  %v801_v60 = vpack.c.bf16 %v786_v25, %v785_v56 }
 0x166   : > { %1882 = vmatprep.mubr.msk.bf16.mxu1 %vm547_vm0, %v801_v60  ;;  %v898_v2 = vsel %vm547_vm0, %v801_v60, 0 }
 0x167   : > { %1883 = vmatmul.mubr.msk.bf16.vlgmr.msra.gmra.mxu1 %vm547_vm0, %v802_v19 }
 0x168   : > { %1886 = vmatprep.mubr.msk.bf16.mxu1 %vm547_vm0, %v803_v62 }
 0x16b   : > { %1863 = vmatpush3.bf16.xpose.msra.mxu0 %v907_v63 }
 0x16c   : > { %1903 = vmatprep.subr.msk.bf16.mxu0 %vm547_vm0, %v803_v62 }
 0x16f   : > { %1887 = vmatmul.mubr.msk.bf16.gmra.mxu1 %vm547_vm0, %v804_v37 }
 0x170   : > { %1890 = vmatprep.mubr.msk.bf16.mxu1 %vm547_vm0, %v805_v42 }
 0x173   : > { %1865 = vmatpush3.bf16.xpose.msra.mxu0 %v904_v45 }
 0x174   : > { %1904 = vmatprep.subr.msk.bf16.mxu0 %vm547_vm0, %v802_v19 }
 0x177   : > { %1891 = vmatmul.mubr.msk.bf16.gmra.mxu1 %vm547_vm0, %v806_v26 }
 0x178   : > { %1894 = vmatprep.mubr.msk.bf16.mxu1 %vm547_vm0, %v2436_v12 }
 0x17b   : > { %1867 = vmatpush3.bf16.xpose.msra.mxu0 %v901_v38 }
 0x17c   : > { %1905 = vmatprep.subr.msk.bf16.mxu0 %vm547_vm0, %v801_v60 }
 0x17f   : > { %1895 = vmatmul.mubr.msk.bf16.gmra.mxu1 %vm547_vm0, %v2423_v58  ;;  %v2508_v58 = vpop.permute.xlu1 %832 }
 0x183   : > { %1869 = vmatpush3.bf16.xpose.msra.mxu0 %v898_v2  ;;  %v2510_v5 = vpop.permute.xlu1 %847  ;;  %v1940_v2 = vpop.permute.xlu0 %1939 }
 0x187   : > { %v2518_v12 = vpop.permute.xlu1 %852 }
 0x18a   : > { %1871 = vmatmul.mubr.msk.bf16.vlgmr.msra.gmra.mxu0 %vm547_vm0, %v1976_v3 }
 0x18b   : > { %1874 = vmatprep.mubr.msk.bf16.mxu0 %vm547_vm0, %v1977_v4  ;;  %v2523_v30 = vpop.permute.xlu1 %837 }
 0x18f   : > { %v2528_v40 = vpop.permute.xlu1 %842 }
 0x192   : > { %1875 = vmatmul.mubr.msk.bf16.gmra.mxu0 %vm547_vm0, %v1978_v54 }
 0x193   : > { %v2533_v21 = vpop.permute.xlu1 %857 }
 0x197   : > { %v2540_v19 = vpop.permute.xlu1 %862 }
 0x227   : > { %v1884_v7 = vpop.f32.mrf.mxu1 }
 0x228   : > { %v1110_v8 = vadd.f32 %v1884_v7, %v2515_v6 }
 0x229   : > { %v1101_v9 = vpop.f32.mrf.mxu1 }
 0x22a   : > { %v1726_v13 = vmul.f32 -1.442695, %v1110_v8  ;;  %v1102_v55 = vadd.f32 %v2515_v6, %v1101_v9 }
 0x22b   : > { %v1885_v14 = vpop.f32.mrf.mxu1 }
 0x22c   : > { %2011 = vpow2.f32 %v1726_v13  ;;  %v1724_v15 = vmul.f32 -1.442695, %v1102_v55  ;;  %v1113_v18 = vadd.f32 %v1885_v14, %v2515_v6  ;;  %v1941_v55 = vunpack.i.l.bf16 %v1940_v2 }
 0x22d   : > { %v1104_v22 = vpop.f32.mrf.mxu1 }
 0x22e   : > { %2013 = vpow2.f32 %v1724_v15  ;;  %v1727_v16 = vmul.f32 -1.442695, %v1113_v18  ;;  %v1105_v26 = vadd.f32 %v2515_v6, %v1104_v22 }
 0x22f   : > { %v1888_v27 = vpop.f32.mrf.mxu1 }
 0x230   : > { %2015 = vpow2.f32 %v1727_v16  ;;  %v1725_v31 = vmul.f32 -1.442695, %v1105_v26  ;;  %v1126_v1 = vadd.f32 %v1888_v27, %v2515_v6  ;;  %v1935_v16 = vpop.permute.xlu1 %1934 }
 0x231   : > { %v1117_v32 = vpop.f32.mrf.mxu1  ;;  %v1936_v27 = vunpack.i.l.bf16 %v1935_v16 }
 0x232   : > { %2017 = vpow2.f32 %v1725_v31  ;;  %v1730_v33 = vmul.f32 -1.442695, %v1126_v1  ;;  %v1118_v34 = vadd.f32 %v2515_v6, %v1117_v32 }
 0x233   : > { %v1889_v0 = vpop.f32.mrf.mxu1 }
 0x234   : > { %2019 = vpow2.f32 %v1730_v33  ;;  %v1728_v20 = vmul.f32 -1.442695, %v1118_v34  ;;  %v1129_v39 = vadd.f32 %v1889_v0, %v2515_v6  ;;  %v1942_v33 = vunpack.i.h.bf16 %v1940_v2 }
 0x235   : > { %v1120_v36 = vpop.f32.mrf.mxu1 }
 0x236   : > { %2021 = vpow2.f32 %v1728_v20  ;;  %v1731_v41 = vmul.f32 -1.442695, %v1129_v39  ;;  %v1121_v42 = vadd.f32 %v2515_v6, %v1120_v36  ;;  %v1950_v39 = vpop.permute.xlu0 %1949 }
 0x237   : > { %v1892_v43 = vpop.f32.mrf.mxu1 }
 0x238   : > { %2023 = vpow2.f32 %v1731_v41  ;;  %v1729_v46 = vmul.f32 -1.442695, %v1121_v42  ;;  %v1142_v24 = vadd.f32 %v1892_v43, %v2515_v6  ;;  %v1937_v41 = vunpack.i.h.bf16 %v1935_v16 }
 0x239   : > { %v2012_v48 = vpop.eup %2011  ;;  %v1133_v11 = vpop.f32.mrf.mxu1 }
 0x23a   : > { %v1214_v10 = vadd.f32 1.0, %v2012_v48  ;;  %2025 = vpow2.f32 %v1729_v46  ;;  %v1734_v49 = vmul.f32 -1.442695, %v1142_v24  ;;  %v1134_v50 = vadd.f32 %v2515_v6, %v1133_v11 }
 0x23b   : > { %v2014_v51 = vpop.eup %2013  ;;  %v1893_v52 = vpop.f32.mrf.mxu1 }
 0x23c   : > { %2027 = vrcp.f32 %v1214_v10  ;;  %v1212_v17 = vadd.f32 1.0, %v2014_v51  ;;  %v1732_v44 = vmul.f32 -1.442695, %v1134_v50  ;;  %v1145_v47 = vadd.f32 %v1893_v52, %v2515_v6 }
 0x23d   : > { %v2016_v28 = vpop.eup %2015  ;;  %2029 = vpow2.f32 %v1734_v49  ;;  %v1136_v29 = vpop.f32.mrf.mxu1  ;;  %v1951_v52 = vunpack.i.l.bf16 %v1950_v39 }
 0x23e   : > { %2031 = vrcp.f32 %v1212_v17  ;;  %v1215_v23 = vadd.f32 1.0, %v2016_v28  ;;  %v1735_v53 = vmul.f32 -1.442695, %v1145_v47  ;;  %v1137_v37 = vadd.f32 %v2515_v6, %v1136_v29  ;;  %v1945_v47 = vpop.permute.xlu1 %1944 }
 0x23f   : > { %v2018_v56 = vpop.eup %2017  ;;  %2033 = vpow2.f32 %v1732_v44  ;;  %v1896_v25 = vpop.f32.mrf.mxu1 }
 0x240   : > { %2035 = vrcp.f32 %v1215_v23  ;;  %v1213_v57 = vadd.f32 1.0, %v2018_v56  ;;  %v1733_v59 = vmul.f32 -1.442695, %v1137_v37  ;;  %v1158_v60 = vadd.f32 %v1896_v25, %v2515_v6 }
 0x241   : > { %v2020_v61 = vpop.eup %2019  ;;  %2037 = vpow2.f32 %v1735_v53  ;;  %v1149_v62 = vpop.f32.mrf.mxu1 }
 0x242   : > { %2039 = vrcp.f32 %v1213_v57  ;;  %v1218_v63 = vadd.f32 1.0, %v2020_v61  ;;  %v1738_v45 = vmul.f32 -1.442695, %v1158_v60  ;;  %v1150_v38 = vadd.f32 %v2515_v6, %v1149_v62 }
 0x243   : > { %v2022_v3 = vpop.eup %2021  ;;  %2041 = vpow2.f32 %v1733_v59  ;;  %v1897_v4 = vpop.f32.mrf.mxu1  ;;  %v1952_v61 = vunpack.i.h.bf16 %v1950_v39 }
 0x244   : > { %2043 = vrcp.f32 %v1218_v63  ;;  %v1216_v54 = vadd.f32 1.0, %v2022_v3  ;;  %v1736_v7 = vmul.f32 -1.442695, %v1150_v38  ;;  %v1161_v8 = vadd.f32 %v1897_v4, %v2515_v6 }
 0x245   : > { %v2024_v9 = vpop.eup %2023  ;;  %2045 = vpow2.f32 %v1738_v45  ;;  %v1152_v13 = vpop.f32.mrf.mxu1 }
 0x246   : > { %2047 = vrcp.f32 %v1216_v54  ;;  %v1219_v14 = vadd.f32 1.0, %v2024_v9  ;;  %v1739_v15 = vmul.f32 -1.442695, %v1161_v8  ;;  %v1153_v18 = vadd.f32 %v2515_v6, %v1152_v13 }
 0x247   : > { %v2026_v22 = vpop.eup %2025  ;;  %2049 = vpow2.f32 %v1736_v7 }
 0x248   : > { %2051 = vrcp.f32 %v1219_v14  ;;  %v1217_v26 = vadd.f32 1.0, %v2026_v22  ;;  %v1737_v31 = vmul.f32 -1.442695, %v1153_v18  ;;  %v1960_v18 = vpop.permute.xlu0 %1959 }
 0x249   : > { %v2028_v1 = vpop.eup %2027  ;;  %2053 = vpow2.f32 %v1739_v15 }
 0x24a   : > { %v2030_v32 = vpop.eup %2029  ;;  %2055 = vrcp.f32 %v1217_v26  ;;  %v1374_v34 = vmul.f32 %v2028_v1, %v1941_v55  ;;  %v2545_v0 = vpop.f32.mrf.mxu0  ;;  %v1947_v55 = vunpack.i.h.bf16 %v1945_v47 }
 0x24b   : > { %v2032_v20 = vpop.eup %2031  ;;  %v1222_v6 = vadd.f32 1.0, %v2030_v32  ;;  %2057 = vpow2.f32 %v1737_v31  ;;  %v1961_v31 = vunpack.i.l.bf16 %v1960_v18 }
 0x24c   : > { %v2034_v36 = vpop.eup %2033  ;;  %v1372_v42 = vmul.f32 %v2032_v20, %v1936_v27  ;;  %v1769_v43 = vpack.c.bf16 %v1374_v34, %v1374_v34  ;;  %v955_v46 = vpop.f32.mrf.mxu0 }
 0x24d   : > { %v2036_v24 = vpop.eup %2035  ;;  %2059 = vrcp.f32 %v1222_v6  ;;  %v1220_v48 = vadd.f32 1.0, %v2034_v36  ;;  %v956_v11 = vadd.f32 %v955_v46, %v2536_v35  ;;  %v1946_v35 = vunpack.i.l.bf16 %v1945_v47  ;;  %v1955_v36 = vpop.permute.xlu1 %1954 }
 0x24e   : > { %v2038_v10 = vpop.eup %2037  ;;  %v1767_v49 = vpack.c.bf16 %v1372_v42, %v1372_v42  ;;  %v1375_v50 = vmul.f32 %v2036_v24, %v1942_v33  ;;  %1455 = vst.msk [vmem:[%s2552_s22 + $0x8] sm:$0xf] %vm1452_vm1, %v1769_v43  ;;  %v2557_v51 = vpop.f32.mrf.mxu0 }
 0x24f   : > { %v2040_v17 = vpop.eup %2039  ;;  %2061 = vrcp.f32 %v1220_v48  ;;  %v1223_v44 = vadd.f32 1.0, %v2038_v10  ;;  %v1705_v28 = vmul.f32 -1.442695, %v956_v11  ;;  %v1962_v48 = vunpack.i.h.bf16 %v1960_v18  ;;  %v1970_v10 = vpop.permute.xlu0 %1969 }
 0x250   : > { %v2042_v29 = vpop.eup %2041  ;;  %v1373_v23 = vmul.f32 %v2040_v17, %v1937_v41  ;;  %1453 = vst.msk [vmem:[%s2552_s22] sm:$0xf] %vm1452_vm1, %v1767_v49  ;;  %v1770_v53 = vpack.c.bf16 %v1375_v50, %v1375_v50  ;;  %v958_v37 = vpop.f32.mrf.mxu0  ;;  %v1956_v41 = vunpack.i.l.bf16 %v1955_v36  ;;  %v1957_v50 = vunpack.i.h.bf16 %v1955_v36 }
 0x251   : > { %v2044_v56 = vpop.eup %2043  ;;  %2063 = vrcp.f32 %v1223_v44  ;;  %v1221_v25 = vadd.f32 1.0, %v2042_v29  ;;  %v959_v57 = vadd.f32 %v958_v37, %v2508_v58 }
 0x252   : > { %v2046_v59 = vpop.eup %2045  ;;  %v1768_v60 = vpack.c.bf16 %v1373_v23, %v1373_v23  ;;  %1456 = vst.msk [vmem:[%s2552_s22 + $0xc] sm:$0xf] %vm1452_vm1, %v1770_v53  ;;  %2065 = vpow2.f32 %v1705_v28  ;;  %v1378_v62 = vmul.f32 %v2044_v56, %v1951_v52  ;;  %v2564_v63 = vpop.f32.mrf.mxu0  ;;  %v1971_v53 = vunpack.i.l.bf16 %v1970_v10 }
 0x253   : > { %v2048_v45 = vpop.eup %2047  ;;  %2067 = vrcp.f32 %v1221_v25  ;;  %v1226_v38 = vadd.f32 1.0, %v2046_v59  ;;  %v1706_v2 = vmul.f32 -1.442695, %v959_v57  ;;  %v1965_v28 = vpop.permute.xlu1 %1964 }
 0x254   : > { %v2050_v3 = vpop.eup %2049  ;;  %1454 = vst.msk [vmem:[%s2552_s22 + $0x4] sm:$0xf] %vm1452_vm1, %v1768_v60  ;;  %v1376_v4 = vmul.f32 %v2048_v45, %v1946_v35  ;;  %v1773_v54 = vpack.c.bf16 %v1378_v62, %v1378_v62  ;;  %v971_v58 = vpop.f32.mrf.mxu0  ;;  %v1966_v25 = vunpack.i.l.bf16 %v1965_v28  ;;  %v1972_v62 = vunpack.i.h.bf16 %v1970_v10 }
 0x255   : > { %v2052_v7 = vpop.eup %2051  ;;  %2069 = vrcp.f32 %v1226_v38  ;;  %v1224_v8 = vadd.f32 1.0, %v2050_v3  ;;  %v972_v9 = vadd.f32 %v971_v58, %v2510_v5 }
 0x256   : > { %v2054_v13 = vpop.eup %2053  ;;  %v1771_v14 = vpack.c.bf16 %v1376_v4, %v1376_v4  ;;  %v1379_v15 = vmul.f32 %v2052_v7, %v1952_v61  ;;  %1459 = vst.msk [vmem:[%s2552_s22 + $0x18] sm:$0xf] %vm1452_vm1, %v1773_v54  ;;  %2071 = vpow2.f32 %v1706_v2  ;;  %v2571_v22 = vpop.f32.mrf.mxu0  ;;  %v1002_v2 = vlaneseq }
 0x257   : > { %v2056_v16 = vpop.eup %2055  ;;  %2073 = vrcp.f32 %v1224_v8  ;;  %v1227_v26 = vadd.f32 1.0, %v2054_v13  ;;  %v1707_v27 = vmul.f32 -1.442695, %v972_v9  ;;  %v1967_v4 = vunpack.i.h.bf16 %v1965_v28 }
 0x258   : > { %v2058_v1 = vpop.eup %2057  ;;  %v1377_v32 = vmul.f32 %v2056_v16, %v1947_v55  ;;  %1457 = vst.msk [vmem:[%s2552_s22 + $0x10] sm:$0xf] %vm1452_vm1, %v1771_v14  ;;  %v1774_v5 = vpack.c.bf16 %v1379_v15, %v1379_v15  ;;  %v974_v33 = vpop.f32.mrf.mxu0  ;;  %v1003_v14 = vshrl.u32 %v1002_v2, 7  ;;  %v986_v15 = vld [vmem:[%s491_s24] sm:$0x1] }
 0x259   : > { %2075 = vrcp.f32 %v1227_v26  ;;  %v1225_v34 = vadd.f32 1.0, %v2058_v1  ;;  %v975_v20 = vadd.f32 %v974_v33, %v2518_v12  ;;  %v1001_v26 = vunpack.c.l.bf16 %v986_v15 }
 0x25a   : > { %v2060_v6 = vpop.eup %2059  ;;  %v1772_v39 = vpack.c.bf16 %v1377_v32, %v1377_v32  ;;  %1460 = vst.msk [vmem:[%s2552_s22 + $0x1c] sm:$0xf] %vm1452_vm1, %v1774_v5  ;;  %2077 = vpow2.f32 %v1707_v27  ;;  %v1004_v27 = vsub.s32 0, %v1003_v14  ;;  %v964_v1 = vadd.f32 %v2545_v0, %v2523_v30 }
 0x25b   : > { %2079 = vrcp.f32 %v1225_v34  ;;  %v1382_v42 = vmul.f32 %v2060_v6, %v1961_v31  ;;  %v1708_v43 = vmul.f32 -1.442695, %v975_v20  ;;  %v967_v33 = vadd.f32 %v2557_v51, %v2528_v40 }
 0x25c   : > { %v2062_v46 = vpop.eup %2061  ;;  %1458 = vst.msk [vmem:[%s2552_s22 + $0x14] sm:$0xf] %vm1452_vm1, %v1772_v39  ;;  %v1005_v5 = vrot.slane %v1001_v26, %v1004_v27  ;;  %v983_v0 = vadd.f32 %v2571_v22, %v2540_v19 }
 0x25d   : > { %v1380_v24 = vmul.f32 %v2062_v46, %v1956_v41  ;;  %v1777_v11 = vpack.c.bf16 %v1382_v42, %v1382_v42  ;;  %2081 = vpow2.f32 %v1708_v43  ;;  %v980_v41 = vadd.f32 %v2564_v63, %v2533_v21 }
 0x25e   : > { %v2064_v12 = vpop.eup %2063 }
 0x25f   : > { %v2066_v49 = vpop.eup %2065  ;;  %v1775_v52 = vpack.c.bf16 %v1380_v24, %v1380_v24  ;;  %v1383_v17 = vmul.f32 %v2064_v12, %v1962_v48  ;;  %1463 = vst.msk [vmem:[%s2552_s22 + $0x28] sm:$0xf] %vm1452_vm1, %v1777_v11 }
 0x260   : > { %v2068_v44 = vpop.eup %2067  ;;  %v993_v47 = vadd.f32 1.0, %v2066_v49 }
 0x261   : > { %v1381_v29 = vmul.f32 %v2068_v44, %v1957_v50  ;;  %1461 = vst.msk [vmem:[%s2552_s22 + $0x20] sm:$0xf] %vm1452_vm1, %v1775_v52  ;;  %v1778_v23 = vpack.c.bf16 %v1383_v17, %v1383_v17 }
 0x262   : > { %v2070_v35 = vpop.eup %2069  ;;  %2083 = vrcp.f32 %v993_v47 }
 0x263   : > { %v2072_v37 = vpop.eup %2071  ;;  %v1776_v56 = vpack.c.bf16 %v1381_v29, %v1381_v29  ;;  %1464 = vst.msk [vmem:[%s2552_s22 + $0x2c] sm:$0xf] %vm1452_vm1, %v1778_v23  ;;  %v1386_v57 = vmul.f32 %v2070_v35, %v1971_v53 }
 0x264   : > { %v2074_v59 = vpop.eup %2073  ;;  %v994_v60 = vadd.f32 1.0, %v2072_v37 }
 0x265   : > { %1462 = vst.msk [vmem:[%s2552_s22 + $0x24] sm:$0xf] %vm1452_vm1, %v1776_v56  ;;  %v1384_v61 = vmul.f32 %v2074_v59, %v1966_v25  ;;  %v1781_v45 = vpack.c.bf16 %v1386_v57, %v1386_v57 }
 0x266   : > { %v2076_v38 = vpop.eup %2075  ;;  %2085 = vrcp.f32 %v994_v60 }
 0x267   : > { %v2078_v3 = vpop.eup %2077  ;;  %v1779_v54 = vpack.c.bf16 %v1384_v61, %v1384_v61  ;;  %v1387_v58 = vmul.f32 %v2076_v38, %v1972_v62  ;;  %1467 = vst.msk [vmem:[%s2552_s22 + $0x38] sm:$0xf] %vm1452_vm1, %v1781_v45 }
 0x268   : > { %v2080_v7 = vpop.eup %2079  ;;  %v1014_v8 = vadd.f32 1.0, %v2078_v3 }
 0x269   : > { %v1385_v9 = vmul.f32 %v2080_v7, %v1967_v4  ;;  %1465 = vst.msk [vmem:[%s2552_s22 + $0x30] sm:$0xf] %vm1452_vm1, %v1779_v54  ;;  %v1782_v13 = vpack.c.bf16 %v1387_v58, %v1387_v58 }
 0x26a   : > { %v2082_v55 = vpop.eup %2081  ;;  %2087 = vrcp.f32 %v1014_v8 }
 0x26b   : > { %v1780_v18 = vpack.c.bf16 %v1385_v9, %v1385_v9  ;;  %v1015_v16 = vadd.f32 1.0, %v2082_v55  ;;  %1468 = vst.msk [vmem:[%s2552_s22 + $0x3c] sm:$0xf] %vm1452_vm1, %v1782_v13 }
 0x26d   : > { %1466 = vst.msk [vmem:[%s2552_s22 + $0x34] sm:$0xf] %vm1452_vm1, %v1780_v18  ;;  %2089 = vrcp.f32 %v1015_v16 }
 0x26f   : > { %v2084_v31 = vpop.eup %2083 }
 0x270   : > { %v999_v32 = vmul.f32 %v2084_v31, %v964_v1 }
 0x272   : > { %v1006_v6 = vmul.f32 %v1005_v5, %v999_v32 }
 0x273   : > { %v2086_v34 = vpop.eup %2085 }
 0x274   : > { %v1000_v20 = vmul.f32 %v2086_v34, %v967_v33 }
 0x276   : > { %v1007_v39 = vmul.f32 %v1005_v5, %v1000_v20 }
 0x277   : > { %v2088_v36 = vpop.eup %2087 }
 0x278   : > { %v1786_v42 = vpack.c.bf16 %v1007_v39, %v1006_v6  ;;  %v1020_v30 = vmul.f32 %v2088_v36, %v980_v41 }
 0x27a   : > { %v2090_v43 = vpop.eup %2089  ;;  %1787 = vst [vmem:[%s509_s28] sm:$0xff] %v1786_v42   ;;  %v1022_v51 = vmul.f32 %v1020_v30, %v1005_v5 }
 0x27b   : > { %v1021_v40 = vmul.f32 %v2090_v43, %v983_v0 }
 0x27d   : > { %v1023_v46 = vmul.f32 %v1021_v40, %v1005_v5 }
 0x27f   : > { %v1791_v24 = vpack.c.bf16 %v1023_v46, %v1022_v51 }
 0x281   : > { %1792 = vst [vmem:[%s517_s30] sm:$0xff] %v1791_v24  }
 0x282 PF: > { %s22_s19 = sadd.s32 1, %s2113_s19   ;;  %s2636_s17 = smov %s2109_s18 }
 0x283   : > { %p19_p5 = scmp.ge.s32.totalorder %s22_s19, 4   ;;  %s2637_s18 = smov %s2639_s20 }
 0x285   :  { %21 = sbr.rel (!%p19_p5) target bundleno = 2 (0x2), region = 116 }

// kernel: triangle_protein_to_compound_v2.8
= control target key start
LH: loop header
LB: loop body
LE: loop exit
PB: predicated region body
PF: predicated region fallthrough
CT: control target
= control target key end

     0   :  { %s2926_s15 = smov 0   ;;  %s2928_s16 = smov 0   ;;  %s3356_s0 = inlined_call_operand.vmem [shape: bf16[2,16,16,16], index: 0, kind: input, shape index: {}]   ;;  %s3357_s1 = inlined_call_operand.vmem [shape: bf16[2,16,16,8], index: 1, kind: input, shape index: {}]   ;;  %s3358_s2 = inlined_call_operand.vmem [shape: bf16[2,16,16,8], index: 2, kind: input, shape index: {}]   ;;  %s3359_s3 = inlined_call_operand.vmem [shape: bf16[2,16,8,8], index: 3, kind: input, shape index: {}]   ;;  %s3360_s4 = inlined_call_operand.vmem [shape: f32[2,16,16,8], index: 4, kind: output, shape index: {}]  }
   0x1   :  { %s2930_s17 = smov 0  }
   0x2 LB: > { %s33_s18 = sadd.s32 1, %s2893_s16  ;;  %p2447_p0 = scmp.ge.s32.totalorder %s2897_s17, 1  ;;  %s2897_s17 = sphi %s2930_s17, %s14_s17   ;;  %s2893_s16 = sphi %s2928_s16, %s3362_s16   ;;  %s2889_s15 = sphi %s2926_s15, %s3361_s15  }
   0x3   : > { %p35_p1 = scmp.ge.s32.totalorder %s33_s18, 2  ;;  %p260_p2 = scmp.lt.s32.totalorder %s2897_s17, 3 }
   0x5   : > { %s3364_s18 = smov (%p35_p1, %s33_s18), 0  ;;  %p261_p3 = pnand %p2447_p0, %p260_p2 }
   0x6   : > { %p339_p4 = scmp.lt.s32.totalorder (!%p261_p3), %s2889_s15, 1 }
   0x7   : > { %264 = sbr.rel (%p261_p3) target bundleno = 344 (0x158), region = 36 }
   0xc   : > { %v2899_v0 = vmov 0.0   ;;  %s3366_s15 = smov (!%p339_p4, %s2889_s15), 1  ;;  %vm2900_vm0 = vmmov 0   ;;  %vm524_vm1 = vcmask 64512   ;;  %vm1363_vm2 = vcmask 130048  }
   0xd   : > { %2609 = vmatprep.subr.bf16.mxu0 %v2899_v0  ;;  %2615 = vmatprep.subr.bf16.mxu1 %v2899_v0  ;;  %s2953_s19 = sshll.u32 %s3366_s15, 7  ;;  %s2543_s20 = sshll.u32 %s3366_s15, 6 }
   0xe   : > { %2611 = vmatprep.mubr.msk.bf16.mxu0 %vm2900_vm0, %v2899_v0  ;;  %2617 = vmatprep.mubr.msk.bf16.mxu1 %vm2900_vm0, %v2899_v0  ;;  %s2960_s23 = scalar_lea.vmem %s3357_s1, %s2953_s19  ;;  %s2965_s26 = scalar_lea.vmem %s3359_s3, %s2543_s20 }
   0xf   : > { %s2971_s29 = scalar_lea.vmem %s3358_s2, %s2953_s19  ;;  %v503_v1 = vld [vmem:[%s2965_s26] sm:$0xf]  ;;  %v504_v2 = vld [vmem:[%s2965_s26 + $0x4] sm:$0xf]  ;;  %v505_v6 = vld [vmem:[%s2965_s26 + $0x8] sm:$0xf]  ;;  %s3015_s6 = scalar_lea.vmem %s3356_s0, %s2953_s19 }
  0x10   : > { %v529_v3 = vsel %vm524_vm1, %v503_v1, 0  ;;  %v581_v4 = vsel %vm524_vm1, %v504_v2, 0  ;;  %v2827_v5 = vld [vmem:[%s2971_s29] sm:$0xff]   ;;  %v506_v7 = vld [vmem:[%s2965_s26 + $0xc] sm:$0xf]  ;;  %v633_v9 = vsel %vm524_vm1, %v505_v6, 0 }
  0x11   : > { %2610 = vmatpush3.bf16.xpose.msra.mxu0 %v529_v3  ;;  %2616 = vmatpush3.bf16.xpose.msra.mxu1 %v581_v4  ;;  %v2828_v8 = vld [vmem:[%s2971_s29 + $0x8] sm:$0xff]   ;;  %v685_v10 = vsel %vm524_vm1, %v506_v7, 0  ;;  %v2829_v11 = vld [vmem:[%s2971_s29 + $0x10] sm:$0xff]   ;;  %v2830_v14 = vld [vmem:[%s2971_s29 + $0x18] sm:$0xff]   ;;  %s2544_s7 = sshll.u32 %s3366_s15, 8 }
  0x12   : > { %2621 = vmatprep.subr.bf16.mxu0 %v2899_v0  ;;  %2627 = vmatprep.subr.bf16.mxu1 %v2899_v0  ;;  %v507_v12 = vld [vmem:[%s2965_s26 + $0x10] sm:$0xf]  ;;  %v508_v13 = vld [vmem:[%s2965_s26 + $0x14] sm:$0xf]  ;;  %v2831_v17 = vld [vmem:[%s2971_s29 + $0x20] sm:$0xff]   ;;  %s3249_s10 = scalar_lea.vmem %s3360_s4, %s2544_s7 }
  0x13   : > { %v737_v15 = vsel %vm524_vm1, %v507_v12, 0  ;;  %v789_v16 = vsel %vm524_vm1, %v508_v13, 0  ;;  %v509_v18 = vld [vmem:[%s2965_s26 + $0x18] sm:$0xf]  ;;  %v510_v19 = vld [vmem:[%s2965_s26 + $0x1c] sm:$0xf] }
  0x14   : > { %v2832_v20 = vld [vmem:[%s2971_s29 + $0x28] sm:$0xff]   ;;  %v841_v21 = vsel %vm524_vm1, %v509_v18, 0  ;;  %v893_v22 = vsel %vm524_vm1, %v510_v19, 0  ;;  %v2833_v23 = vld [vmem:[%s2971_s29 + $0x30] sm:$0xff]   ;;  %v511_v24 = vld [vmem:[%s2965_s26 + $0x20] sm:$0xf] }
  0x15   : > { %v512_v25 = vld [vmem:[%s2965_s26 + $0x24] sm:$0xf]  ;;  %v2834_v26 = vld [vmem:[%s2971_s29 + $0x38] sm:$0xff]   ;;  %v945_v27 = vsel %vm524_vm1, %v511_v24, 0  ;;  %v513_v30 = vld [vmem:[%s2965_s26 + $0x28] sm:$0xf] }
  0x16   : > { %v997_v28 = vsel %vm524_vm1, %v512_v25, 0  ;;  %v2835_v29 = vld [vmem:[%s2971_s29 + $0x40] sm:$0xff]   ;;  %v514_v31 = vld [vmem:[%s2965_s26 + $0x2c] sm:$0xf]  ;;  %v1049_v33 = vsel %vm524_vm1, %v513_v30, 0  ;;  %v2837_v35 = vld [vmem:[%s2971_s29 + $0x50] sm:$0xff]  }
  0x17   : > { %v2836_v32 = vld [vmem:[%s2971_s29 + $0x48] sm:$0xff]   ;;  %v1101_v34 = vsel %vm524_vm1, %v514_v31, 0  ;;  %v515_v36 = vld [vmem:[%s2965_s26 + $0x30] sm:$0xf]  ;;  %v516_v37 = vld [vmem:[%s2965_s26 + $0x34] sm:$0xf] }
  0x18   : > { %2612 = vmatmul.mubr.msk.bf16.vlgmr.msra.gmra.mxu0 %vm524_vm1, %v2827_v5  ;;  %2618 = vmatmul.mubr.msk.bf16.vlgmr.msra.gmra.mxu1 %vm524_vm1, %v2828_v8  ;;  %v2838_v38 = vld [vmem:[%s2971_s29 + $0x58] sm:$0xff]   ;;  %v1153_v39 = vsel %vm524_vm1, %v515_v36, 0  ;;  %v1205_v40 = vsel %vm524_vm1, %v516_v37, 0  ;;  %v2839_v41 = vld [vmem:[%s2971_s29 + $0x60] sm:$0xff]   ;;  %v2840_v44 = vld [vmem:[%s2971_s29 + $0x68] sm:$0xff]  }
  0x19   : > { %2622 = vmatpush3.bf16.xpose.msra.mxu0 %v633_v9  ;;  %2628 = vmatpush3.bf16.xpose.msra.mxu1 %v685_v10  ;;  %v517_v42 = vld [vmem:[%s2965_s26 + $0x38] sm:$0xf]  ;;  %v518_v43 = vld [vmem:[%s2965_s26 + $0x3c] sm:$0xf]  ;;  %v2841_v47 = vld [vmem:[%s2971_s29 + $0x70] sm:$0xff]  }
  0x1a   : > { %2623 = vmatprep.mubr.msk.bf16.mxu0 %vm2900_vm0, %v2899_v0  ;;  %2629 = vmatprep.mubr.msk.bf16.mxu1 %vm2900_vm0, %v2899_v0  ;;  %v1257_v45 = vsel %vm524_vm1, %v517_v42, 0  ;;  %v1309_v46 = vsel %vm524_vm1, %v518_v43, 0  ;;  %v2842_v48 = vld [vmem:[%s2971_s29 + $0x78] sm:$0xff]   ;;  %v2843_v49 = vld [vmem:[%s2960_s23] sm:$0xff]   ;;  %v2844_v50 = vld [vmem:[%s2960_s23 + $0x8] sm:$0xff]  }
  0x1b   : > { %2633 = vmatprep.subr.bf16.mxu0 %v2899_v0  ;;  %2639 = vmatprep.subr.bf16.mxu1 %v2899_v0  ;;  %v2845_v51 = vld [vmem:[%s3015_s6] sm:$0xff]   ;;  %v2846_v52 = vld [vmem:[%s3015_s6 + $0x8] sm:$0xff]   ;;  %v2847_v53 = vld [vmem:[%s2960_s23 + $0x10] sm:$0xff]  }
  0x1c   : > { %v2848_v54 = vld [vmem:[%s2960_s23 + $0x18] sm:$0xff]   ;;  %v2849_v55 = vld [vmem:[%s3015_s6 + $0x10] sm:$0xff]   ;;  %v2851_v57 = vld [vmem:[%s2960_s23 + $0x20] sm:$0xff]  }
  0x1d   : > { %v2850_v56 = vld [vmem:[%s3015_s6 + $0x18] sm:$0xff]   ;;  %v2852_v58 = vld [vmem:[%s2960_s23 + $0x28] sm:$0xff]   ;;  %v2853_v59 = vld [vmem:[%s3015_s6 + $0x20] sm:$0xff]  }
  0x1e   : > { %v2854_v60 = vld [vmem:[%s3015_s6 + $0x28] sm:$0xff]   ;;  %v2855_v61 = vld [vmem:[%s2960_s23 + $0x30] sm:$0xff]   ;;  %v2856_v62 = vld [vmem:[%s2960_s23 + $0x38] sm:$0xff]  }
  0x1f   : > { %v2857_v63 = vld [vmem:[%s3015_s6 + $0x30] sm:$0xff]   ;;  %v2858_v1 = vld [vmem:[%s3015_s6 + $0x38] sm:$0xff]   ;;  %v2859_v2 = vld [vmem:[%s2960_s23 + $0x40] sm:$0xff]  }
  0x20   : > { %2624 = vmatmul.mubr.msk.bf16.vlgmr.msra.gmra.mxu0 %vm524_vm1, %v2829_v11  ;;  %2630 = vmatmul.mubr.msk.bf16.vlgmr.msra.gmra.mxu1 %vm524_vm1, %v2830_v14  ;;  %v2860_v3 = vld [vmem:[%s2960_s23 + $0x48] sm:$0xff]   ;;  %v2861_v4 = vld [vmem:[%s3015_s6 + $0x40] sm:$0xff]   ;;  %v2863_v6 = vld [vmem:[%s2960_s23 + $0x50] sm:$0xff]  }
  0x21   : > { %2634 = vmatpush3.bf16.xpose.msra.mxu0 %v737_v15  ;;  %2640 = vmatpush3.bf16.xpose.msra.mxu1 %v789_v16  ;;  %v2862_v5 = vld [vmem:[%s3015_s6 + $0x48] sm:$0xff]   ;;  %v2864_v7 = vld [vmem:[%s2960_s23 + $0x58] sm:$0xff]   ;;  %v2865_v8 = vld [vmem:[%s3015_s6 + $0x50] sm:$0xff]  }
  0x22   : > { %2635 = vmatprep.mubr.msk.bf16.mxu0 %vm2900_vm0, %v2899_v0  ;;  %2641 = vmatprep.mubr.msk.bf16.mxu1 %vm2900_vm0, %v2899_v0  ;;  %v2866_v9 = vld [vmem:[%s3015_s6 + $0x58] sm:$0xff]   ;;  %v2867_v10 = vld [vmem:[%s2960_s23 + $0x60] sm:$0xff]   ;;  %v2868_v11 = vld [vmem:[%s2960_s23 + $0x68] sm:$0xff]  }
  0x23   : > { %2645 = vmatprep.subr.bf16.mxu0 %v2899_v0  ;;  %2651 = vmatprep.subr.bf16.mxu1 %v2899_v0  ;;  %v2869_v12 = vld [vmem:[%s3015_s6 + $0x60] sm:$0xff]   ;;  %v2870_v13 = vld [vmem:[%s3015_s6 + $0x68] sm:$0xff]   ;;  %v2871_v14 = vld [vmem:[%s2960_s23 + $0x70] sm:$0xff]  }
  0x24   : > { %v2872_v15 = vld [vmem:[%s2960_s23 + $0x78] sm:$0xff]   ;;  %v2873_v16 = vld [vmem:[%s3015_s6 + $0x70] sm:$0xff]  }
  0x28   : > { %2636 = vmatmul.mubr.msk.bf16.vlgmr.msra.gmra.mxu0 %vm524_vm1, %v2831_v17  ;;  %2642 = vmatmul.mubr.msk.bf16.vlgmr.msra.gmra.mxu1 %vm524_vm1, %v2832_v20  ;;  %v2874_v17 = vld [vmem:[%s3015_s6 + $0x78] sm:$0xff]  }
  0x29   : > { %2646 = vmatpush3.bf16.xpose.msra.mxu0 %v841_v21  ;;  %2652 = vmatpush3.bf16.xpose.msra.mxu1 %v893_v22 }
  0x2a   : > { %2647 = vmatprep.mubr.msk.bf16.mxu0 %vm2900_vm0, %v2899_v0  ;;  %2653 = vmatprep.mubr.msk.bf16.mxu1 %vm2900_vm0, %v2899_v0 }
  0x2b   : > { %2657 = vmatprep.subr.bf16.mxu0 %v2899_v0  ;;  %2663 = vmatprep.subr.bf16.mxu1 %v2899_v0 }
  0x30   : > { %2648 = vmatmul.mubr.msk.bf16.vlgmr.msra.gmra.mxu0 %vm524_vm1, %v2833_v23  ;;  %2654 = vmatmul.mubr.msk.bf16.vlgmr.msra.gmra.mxu1 %vm524_vm1, %v2834_v26 }
  0x31   : > { %2658 = vmatpush3.bf16.xpose.msra.mxu0 %v945_v27  ;;  %2664 = vmatpush3.bf16.xpose.msra.mxu1 %v997_v28 }
  0x32   : > { %2659 = vmatprep.mubr.msk.bf16.mxu0 %vm2900_vm0, %v2899_v0  ;;  %2665 = vmatprep.mubr.msk.bf16.mxu1 %vm2900_vm0, %v2899_v0 }
  0x33   : > { %2669 = vmatprep.subr.bf16.mxu0 %v2899_v0  ;;  %2675 = vmatprep.subr.bf16.mxu1 %v2899_v0 }
  0x38   : > { %2660 = vmatmul.mubr.msk.bf16.vlgmr.msra.gmra.mxu0 %vm524_vm1, %v2835_v29  ;;  %2666 = vmatmul.mubr.msk.bf16.vlgmr.msra.gmra.mxu1 %vm524_vm1, %v2836_v32 }
  0x39   : > { %2670 = vmatpush3.bf16.xpose.msra.mxu0 %v1049_v33  ;;  %2676 = vmatpush3.bf16.xpose.msra.mxu1 %v1101_v34 }
  0x3a   : > { %2671 = vmatprep.mubr.msk.bf16.mxu0 %vm2900_vm0, %v2899_v0  ;;  %2677 = vmatprep.mubr.msk.bf16.mxu1 %vm2900_vm0, %v2899_v0 }
  0x3b   : > { %2681 = vmatprep.subr.bf16.mxu0 %v2899_v0  ;;  %2687 = vmatprep.subr.bf16.mxu1 %v2899_v0 }
  0x40   : > { %2672 = vmatmul.mubr.msk.bf16.vlgmr.msra.gmra.mxu0 %vm524_vm1, %v2837_v35  ;;  %2678 = vmatmul.mubr.msk.bf16.vlgmr.msra.gmra.mxu1 %vm524_vm1, %v2838_v38 }
  0x41   : > { %2682 = vmatpush3.bf16.xpose.msra.mxu0 %v1153_v39  ;;  %2688 = vmatpush3.bf16.xpose.msra.mxu1 %v1205_v40 }
  0x42   : > { %2683 = vmatprep.mubr.msk.bf16.mxu0 %vm2900_vm0, %v2899_v0  ;;  %2689 = vmatprep.mubr.msk.bf16.mxu1 %vm2900_vm0, %v2899_v0 }
  0x43   : > { %2693 = vmatprep.subr.bf16.mxu0 %v2899_v0  ;;  %2699 = vmatprep.subr.bf16.mxu1 %v2899_v0 }
  0x48   : > { %2684 = vmatmul.mubr.msk.bf16.vlgmr.msra.gmra.mxu0 %vm524_vm1, %v2839_v41  ;;  %2690 = vmatmul.mubr.msk.bf16.vlgmr.msra.gmra.mxu1 %vm524_vm1, %v2840_v44 }
  0x49   : > { %2694 = vmatpush3.bf16.xpose.msra.mxu0 %v1257_v45  ;;  %2700 = vmatpush3.bf16.xpose.msra.mxu1 %v1309_v46 }
  0x4a   : > { %2695 = vmatprep.mubr.msk.bf16.mxu0 %vm2900_vm0, %v2899_v0  ;;  %2701 = vmatprep.mubr.msk.bf16.mxu1 %vm2900_vm0, %v2899_v0 }
  0x4b   : > { %2705 = vmatprep.subr.bf16.mxu0 %v2899_v0  ;;  %2711 = vmatprep.subr.bf16.mxu1 %v2899_v0 }
  0x50   : > { %2696 = vmatmul.mubr.msk.bf16.vlgmr.msra.gmra.mxu0 %vm524_vm1, %v2841_v47  ;;  %2702 = vmatmul.mubr.msk.bf16.vlgmr.msra.gmra.mxu1 %vm524_vm1, %v2842_v48 }
  0x51   : > { %2706 = vmatpush3.bf16.msra.mxu0 %v2843_v49  ;;  %2712 = vmatpush3.bf16.msra.mxu1 %v2844_v50 }
  0x52   : > { %2707 = vmatprep.mubr.msk.bf16.mxu0 %vm2900_vm0, %v2899_v0  ;;  %2713 = vmatprep.mubr.msk.bf16.mxu1 %vm2900_vm0, %v2899_v0 }
  0x53   : > { %2717 = vmatprep.subr.bf16.mxu0 %v2899_v0  ;;  %2723 = vmatprep.subr.bf16.mxu1 %v2899_v0 }
  0x58   : > { %2708 = vmatmul.mubr.msk.bf16.vlgmr.msra.gmra.mxu0 %vm1363_vm2, %v2845_v51  ;;  %2714 = vmatmul.mubr.msk.bf16.vlgmr.msra.gmra.mxu1 %vm1363_vm2, %v2846_v52 }
  0x59   : > { %2718 = vmatpush3.bf16.msra.mxu0 %v2847_v53  ;;  %2724 = vmatpush3.bf16.msra.mxu1 %v2848_v54 }
  0x5a   : > { %2719 = vmatprep.mubr.msk.bf16.mxu0 %vm2900_vm0, %v2899_v0  ;;  %2725 = vmatprep.mubr.msk.bf16.mxu1 %vm2900_vm0, %v2899_v0 }
  0x5b   : > { %2729 = vmatprep.subr.bf16.mxu0 %v2899_v0  ;;  %2735 = vmatprep.subr.bf16.mxu1 %v2899_v0 }
  0x60   : > { %2720 = vmatmul.mubr.msk.bf16.vlgmr.msra.gmra.mxu0 %vm1363_vm2, %v2849_v55  ;;  %2726 = vmatmul.mubr.msk.bf16.vlgmr.msra.gmra.mxu1 %vm1363_vm2, %v2850_v56 }
  0x61   : > { %2730 = vmatpush3.bf16.msra.mxu0 %v2851_v57  ;;  %2736 = vmatpush3.bf16.msra.mxu1 %v2852_v58 }
  0x62   : > { %2731 = vmatprep.mubr.msk.bf16.mxu0 %vm2900_vm0, %v2899_v0  ;;  %2737 = vmatprep.mubr.msk.bf16.mxu1 %vm2900_vm0, %v2899_v0 }
  0x63   : > { %2741 = vmatprep.subr.bf16.mxu0 %v2899_v0  ;;  %2747 = vmatprep.subr.bf16.mxu1 %v2899_v0 }
  0x68   : > { %2732 = vmatmul.mubr.msk.bf16.vlgmr.msra.gmra.mxu0 %vm1363_vm2, %v2853_v59  ;;  %2738 = vmatmul.mubr.msk.bf16.vlgmr.msra.gmra.mxu1 %vm1363_vm2, %v2854_v60 }
  0x69   : > { %2742 = vmatpush3.bf16.msra.mxu0 %v2855_v61  ;;  %2748 = vmatpush3.bf16.msra.mxu1 %v2856_v62 }
  0x6a   : > { %2743 = vmatprep.mubr.msk.bf16.mxu0 %vm2900_vm0, %v2899_v0  ;;  %2749 = vmatprep.mubr.msk.bf16.mxu1 %vm2900_vm0, %v2899_v0 }
  0x6b   : > { %2753 = vmatprep.subr.bf16.mxu0 %v2899_v0  ;;  %2759 = vmatprep.subr.bf16.mxu1 %v2899_v0 }
  0x70   : > { %2744 = vmatmul.mubr.msk.bf16.vlgmr.msra.gmra.mxu0 %vm1363_vm2, %v2857_v63  ;;  %2750 = vmatmul.mubr.msk.bf16.vlgmr.msra.gmra.mxu1 %vm1363_vm2, %v2858_v1 }
  0x71   : > { %2754 = vmatpush3.bf16.msra.mxu0 %v2859_v2  ;;  %2760 = vmatpush3.bf16.msra.mxu1 %v2860_v3 }
  0x72   : > { %2755 = vmatprep.mubr.msk.bf16.mxu0 %vm2900_vm0, %v2899_v0  ;;  %2761 = vmatprep.mubr.msk.bf16.mxu1 %vm2900_vm0, %v2899_v0 }
  0x73   : > { %2765 = vmatprep.subr.bf16.mxu0 %v2899_v0  ;;  %2771 = vmatprep.subr.bf16.mxu1 %v2899_v0 }
  0x78   : > { %2756 = vmatmul.mubr.msk.bf16.vlgmr.msra.gmra.mxu0 %vm1363_vm2, %v2861_v4  ;;  %2762 = vmatmul.mubr.msk.bf16.vlgmr.msra.gmra.mxu1 %vm1363_vm2, %v2862_v5 }
  0x79   : > { %2766 = vmatpush3.bf16.msra.mxu0 %v2863_v6  ;;  %2772 = vmatpush3.bf16.msra.mxu1 %v2864_v7 }
  0x7a   : > { %2767 = vmatprep.mubr.msk.bf16.mxu0 %vm2900_vm0, %v2899_v0  ;;  %2773 = vmatprep.mubr.msk.bf16.mxu1 %vm2900_vm0, %v2899_v0 }
  0x7b   : > { %2777 = vmatprep.subr.bf16.mxu0 %v2899_v0  ;;  %2783 = vmatprep.subr.bf16.mxu1 %v2899_v0 }
  0x80   : > { %2768 = vmatmul.mubr.msk.bf16.vlgmr.msra.gmra.mxu0 %vm1363_vm2, %v2865_v8  ;;  %2774 = vmatmul.mubr.msk.bf16.vlgmr.msra.gmra.mxu1 %vm1363_vm2, %v2866_v9 }
  0x81   : > { %2778 = vmatpush3.bf16.msra.mxu0 %v2867_v10  ;;  %2784 = vmatpush3.bf16.msra.mxu1 %v2868_v11 }
  0x82   : > { %2779 = vmatprep.mubr.msk.bf16.mxu0 %vm2900_vm0, %v2899_v0  ;;  %2785 = vmatprep.mubr.msk.bf16.mxu1 %vm2900_vm0, %v2899_v0 }
  0x83   : > { %2789 = vmatprep.subr.bf16.mxu0 %v2899_v0  ;;  %2795 = vmatprep.subr.bf16.mxu1 %v2899_v0 }
  0x88   : > { %2780 = vmatmul.mubr.msk.bf16.vlgmr.msra.gmra.mxu0 %vm1363_vm2, %v2869_v12  ;;  %2786 = vmatmul.mubr.msk.bf16.vlgmr.msra.gmra.mxu1 %vm1363_vm2, %v2870_v13 }
  0x89   : > { %2790 = vmatpush3.bf16.msra.mxu0 %v2871_v14  ;;  %2796 = vmatpush3.bf16.msra.mxu1 %v2872_v15 }
  0x8a   : > { %2791 = vmatprep.mubr.msk.bf16.mxu0 %vm2900_vm0, %v2899_v0  ;;  %2797 = vmatprep.mubr.msk.bf16.mxu1 %vm2900_vm0, %v2899_v0 }
  0x90   : > { %2792 = vmatmul.mubr.msk.bf16.vlgmr.msra.gmra.mxu0 %vm1363_vm2, %v2873_v16  ;;  %2798 = vmatmul.mubr.msk.bf16.vlgmr.msra.gmra.mxu1 %vm1363_vm2, %v2874_v17 }
  0xd8   : > { %v3181_v18 = vpop.f32.mrf.mxu0  ;;  %v3183_v19 = vpop.f32.mrf.mxu1 }
  0xda   : > { %v2613_v20 = vpop.f32.mrf.mxu0  ;;  %v2619_v21 = vpop.f32.mrf.mxu1 }
  0xdc   : > { %v3185_v22 = vpop.f32.mrf.mxu0  ;;  %v3187_v23 = vpop.f32.mrf.mxu1 }
  0xde   : > { %v2614_v24 = vpop.f32.mrf.mxu0  ;;  %v2620_v25 = vpop.f32.mrf.mxu1 }
  0xe0   : > { %v3189_v26 = vpop.f32.mrf.mxu0  ;;  %v3191_v0 = vpop.f32.mrf.mxu1 }
  0xe2   : > { %v2625_v27 = vpop.f32.mrf.mxu0  ;;  %v2631_v28 = vpop.f32.mrf.mxu1 }
  0xe4   : > { %v3193_v29 = vpop.f32.mrf.mxu0  ;;  %v3195_v30 = vpop.f32.mrf.mxu1 }
  0xe6   : > { %v2626_v31 = vpop.f32.mrf.mxu0  ;;  %v2632_v32 = vpop.f32.mrf.mxu1 }
  0xe8   : > { %v3197_v33 = vpop.f32.mrf.mxu0  ;;  %v3199_v34 = vpop.f32.mrf.mxu1 }
  0xea   : > { %v2637_v35 = vpop.f32.mrf.mxu0  ;;  %v2643_v36 = vpop.f32.mrf.mxu1 }
  0xec   : > { %v3201_v37 = vpop.f32.mrf.mxu0  ;;  %v3203_v38 = vpop.f32.mrf.mxu1 }
  0xee   : > { %v2638_v39 = vpop.f32.mrf.mxu0  ;;  %v2644_v40 = vpop.f32.mrf.mxu1 }
  0xf0   : > { %v3205_v41 = vpop.f32.mrf.mxu0  ;;  %v3207_v42 = vpop.f32.mrf.mxu1 }
  0xf2   : > { %v2649_v43 = vpop.f32.mrf.mxu0  ;;  %v2655_v44 = vpop.f32.mrf.mxu1 }
  0xf4   : > { %v3209_v45 = vpop.f32.mrf.mxu0  ;;  %v3211_v46 = vpop.f32.mrf.mxu1 }
  0xf6   : > { %v2650_v47 = vpop.f32.mrf.mxu0  ;;  %v2656_v48 = vpop.f32.mrf.mxu1 }
  0xf8   : > { %v3213_v49 = vpop.f32.mrf.mxu0  ;;  %v3215_v50 = vpop.f32.mrf.mxu1 }
  0xfa   : > { %v2661_v51 = vpop.f32.mrf.mxu0  ;;  %v2667_v52 = vpop.f32.mrf.mxu1 }
  0xfc   : > { %v3217_v53 = vpop.f32.mrf.mxu0  ;;  %v3219_v54 = vpop.f32.mrf.mxu1 }
  0xfe   : > { %v2662_v55 = vpop.f32.mrf.mxu0  ;;  %v2668_v56 = vpop.f32.mrf.mxu1 }
 0x100   : > { %v3221_v57 = vpop.f32.mrf.mxu0  ;;  %v3223_v58 = vpop.f32.mrf.mxu1 }
 0x102   : > { %v2673_v59 = vpop.f32.mrf.mxu0  ;;  %v2679_v60 = vpop.f32.mrf.mxu1 }
 0x104   : > { %v3225_v61 = vpop.f32.mrf.mxu0  ;;  %v3227_v62 = vpop.f32.mrf.mxu1 }
 0x106   : > { %v2674_v63 = vpop.f32.mrf.mxu0  ;;  %v2680_v1 = vpop.f32.mrf.mxu1 }
 0x108   : > { %v3229_v2 = vpop.f32.mrf.mxu0  ;;  %v3231_v3 = vpop.f32.mrf.mxu1 }
 0x10a   : > { %v2685_v4 = vpop.f32.mrf.mxu0  ;;  %v2691_v5 = vpop.f32.mrf.mxu1 }
 0x10c   : > { %v3233_v6 = vpop.f32.mrf.mxu0  ;;  %v3235_v7 = vpop.f32.mrf.mxu1 }
 0x10e   : > { %v2686_v8 = vpop.f32.mrf.mxu0  ;;  %v2692_v9 = vpop.f32.mrf.mxu1 }
 0x110   : > { %v3237_v10 = vpop.f32.mrf.mxu0  ;;  %v3239_v11 = vpop.f32.mrf.mxu1 }
 0x112   : > { %v2697_v12 = vpop.f32.mrf.mxu0  ;;  %v2703_v13 = vpop.f32.mrf.mxu1 }
 0x114   : > { %v3241_v14 = vpop.f32.mrf.mxu0  ;;  %v3243_v15 = vpop.f32.mrf.mxu1 }
 0x116   : > { %v2698_v16 = vpop.f32.mrf.mxu0  ;;  %v2704_v17 = vpop.f32.mrf.mxu1 }
 0x118   : > { %v1401_v20 = vpop.f32.mrf.mxu0  ;;  %v1456_v21 = vpop.f32.mrf.mxu1 }
 0x119   : > { %v1402_v24 = vadd.f32 %v1401_v20, %v3181_v18  ;;  %v1457_v25 = vadd.f32 %v1456_v21, %v3183_v19 }
 0x11a   : > { %v2709_v27 = vpop.f32.mrf.mxu0  ;;  %v2715_v28 = vpop.f32.mrf.mxu1 }
 0x11b   : > { %2233 = vst.msk [vmem:[%s3249_s10] sm:$0xff] %vm524_vm1, %v1402_v24  ;;  %2235 = vst.msk [vmem:[%s3249_s10 + $0x10] sm:$0xff] %vm524_vm1, %v1457_v25 }
 0x11c   : > { %v1404_v31 = vpop.f32.mrf.mxu0  ;;  %v1459_v32 = vpop.f32.mrf.mxu1 }
 0x11d   : > { %v1405_v35 = vadd.f32 %v1404_v31, %v3185_v22  ;;  %v1460_v36 = vadd.f32 %v1459_v32, %v3187_v23 }
 0x11e   : > { %v2710_v39 = vpop.f32.mrf.mxu0  ;;  %v2716_v40 = vpop.f32.mrf.mxu1 }
 0x11f   : > { %2234 = vst.msk [vmem:[%s3249_s10 + $0x8] sm:$0xff] %vm524_vm1, %v1405_v35  ;;  %2236 = vst.msk [vmem:[%s3249_s10 + $0x18] sm:$0xff] %vm524_vm1, %v1460_v36 }
 0x120   : > { %v1511_v18 = vpop.f32.mrf.mxu0  ;;  %v1566_v19 = vpop.f32.mrf.mxu1 }
 0x121   : > { %v1512_v43 = vadd.f32 %v1511_v18, %v3189_v26  ;;  %v1567_v44 = vadd.f32 %v1566_v19, %v3191_v0 }
 0x122   : > { %v2721_v47 = vpop.f32.mrf.mxu0  ;;  %v2727_v48 = vpop.f32.mrf.mxu1 }
 0x123   : > { %2237 = vst.msk [vmem:[%s3249_s10 + $0x20] sm:$0xff] %vm524_vm1, %v1512_v43  ;;  %2239 = vst.msk [vmem:[%s3249_s10 + $0x30] sm:$0xff] %vm524_vm1, %v1567_v44 }
 0x124   : > { %v1514_v22 = vpop.f32.mrf.mxu0  ;;  %v1569_v23 = vpop.f32.mrf.mxu1 }
 0x125   : > { %v1515_v51 = vadd.f32 %v1514_v22, %v3193_v29  ;;  %v1570_v52 = vadd.f32 %v1569_v23, %v3195_v30 }
 0x126   : > { %v2722_v55 = vpop.f32.mrf.mxu0  ;;  %v2728_v56 = vpop.f32.mrf.mxu1 }
 0x127   : > { %2238 = vst.msk [vmem:[%s3249_s10 + $0x28] sm:$0xff] %vm524_vm1, %v1515_v51  ;;  %2240 = vst.msk [vmem:[%s3249_s10 + $0x38] sm:$0xff] %vm524_vm1, %v1570_v52 }
 0x128   : > { %v1621_v26 = vpop.f32.mrf.mxu0  ;;  %v1676_v0 = vpop.f32.mrf.mxu1 }
 0x129   : > { %v1622_v59 = vadd.f32 %v1621_v26, %v3197_v33  ;;  %v1677_v60 = vadd.f32 %v1676_v0, %v3199_v34 }
 0x12a   : > { %v2733_v63 = vpop.f32.mrf.mxu0  ;;  %v2739_v1 = vpop.f32.mrf.mxu1 }
 0x12b   : > { %2241 = vst.msk [vmem:[%s3249_s10 + $0x40] sm:$0xff] %vm524_vm1, %v1622_v59  ;;  %2243 = vst.msk [vmem:[%s3249_s10 + $0x50] sm:$0xff] %vm524_vm1, %v1677_v60 }
 0x12c   : > { %v1624_v29 = vpop.f32.mrf.mxu0  ;;  %v1679_v30 = vpop.f32.mrf.mxu1 }
 0x12d   : > { %v1625_v4 = vadd.f32 %v1624_v29, %v3201_v37  ;;  %v1680_v5 = vadd.f32 %v1679_v30, %v3203_v38 }
 0x12e   : > { %v2734_v8 = vpop.f32.mrf.mxu0  ;;  %v2740_v9 = vpop.f32.mrf.mxu1 }
 0x12f   : > { %2242 = vst.msk [vmem:[%s3249_s10 + $0x48] sm:$0xff] %vm524_vm1, %v1625_v4  ;;  %2244 = vst.msk [vmem:[%s3249_s10 + $0x58] sm:$0xff] %vm524_vm1, %v1680_v5 }
 0x130   : > { %v1731_v33 = vpop.f32.mrf.mxu0  ;;  %v1786_v34 = vpop.f32.mrf.mxu1 }
 0x131   : > { %v1732_v12 = vadd.f32 %v1731_v33, %v3205_v41  ;;  %v1787_v13 = vadd.f32 %v1786_v34, %v3207_v42 }
 0x132   : > { %v2745_v16 = vpop.f32.mrf.mxu0  ;;  %v2751_v17 = vpop.f32.mrf.mxu1 }
 0x133   : > { %2245 = vst.msk [vmem:[%s3249_s10 + $0x60] sm:$0xff] %vm524_vm1, %v1732_v12  ;;  %2247 = vst.msk [vmem:[%s3249_s10 + $0x70] sm:$0xff] %vm524_vm1, %v1787_v13 }
 0x134   : > { %v1734_v37 = vpop.f32.mrf.mxu0  ;;  %v1789_v38 = vpop.f32.mrf.mxu1 }
 0x135   : > { %v1735_v20 = vadd.f32 %v1734_v37, %v3209_v45  ;;  %v1790_v21 = vadd.f32 %v1789_v38, %v3211_v46 }
 0x136   : > { %v2746_v24 = vpop.f32.mrf.mxu0  ;;  %v2752_v25 = vpop.f32.mrf.mxu1 }
 0x137   : > { %2246 = vst.msk [vmem:[%s3249_s10 + $0x68] sm:$0xff] %vm524_vm1, %v1735_v20  ;;  %2248 = vst.msk [vmem:[%s3249_s10 + $0x78] sm:$0xff] %vm524_vm1, %v1790_v21 }
 0x138   : > { %v1841_v41 = vpop.f32.mrf.mxu0  ;;  %v1896_v42 = vpop.f32.mrf.mxu1 }
 0x139   : > { %v1842_v27 = vadd.f32 %v1841_v41, %v3213_v49  ;;  %v1897_v28 = vadd.f32 %v1896_v42, %v3215_v50 }
 0x13a   : > { %v2757_v31 = vpop.f32.mrf.mxu0  ;;  %v2763_v32 = vpop.f32.mrf.mxu1 }
 0x13b   : > { %2249 = vst.msk [vmem:[%s3249_s10 + $0x80] sm:$0xff] %vm524_vm1, %v1842_v27  ;;  %2251 = vst.msk [vmem:[%s3249_s10 + $0x90] sm:$0xff] %vm524_vm1, %v1897_v28 }
 0x13c   : > { %v1844_v45 = vpop.f32.mrf.mxu0  ;;  %v1899_v46 = vpop.f32.mrf.mxu1 }
 0x13d   : > { %v1845_v35 = vadd.f32 %v1844_v45, %v3217_v53  ;;  %v1900_v36 = vadd.f32 %v1899_v46, %v3219_v54 }
 0x13e   : > { %v2758_v39 = vpop.f32.mrf.mxu0  ;;  %v2764_v40 = vpop.f32.mrf.mxu1 }
 0x13f   : > { %2250 = vst.msk [vmem:[%s3249_s10 + $0x88] sm:$0xff] %vm524_vm1, %v1845_v35  ;;  %2252 = vst.msk [vmem:[%s3249_s10 + $0x98] sm:$0xff] %vm524_vm1, %v1900_v36 }
 0x140   : > { %v1951_v49 = vpop.f32.mrf.mxu0  ;;  %v2006_v50 = vpop.f32.mrf.mxu1 }
 0x141   : > { %v1952_v18 = vadd.f32 %v1951_v49, %v3221_v57  ;;  %v2007_v19 = vadd.f32 %v2006_v50, %v3223_v58 }
 0x142   : > { %v2769_v43 = vpop.f32.mrf.mxu0  ;;  %v2775_v44 = vpop.f32.mrf.mxu1 }
 0x143   : > { %2253 = vst.msk [vmem:[%s3249_s10 + $0xa0] sm:$0xff] %vm524_vm1, %v1952_v18  ;;  %2255 = vst.msk [vmem:[%s3249_s10 + $0xb0] sm:$0xff] %vm524_vm1, %v2007_v19 }
 0x144   : > { %v1954_v53 = vpop.f32.mrf.mxu0  ;;  %v2009_v54 = vpop.f32.mrf.mxu1 }
 0x145   : > { %v1955_v47 = vadd.f32 %v1954_v53, %v3225_v61  ;;  %v2010_v48 = vadd.f32 %v2009_v54, %v3227_v62 }
 0x146   : > { %v2770_v22 = vpop.f32.mrf.mxu0  ;;  %v2776_v23 = vpop.f32.mrf.mxu1 }
 0x147   : > { %2254 = vst.msk [vmem:[%s3249_s10 + $0xa8] sm:$0xff] %vm524_vm1, %v1955_v47  ;;  %2256 = vst.msk [vmem:[%s3249_s10 + $0xb8] sm:$0xff] %vm524_vm1, %v2010_v48 }
 0x148   : > { %v2061_v57 = vpop.f32.mrf.mxu0  ;;  %v2116_v58 = vpop.f32.mrf.mxu1 }
 0x149   : > { %v2062_v51 = vadd.f32 %v2061_v57, %v3229_v2  ;;  %v2117_v52 = vadd.f32 %v2116_v58, %v3231_v3 }
 0x14a   : > { %v2781_v55 = vpop.f32.mrf.mxu0  ;;  %v2787_v56 = vpop.f32.mrf.mxu1 }
 0x14b   : > { %2257 = vst.msk [vmem:[%s3249_s10 + $0xc0] sm:$0xff] %vm524_vm1, %v2062_v51  ;;  %2259 = vst.msk [vmem:[%s3249_s10 + $0xd0] sm:$0xff] %vm524_vm1, %v2117_v52 }
 0x14c   : > { %v2064_v61 = vpop.f32.mrf.mxu0  ;;  %v2119_v62 = vpop.f32.mrf.mxu1 }
 0x14d   : > { %v2065_v26 = vadd.f32 %v2064_v61, %v3233_v6  ;;  %v2120_v0 = vadd.f32 %v2119_v62, %v3235_v7 }
 0x14e   : > { %v2782_v59 = vpop.f32.mrf.mxu0  ;;  %v2788_v60 = vpop.f32.mrf.mxu1 }
 0x14f   : > { %2258 = vst.msk [vmem:[%s3249_s10 + $0xc8] sm:$0xff] %vm524_vm1, %v2065_v26  ;;  %2260 = vst.msk [vmem:[%s3249_s10 + $0xd8] sm:$0xff] %vm524_vm1, %v2120_v0 }
 0x150   : > { %v2171_v2 = vpop.f32.mrf.mxu0  ;;  %v2226_v3 = vpop.f32.mrf.mxu1 }
 0x151   : > { %v2172_v63 = vadd.f32 %v2171_v2, %v3237_v10  ;;  %v2227_v1 = vadd.f32 %v2226_v3, %v3239_v11 }
 0x152   : > { %v2793_v29 = vpop.f32.mrf.mxu0  ;;  %v2799_v30 = vpop.f32.mrf.mxu1 }
 0x153   : > { %2261 = vst.msk [vmem:[%s3249_s10 + $0xe0] sm:$0xff] %vm524_vm1, %v2172_v63  ;;  %2263 = vst.msk [vmem:[%s3249_s10 + $0xf0] sm:$0xff] %vm524_vm1, %v2227_v1 }
 0x154   : > { %v2174_v6 = vpop.f32.mrf.mxu0  ;;  %v2229_v7 = vpop.f32.mrf.mxu1 }
 0x155   : > { %v2175_v4 = vadd.f32 %v2174_v6, %v3241_v14  ;;  %v2230_v5 = vadd.f32 %v2229_v7, %v3243_v15 }
 0x156   : > { %v2794_v8 = vpop.f32.mrf.mxu0  ;;  %v2800_v9 = vpop.f32.mrf.mxu1 }
 0x157   : > { %2262 = vst.msk [vmem:[%s3249_s10 + $0xe8] sm:$0xff] %vm524_vm1, %v2175_v4  ;;  %2264 = vst.msk [vmem:[%s3249_s10 + $0xf8] sm:$0xff] %vm524_vm1, %v2230_v5 }
 0x158 PF: > { %s14_s17 = sadd.s32 1, %s2897_s17   ;;  %s3361_s15 = smov %s2893_s16 }
 0x159   : > { %p11_p5 = scmp.ge.s32.totalorder %s14_s17, 4   ;;  %s3362_s16 = smov %s3364_s18 }
 0x15b   :  { %13 = sbr.rel (!%p11_p5) target bundleno = 2 (0x2), region = 75 }

// kernel: triangle_protein_to_compound_v2.9
= control target key start
LH: loop header
LB: loop body
LE: loop exit
PB: predicated region body
PF: predicated region fallthrough
CT: control target
= control target key end

     0   :  { %9 = vsyncpa [#allocation3], 0  ;;  %s1083_s0 = inlined_call_operand.vmem [shape: f32[2,16,128], index: 0, kind: input, shape index: {}]   ;;  %s1084_s1 = inlined_call_operand.vmem [shape: bf16[2,128,32], index: 1, kind: input, shape index: {}]   ;;  %s1085_s2 = inlined_call_operand.vmem [shape: bf16[16,32], index: 2, kind: input, shape index: {}]   ;;  %s1086_s3 = inlined_call_operand.vmem [shape: f32[1,32], index: 3, kind: input, shape index: {}]   ;;  %s1087_s4 = inlined_call_operand.hbm [shape: f32[2,128,32], index: 4, kind: output, shape index: {}]  }
   0x1   :  { %11 = vsyncpa [#allocation3 + $0x1], 0  ;;  %s881_s15 = smov 0   ;;  %s883_s16 = smov 0  }
   0x2   :  { %s885_s17 = smov 0   ;;  %s887_s18 = smov 0  }
   0x3   :  { %s889_s19 = smov 0   ;;  %s891_s20 = smov 0  }
   0x4 LB: > { %s618_s21 = sadd.s32 4294967295, %s851_s20   ;;  %s619_s22 = sadd.s32 4294967294, %s851_s20   ;;  %s851_s20 = sphi %s891_s20, %s17_s20   ;;  %s847_s19 = sphi %s889_s19, %s1094_s19   ;;  %s843_s18 = sphi %s887_s18, %s1093_s18   ;;  %s839_s17 = sphi %s885_s17, %s1092_s17   ;;  %s835_s16 = sphi %s883_s16, %s1091_s16   ;;  %s831_s15 = sphi %s881_s15, %s1090_s15  }
   0x5   : > { %s29_s23 = sadd.s32 1, %s847_s19  ;;  %s136_s24 = sadd.s32 1, %s839_s17 }
   0x6   : > { %p31_p0 = scmp.ge.s32.totalorder %s29_s23, 2  ;;  %p146_p1 = scmp.ne.s32.totalorder %s839_s17, %s835_s16 }
   0x7   : > { %p147_p2 = scmp.eq.s32.totalorder %s618_s21, 1  ;;  %p152_p3 = scmp.ne.s32.totalorder %s835_s16, %s831_s15 }
   0x8   : > { %s1096_s23 = smov (%p31_p0, %s29_s23), 0  ;;  %p153_p5 = scmp.eq.s32.totalorder %s619_s22, 1 }
   0x9   : > { %p921_p4 = por %p147_p2, %p146_p1  ;;  %s131_s26 = ssub.s32 %s847_s19, %s1096_s23 }
   0xa   : > { %p622_p6 = scmp.ge.s32.totalorder %s851_s20, 1  ;;  %p134_p7 = scmp.eq.s32.totalorder %s131_s26, 0 }
   0xb   : > { %p928_p8 = por %p153_p5, %p152_p3  ;;  %p201_p9 = scmp.lt.s32.totalorder %s851_s20, 3 }
   0xc   : > { %s934_s28 = scalar_select %p134_p7, %s839_s17, %s136_s24  }
   0xd   : > { %p202_p10 = pnand %p622_p6, %p201_p9 }
   0xe   : > { %p239_p11 = scmp.lt.s32.totalorder (!%p202_p10), %s843_s18, 1  ;;  %s236_s14 = sand.u32 (!%p202_p10), 1, %s835_s16  }
   0xf   : > { %205 = sbr.rel (%p202_p10) target bundleno = 425 (0x1a9), region = 36  ;;  %s623_s24 = sshll.u32 (!%p202_p10), %s236_s14, 7 }
  0x10   : > { %s974_s26 = scalar_lea.vmem (!%p202_p10), [#allocation2], %s623_s24  ;;  %s853_s9 = smov (!%p202_p10), [#allocation2]  }
  0x14   : > { %s938_s29 = scalar_select %p239_p11, %s843_s18, 1  ;;  %v772_v17 = vld [vmem:[%s1085_s2] sm:$0xff]   ;;  %vm318_vm0 = vcmask 130048   ;;  %vm488_vm1 = vcmask 261120  }
  0x15   : > { %694 = vmatprep.subr.bf16.mxu0 %v772_v17  ;;  %712 = vmatprep.subr.bf16.mxu1 %v772_v17  ;;  %v966_v37 = vld [vmem:[%s1086_s3] ss:$0 sm:$0xff] }
  0x16   : > { %s643_s30 = sshll.u32 %s938_s29, 4  ;;  %695 = vmatpush3.bf16.msra.mxu0 %v772_v17  ;;  %713 = vmatpush3.bf16.msra.mxu1 %v772_v17  ;;  %s644_s10 = sshll.u32 %s938_s29, 6 }
  0x17   : > { %s246_s7 = scalar_lea.vmem %s1083_s0, %s643_s30  ;;  %s959_s13 = scalar_lea.vmem %s1084_s1, %s644_s10 }
  0x18   : > { %v259_v0 = vld [vmem:[%s246_s7] sm:$0xff]  ;;  %v260_v1 = vld [vmem:[%s246_s7 + $0x8] sm:$0xff]  ;;  %v680_v48 = vld [vmem:[%s959_s13 + $0x18] sm:$0xff]   ;;  %s645_s29 = sshll.u32 %s843_s18, 11  ;;  %s521_s30 = sshll.u32 %s974_s26, 4  ;;  %s1030_s30 = int_to_ptr.vmem [resolvable:$true] %s521_s30 }
  0x19   : > { %v261_v2 = vadd.f32 %v260_v1, %v259_v0  ;;  %v678_v36 = vld [vmem:[%s959_s13 + $0x8] sm:$0xff]   ;;  %v647_v38 = vld [vmem:[%s959_s13] sm:$0xff]   ;;  %v679_v53 = vld [vmem:[%s959_s13 + $0x10] sm:$0xff]   ;;  %v660_v56 = vunpack.c.l.bf16 %v680_v48  ;;  %s1028_s7 = scalar_lea.hbm %s1087_s4, %s645_s29  ;;  %s1038_s18 = scalar_lea.sflag [#allocation3], %s236_s14 }
  0x1a   : > { %v652_v39 = vunpack.c.l.bf16 %v678_v36  ;;  %v648_v42 = vunpack.c.l.bf16 %v647_v38  ;;  %v653_v46 = vunpack.c.h.bf16 %v678_v36  ;;  %v649_v51 = vunpack.c.h.bf16 %v647_v38  ;;  %s775_s8 = scalar_lea.vmem %s1030_s30, 2048  ;;  %s779_s10 = sshll.u32 %s853_s9, 4  ;;  %s780_s10 = int_to_ptr.vmem [resolvable:$false] %s779_s10 }
  0x1b   : > { %v262_v3 = vrot.slane %v261_v2, 4  ;;  %v656_v60 = vunpack.c.l.bf16 %v679_v53  ;;  %p776_p12 = scmp.ne.s32.totalorder %s1030_s30, %s775_s8  ;;  %s781_s11 = scalar_lea.vmem %s780_s10, 4096 }
  0x1c   : > { %p782_p1 = scmp.lt.s32.totalorder %s1030_s30, %s780_s10  ;;  %p783_p2 = scmp.lt.s32.totalorder %s781_s11, %s775_s8 }
  0x1d   : > { %v263_v4 = vadd.f32 %v262_v3, %v261_v2  ;;  %v682_v2 = vld [vmem:[%s959_s13 + $0x28] sm:$0xff]   ;;  %p777_p13 = pnand %p776_p12, %p921_p4 }
  0x1e   : > { %p784_p3 = por %p783_p2, %p782_p1 }
  0x1f   : > { %v264_v5 = vrot.slane %v263_v4, 2  ;;  %p778_p0 = pneg %p777_p13 }
  0x21   : > { %v265_v6 = vadd.f32 %v264_v5, %v263_v4  ;;  %v657_v5 = vunpack.c.h.bf16 %v679_v53  ;;  %p785_p5 = pnand %p784_p3, %p778_p0 }
  0x23   : > { %v266_v7 = vrot.slane %v265_v6, 1 }
  0x25   : > { %v267_v8 = vadd.f32 %v266_v7, %v265_v6  ;;  %v681_v7 = vld [vmem:[%s959_s13 + $0x20] sm:$0xff]  }
  0x27   : > { %v269_v9 = vmul.f32 0.0625, %v267_v8 }
  0x29   : > { %v270_v10 = vsub.f32 %v259_v0, %v269_v9  ;;  %v271_v11 = vsub.f32 %v260_v1, %v269_v9  ;;  %v661_v0 = vunpack.c.h.bf16 %v680_v48 }
  0x2b   : > { %v272_v12 = vmul.f32 %v270_v10, %v270_v10  ;;  %v273_v13 = vmul.f32 %v271_v11, %v271_v11 }
  0x2d   : > { %v274_v14 = vadd.f32 %v273_v13, %v272_v12 }
  0x2f   : > { %v275_v15 = vrot.slane %v274_v14, 4 }
  0x31   : > { %v276_v16 = vadd.f32 %v275_v15, %v274_v14  ;;  %v664_v14 = vunpack.c.l.bf16 %v681_v7 }
  0x33   : > { %v277_v18 = vrot.slane %v276_v16, 2 }
  0x35   : > { %v278_v19 = vadd.f32 %v277_v18, %v276_v16  ;;  %v669_v18 = vunpack.c.h.bf16 %v682_v2 }
  0x37   : > { %v279_v20 = vrot.slane %v278_v19, 1 }
  0x39   : > { %v280_v21 = vadd.f32 %v279_v20, %v278_v19  ;;  %v684_v20 = vld [vmem:[%s959_s13 + $0x38] sm:$0xff]  }
  0x3a   : > { %v677_v36 = vunpack.c.h.bf16 %v684_v20 }
  0x3b   : > { %v281_v22 = vmul.f32 0.0625, %v280_v21 }
  0x3d   : > { %v282_v23 = vadd.f32 1e-05, %v281_v22 }
  0x3f   : > { %773 = vrsqrt.f32 %v282_v23  ;;  %v665_v23 = vunpack.c.h.bf16 %v681_v7 }
  0x4c   : > { %v774_v24 = vpop.eup %773 }
  0x4d   : > { %v284_v25 = vmul.f32 %v774_v24, %v270_v10  ;;  %v285_v26 = vmul.f32 %v774_v24, %v271_v11  ;;  %v668_v10 = vunpack.c.l.bf16 %v682_v2 }
  0x4f   : > { %v286_v27 = vpack.c.bf16 %v285_v26, %v284_v25  ;;  %v683_v25 = vld [vmem:[%s959_s13 + $0x30] sm:$0xff]  }
  0x51   : > { %296 = vxpose.xlu0.c.b16.start.end [1/1] (short) %v286_v27, 128 }
  0xb3   : > { %v304_v28 = vpop.trf.xlu0 }
  0xb4   : > { %696 = vmatprep.mubr.msk.bf16.mxu0 %vm318_vm0, %v304_v28  ;;  %v676_v28 = vunpack.c.l.bf16 %v684_v20 }
  0xb7   : > { %v305_v29 = vpop.trf.xlu0 }
  0xb8   : > { %697 = vmatmul.mubr.msk.bf16.vlgmr.msra.gmra.mxu0 %vm318_vm0, %v305_v29 }
  0xbb   : > { %v306_v30 = vpop.trf.xlu0 }
  0xbc   : > { %700 = vmatprep.mubr.msk.bf16.mxu0 %vm318_vm0, %v306_v30 }
  0xbf   : > { %v307_v31 = vpop.trf.xlu0 }
  0xc0   : > { %701 = vmatmul.mubr.msk.bf16.gmra.mxu0 %vm318_vm0, %v307_v31 }
  0xc3   : > { %v308_v32 = vpop.trf.xlu0 }
  0xc4   : > { %704 = vmatprep.mubr.msk.bf16.mxu1 %vm318_vm0, %v308_v32  ;;  %v672_v32 = vunpack.c.l.bf16 %v683_v25 }
  0xc7   : > { %v309_v33 = vpop.trf.xlu0 }
  0xc8   : > { %705 = vmatmul.mubr.msk.bf16.vlgmr.msra.gmra.mxu1 %vm318_vm0, %v309_v33 }
  0xcb   : > { %v310_v34 = vpop.trf.xlu0 }
  0xcc   : > { %708 = vmatprep.mubr.msk.bf16.mxu1 %vm318_vm0, %v310_v34 }
  0xcf   : > { %v311_v35 = vpop.trf.xlu0 }
  0xd0   : > { %709 = vmatmul.mubr.msk.bf16.gmra.mxu1 %vm318_vm0, %v311_v35 }
 0x178   : > { %v698_v40 = vpop.f32.mrf.mxu0 }
 0x179   : > { %v386_v41 = vadd.f32 %v698_v40, %v966_v37 }
 0x17a   : > { %v377_v43 = vpop.f32.mrf.mxu0 }
 0x17b   : > { %v474_v44 = vmul.f32 %v652_v39, %v386_v41  ;;  %v378_v45 = vadd.f32 %v966_v37, %v377_v43  ;;  %v673_v41 = vunpack.c.h.bf16 %v683_v25 }
 0x17c   : > { %v699_v47 = vpop.f32.mrf.mxu0 }
 0x17d   : > { %491 = vst.msk [vmem:[%s974_s26 + $0x10] sm:$0xff] %vm488_vm1, %v474_v44  ;;  %v472_v49 = vmul.f32 %v648_v42, %v378_v45  ;;  %v389_v50 = vadd.f32 %v699_v47, %v966_v37 }
 0x17e   : > { %v380_v52 = vpop.f32.mrf.mxu0 }
 0x17f   : > { %489 = vst.msk [vmem:[%s974_s26] sm:$0xff] %vm488_vm1, %v472_v49  ;;  %v475_v54 = vmul.f32 %v653_v46, %v389_v50  ;;  %v381_v55 = vadd.f32 %v966_v37, %v380_v52 }
 0x180   : > { %v702_v57 = vpop.f32.mrf.mxu0 }
 0x181   : > { %492 = vst.msk [vmem:[%s974_s26 + $0x18] sm:$0xff] %vm488_vm1, %v475_v54  ;;  %v473_v58 = vmul.f32 %v649_v51, %v381_v55  ;;  %v402_v59 = vadd.f32 %v702_v57, %v966_v37 }
 0x182   : > { %v393_v61 = vpop.f32.mrf.mxu0 }
 0x183   : > { %490 = vst.msk [vmem:[%s974_s26 + $0x8] sm:$0xff] %vm488_vm1, %v473_v58  ;;  %v478_v62 = vmul.f32 %v660_v56, %v402_v59  ;;  %v394_v63 = vadd.f32 %v966_v37, %v393_v61 }
 0x184   : > { %v703_v1 = vpop.f32.mrf.mxu0 }
 0x185   : > { %495 = vst.msk [vmem:[%s974_s26 + $0x30] sm:$0xff] %vm488_vm1, %v478_v62  ;;  %v476_v3 = vmul.f32 %v656_v60, %v394_v63  ;;  %v405_v4 = vadd.f32 %v703_v1, %v966_v37 }
 0x186   : > { %v396_v6 = vpop.f32.mrf.mxu0 }
 0x187   : > { %493 = vst.msk [vmem:[%s974_s26 + $0x20] sm:$0xff] %vm488_vm1, %v476_v3  ;;  %v479_v8 = vmul.f32 %v661_v0, %v405_v4  ;;  %v397_v9 = vadd.f32 %v966_v37, %v396_v6 }
 0x188   : > { %v706_v11 = vpop.f32.mrf.mxu1 }
 0x189   : > { %496 = vst.msk [vmem:[%s974_s26 + $0x38] sm:$0xff] %vm488_vm1, %v479_v8  ;;  %v477_v12 = vmul.f32 %v657_v5, %v397_v9  ;;  %v418_v13 = vadd.f32 %v706_v11, %v966_v37 }
 0x18a   : > { %v409_v15 = vpop.f32.mrf.mxu1 }
 0x18b   : > { %494 = vst.msk [vmem:[%s974_s26 + $0x28] sm:$0xff] %vm488_vm1, %v477_v12  ;;  %v482_v16 = vmul.f32 %v668_v10, %v418_v13  ;;  %v410_v17 = vadd.f32 %v966_v37, %v409_v15 }
 0x18c   : > { %v707_v19 = vpop.f32.mrf.mxu1 }
 0x18d   : > { %499 = vst.msk [vmem:[%s974_s26 + $0x50] sm:$0xff] %vm488_vm1, %v482_v16  ;;  %v480_v21 = vmul.f32 %v664_v14, %v410_v17  ;;  %v421_v22 = vadd.f32 %v707_v19, %v966_v37 }
 0x18e   : > { %v412_v24 = vpop.f32.mrf.mxu1 }
 0x18f   : > { %497 = vst.msk [vmem:[%s974_s26 + $0x40] sm:$0xff] %vm488_vm1, %v480_v21  ;;  %v483_v26 = vmul.f32 %v669_v18, %v421_v22  ;;  %v413_v27 = vadd.f32 %v966_v37, %v412_v24 }
 0x190   : > { %v710_v29 = vpop.f32.mrf.mxu1 }
 0x191   : > { %500 = vst.msk [vmem:[%s974_s26 + $0x58] sm:$0xff] %vm488_vm1, %v483_v26  ;;  %v481_v30 = vmul.f32 %v665_v23, %v413_v27  ;;  %v434_v31 = vadd.f32 %v710_v29, %v966_v37 }
 0x192   : > { %v425_v33 = vpop.f32.mrf.mxu1 }
 0x193   : > { %498 = vst.msk [vmem:[%s974_s26 + $0x48] sm:$0xff] %vm488_vm1, %v481_v30  ;;  %v486_v34 = vmul.f32 %v676_v28, %v434_v31  ;;  %v426_v35 = vadd.f32 %v966_v37, %v425_v33 }
 0x194   : > { %v711_v38 = vpop.f32.mrf.mxu1 }
 0x195   : > { %503 = vst.msk [vmem:[%s974_s26 + $0x70] sm:$0xff] %vm488_vm1, %v486_v34  ;;  %v484_v39 = vmul.f32 %v672_v32, %v426_v35  ;;  %v437_v40 = vadd.f32 %v711_v38, %v966_v37 }
 0x196   : > { %v428_v42 = vpop.f32.mrf.mxu1 }
 0x197   : > { %501 = vst.msk [vmem:[%s974_s26 + $0x60] sm:$0xff] %vm488_vm1, %v484_v39  ;;  %v487_v43 = vmul.f32 %v677_v36, %v437_v40  ;;  %v429_v44 = vadd.f32 %v966_v37, %v428_v42 }
 0x199   : > { %504 = vst.msk [vmem:[%s974_s26 + $0x78] sm:$0xff] %vm488_vm1, %v487_v43  ;;  %v485_v45 = vmul.f32 %v673_v41, %v429_v44 }
 0x19b   : > { %502 = vst.msk [vmem:[%s974_s26 + $0x68] sm:$0xff] %vm488_vm1, %v485_v45 }
 0x19c   : > { %788 = shalt.err (!%p785_p5)
}
 0x19d   : > { %s789_s12 = scalar_lea.hbm %s1028_s7, 2048  ;;  %s793_s21 = scalar_lea.hbm %s1087_s4, 4096 }
 0x19e   : > { %p790_p6 = scmp.ne.s32.totalorder %s1028_s7, %s789_s12  ;;  %p794_p10 = scmp.lt.s32.totalorder %s1028_s7, %s1087_s4 }
 0x19f   : > { %p795_p11 = scmp.lt.s32.totalorder %s793_s21, %s789_s12 }
 0x1a0   : > { %p791_p7 = pnand %p790_p6, %p921_p4 }
 0x1a1   : > { %p796_p12 = por %p795_p11, %p794_p10 }
 0x1a2   : > { %p792_p9 = pneg %p791_p7 }
 0x1a4   : > { %p797_p13 = pnand %p796_p12, %p792_p9 }
 0x1a6   : > { %800 = shalt.err (!%p797_p13)
}
 0x1a7   : > { %s854_s26 = smov 128   ;;  %s855_s29 = smov 8  }
 0x1a8   : > { %714 = dma.vmem_to_hbm [thread:$0]  (%p921_p4), %s1030_s30, 2048, %s1028_s7, %s1038_s18, %s854_s26, %s854_s26, %s855_s29  }
 0x1a9 PF: > { %p720_p0 = scmp.ge.s32.totalorder %s851_s20, 2  ;;  %s536_s5 = sand.u32 1, %s831_s15  }
 0x1aa   : > { %s537_s6 = scalar_lea.sflag [#allocation3], %s536_s5 }
 0x1ab   : > { %p717_p1 = pnand %p720_p0, %p928_p8 }
 0x1ad   : > { %p718_p2 = pneg %p717_p1 }
 0x1af   : > { %826 = dma.done.wait (%p718_p2), %s537_s6, 2048  }
 0x1b0   : > { %828 = vsyncadd (%p718_p2), %s537_s6, 4294965248  ;;  %s17_s20 = sadd.s32 1, %s851_s20   ;;  %s1090_s15 = smov %s835_s16 }
 0x1b1   : > { %p14_p3 = scmp.ge.s32.totalorder %s17_s20, 4   ;;  %s1091_s16 = smov %s839_s17 }
 0x1b2   : > { %s1092_s17 = smov %s934_s28  ;;  %s1093_s18 = smov %s847_s19 }
 0x1b3   : > { %s1094_s19 = smov %s1096_s23  ;;  %16 = sbr.rel (!%p14_p3) target bundleno = 4 (0x4), region = 74 }
 0x1b8   :  { %542 = vsyncpa [#allocation3], 1 }
 0x1b9   :  { %544 = vsyncpa [#allocation3 + $0x1], 1 }

</bundles_post_ra>
